<compile_context>
chip_gen: v5e
topology: v5e:2x2
jax: 0.10.0
libtpu: 0.0.40
codegen_flags: <defaults>
</compile_context>

<pallas_src>
import math

import jax
import jax.numpy as jnp
from jax.experimental import pallas as pl
from jax.experimental.pallas import tpu as pltpu

HIDDEN_DIM = 32
NUM_HEADS = 4
HEAD_SIZE = HIDDEN_DIM // NUM_HEADS
NEG_INF = 1e6  # CrossAttentionBlock masks by `logits - inf`


def _round_up(x, m):
    return ((x + m - 1) // m) * m


# ---------------------------------------------------------------------------
# Pallas kernel: a block of B samples per grid step.
#   x_ref:     (B*L, D)   bf16 combined [protein ; text] features (lane dim = D = full)
#   mrow_ref:  (B, L, 1)  f32 query-row validity mask (1.0 = valid token)
#   kbias_ref: (B, 1, L)  f32 additive key bias: 0 valid key / -1e6 invalid key
#   xbias_ref: (1, L, L)  f32 additive cross bias: 0 cross-modality / -1e6 same modality
#   wqkv_ref:  (D, 3D)    bf16 fused [Wq*scale | Wk | Wv] (x @ W^T form)
#   bqkv_ref:  (1, 3D)    f32 fused biases (bq pre-scaled)
#   o_ref:     (B, L*D)   f32 lane-dense output slab
# ---------------------------------------------------------------------------
def _cross_attention_kernel(x_ref, mrow_ref, kbias_ref, xbias_ref,
                            wqkv_ref, bqkv_ref, o_ref):
    B, L, _ = mrow_ref.shape
    D = HIDDEN_DIM

    # Fused, pre-scaled QKV projection for BOTH modalities: one MXU matmul.
    qkv = jnp.dot(x_ref[...], wqkv_ref[...], preferred_element_type=jnp.float32)
    qkv = (qkv + bqkv_ref[...]).astype(jnp.bfloat16)      # single wide f32->bf16 pack
    qkv = qkv.reshape(B, L, 3 * D)                        # leading-dim split only

    # Additive attention bias shared by all heads. Query-row masking is NOT folded in
    # here; it is applied once to the final output (identical result, fewer VPU ops).
    bias = kbias_ref[...] + xbias_ref[...]                # (B, L, L) f32

    outs = []
    for h in range(NUM_HEADS):                            # static unroll, H = 4
        lo = h * HEAD_SIZE
        qh = qkv[:, :, lo:lo + HEAD_SIZE]
        kh = qkv[:, :, D + lo:D + lo + HEAD_SIZE]
        vh = qkv[:, :, 2 * D + lo:2 * D + lo + HEAD_SIZE]
        logits = jnp.einsum('bqd,bkd->bqk', qh, kh,
                            preferred_element_type=jnp.float32) + bias
        logits = logits - jnp.max(logits, axis=-1, keepdims=True)
        e = jnp.exp(logits)                               # masked entries underflow to 0
        denom = jnp.sum(e, axis=-1, keepdims=True)
        alpha = (e * pl.reciprocal(denom, approx=True)).astype(jnp.bfloat16)
        outs.append(jnp.einsum('bqk,bkd->bqd', alpha, vh,
                               preferred_element_type=jnp.float32))
    out = jnp.concatenate(outs, axis=-1)                   # (B, L, D) f32
    # TODO(synk): fully head-batched (B*H, L, hd) einsums would fold this unrolled loop
    # into 2 dot_generals but need in-kernel 4-D transposes; kept the proven per-head
    # form (the MXU op count is identical after batch unrolling).

    # Zero invalid query rows (== reference's alpha-row zeroing), ReLU, then store the
    # output lane-dense: (B, L*D) rows are 128-lane multiples -> unmasked stores.
    out = jnp.maximum(out * mrow_ref[...], 0.0)
    o_ref[...] = out.reshape(B, L * D).astype(o_ref.dtype)


# ---------------------------------------------------------------------------
# Block-size heuristic: L-aware VMEM budget (counts the O(B*L^2) f32 temporaries).
# ---------------------------------------------------------------------------
def _pick_samples_per_step(N, L):
    D = HIDDEN_DIM
    Lp = _round_up(L, 128)                    # lane-padded key / logits axis
    per_sample = (
        2 * (L * 128 * 2)       # (B*L, D) bf16 x block, lane-padded, double-buffered
        + 2 * (L * D * 4)       # lane-dense (B, L*D) f32 out block, double-buffered
        + 2 * (L * 128 * 4)     # (B, L, 1) f32 query-mask block, lane-padded
        + 2 * (8 * 128 * 4)     # (B, 1, L) f32 key-bias block, sublane/lane padded
        + (L * 128 * 6)         # qkv f32 value + bf16 copy
        + 28 * L * Lp           # bias + ~2 live heads of (L, L) f32 logits/exp/alpha
        + 2 * (L * D * 4)       # assembled + relaid-out output value
    )
    budget = 24 << 20           # keeps estimated usage well inside v7x's 64 MiB VMEM
    B = int(budget // per_sample)
    B = max(8, min(256, B - (B % 8)))         # sublane-aligned sample block
    B = min(B, _round_up(N, 8))               # never pad N up by more than one block
    if N > 8:                                 # >= 2 equal grid steps for v7x's 2 TCs
        B = min(B, _round_up(-(-N // 2), 8))
    align = 256 // math.gcd(256, L)           # make B*L a multiple of the MXU depth
    if align > 1 and B >= align:
        b_al = (B // align) * align
        if -(-N // b_al) == -(-N // B):       # only if it does not add grid steps
            B = b_al
    # TODO(synk): for very long sequences (L >~ 512) a flash-style key-tiled online
    # softmax is required to keep B >= 8 within v7x's 64 MiB VMEM.
    return B, per_sample


# ---------------------------------------------------------------------------
# Wrapper: plain-JAX glue + pallas_call
# ---------------------------------------------------------------------------
def cross_attention_pallas(protein_padded, text_input, protein_mask, text_mask, params):
    N, L1, D = protein_padded.shape
    _, L2, _ = text_input.shape
    assert D == HIDDEN_DIM
    wq_t, bq, wk_t, bk, wv_t, bv = params

    # Pack both modalities into one padded sequence per sample (sublane-aligned lengths).
    L1p, L2p = _round_up(L1, 8), _round_up(L2, 8)
    L = L1p + L2p
    x = jnp.concatenate(
        [jnp.pad(protein_padded.astype(jnp.float32), ((0, 0), (0, L1p - L1), (0, 0))),
         jnp.pad(text_input.astype(jnp.float32), ((0, 0), (0, L2p - L2), (0, 0)))],
        axis=1)                                                          # (N, L, D)
    m = jnp.concatenate(
        [jnp.pad(protein_mask.astype(jnp.float32), ((0, 0), (0, L1p - L1))),
         jnp.pad(text_mask.astype(jnp.float32), ((0, 0), (0, L2p - L2)))],
        axis=1)                                                          # (N, L)

    # Fused QKV params; fold 1/sqrt(head_size) into Wq/bq (zero in-kernel cost).
    scale = 1.0 / math.sqrt(HEAD_SIZE)
    wqkv = jnp.concatenate([wq_t * scale, wk_t, wv_t], axis=1).astype(jnp.bfloat16)
    bqkv = jnp.concatenate([bq * scale, bk, bv], axis=0).reshape(1, 3 * D).astype(jnp.float32)

    B, per_sample = _pick_samples_per_step(N, L)
    G = -(-N // B)
    Npad = G * B
    if Npad != N:  # padded samples have all-zero masks; their outputs are sliced away
        x = jnp.pad(x, ((0, Npad - N), (0, 0), (0, 0)))
        m = jnp.pad(m, ((0, Npad - N), (0, 0)))

    # bf16, lane-friendly input slab; small f32 mask streams; hoisted cross bias.
    x_flat = x.reshape(Npad * L, D).astype(jnp.bfloat16)
    mrow = m.reshape(Npad, L, 1)
    kbias = ((m - 1.0) * NEG_INF).reshape(Npad, 1, L)
    is_prot = jnp.arange(L) < L1p
    xbias = jnp.where(jnp.logical_xor(is_prot[:, None], is_prot[None, :]),
                      0.0, -NEG_INF).astype(jnp.float32)[None]           # (1, L, L)

    vmem_estimate = per_sample * B + (1 << 20)
    vmem_limit = int(min(56 << 20, max(16 << 20, vmem_estimate * 5 // 4 + (2 << 20))))

    out = pl.pallas_call(
        _cross_attention_kernel,
        out_shape=jax.ShapeDtypeStruct((Npad, L * D), jnp.float32),
        grid=(G,),
        in_specs=[
            pl.BlockSpec((B * L, D), lambda i: (i, 0)),
            pl.BlockSpec((B, L, 1), lambda i: (i, 0, 0)),
            pl.BlockSpec((B, 1, L), lambda i: (i, 0, 0)),
            pl.BlockSpec((1, L, L), lambda i: (0, 0, 0)),
            pl.BlockSpec((D, 3 * D), lambda i: (0, 0)),
            pl.BlockSpec((1, 3 * D), lambda i: (0, 0)),
        ],
        out_specs=pl.BlockSpec((B, L * D), lambda i: (i, 0)),
        compiler_params=pltpu.CompilerParams(
            dimension_semantics=("parallel",),
            vmem_limit_bytes=vmem_limit),
    )(x_flat, mrow, kbias, xbias, wqkv, bqkv)

    out = out.reshape(Npad, L, D)
    protein_out = out[:N, :L1, :]
    text_out = out[:N, L1p:L1p + L2, :]
    return protein_out, text_out


# torchdrug functional.variadic_to_padded / padded_to_variadic equivalents (glue).
def variadic_to_padded(x, sizes, max_len):
    n = len(sizes)
    d = x.shape[-1]
    padded = jnp.zeros((n, max_len, d), x.dtype)
    mask = jnp.zeros((n, max_len), jnp.bool_)
    off = 0
    for i, s in enumerate(sizes):
        padded = padded.at[i, :s].set(x[off:off + s])
        mask = mask.at[i, :s].set(True)
        off += s
    return padded, mask


def padded_to_variadic(padded, sizes):
    return jnp.concatenate([padded[i, :s] for i, s in enumerate(sizes)], axis=0)


# ---------------------------------------------------------------------------
# Plain-JAX reference (same math, f32) for sanity checking.
# ---------------------------------------------------------------------------
def _ref_attend(q, k, v, mrow, mcol):
    n, lq, d = q.shape
    lk = k.shape[1]
    qh = q.reshape(n, lq, NUM_HEADS, HEAD_SIZE)
    kh = k.reshape(n, lk, NUM_HEADS, HEAD_SIZE)
    vh = v.reshape(n, lk, NUM_HEADS, HEAD_SIZE)
    logits = jnp.einsum('blhd,bkhd->blkh', qh, kh,
                        precision=jax.lax.Precision.HIGHEST) / (HEAD_SIZE ** 0.5)
    mask_pair = (mrow[:, :, None] * mcol[:, None, :])[..., None] > 0.5
    logits = jnp.where(mask_pair, logits, logits - NEG_INF)
    alpha = jax.nn.softmax(logits, axis=2)
    alpha = jnp.where(mrow[:, :, None, None] > 0.5, alpha, 0.0)
    out = jnp.einsum('blkh,bkhd->blhd', alpha, vh,
                     precision=jax.lax.Precision.HIGHEST)
    return out.reshape(n, lq, d)


def reference(protein_padded, text_input, protein_mask, text_mask, params):
    wq_t, bq, wk_t, bk, wv_t, bv = params
    pm = protein_mask.astype(jnp.float32)
    tm = text_mask.astype(jnp.float32)
    lin = lambda x, w, b: jnp.einsum('bld,de->ble', x, w,
                                     precision=jax.lax.Precision.HIGHEST) + b
    q1, k1, v1 = lin(protein_padded, wq_t, bq), lin(protein_padded, wk_t, bk), lin(protein_padded, wv_t, bv)
    q2, k2, v2 = lin(text_input, wq_t, bq), lin(text_input, wk_t, bk), lin(text_input, wv_t, bv)
    out1 = jnp.maximum(_ref_attend(q1, k2, v2, pm, tm), 0.0)
    out2 = jnp.maximum(_ref_attend(q2, k1, v1, tm, pm), 0.0)
    return out1, out2


if __name__ == "__main__":
    key = jax.random.PRNGKey(0)
    keys = jax.random.split(key, 8)

    N = 2
    L2 = 8                       # number of text tokens
    D = HIDDEN_DIM
    num_residues = [12, 16]      # graph.num_residues (variadic protein lengths)
    L1 = max(num_residues)
    total_residues = sum(num_residues)

    protein_variadic = jax.random.normal(keys[0], (total_residues, D), jnp.float32)
    text_input = jax.random.normal(keys[1], (N, L2, D), jnp.float32)
    text_mask = jnp.array([[True] * L2,
                           [True] * 6 + [False] * 2], jnp.bool_)

    # Deterministic parameter init (PyTorch nn.Linear weight shape = (out, in)).
    wq = jax.random.normal(keys[2], (D, D), jnp.float32) * 0.05
    wk = jax.random.normal(keys[3], (D, D), jnp.float32) * 0.05
    wv = jax.random.normal(keys[4], (D, D), jnp.float32) * 0.05
    bq = jax.random.normal(keys[5], (D,), jnp.float32) * 0.05
    bk = jax.random.normal(keys[6], (D,), jnp.float32) * 0.05
    bv = jax.random.normal(keys[7], (D,), jnp.float32) * 0.05
    params = (wq.T, bq, wk.T, bk, wv.T, bv)   # pre-transposed for x @ W^T

    # variadic -> padded (glue), kernel, padded -> variadic (glue)
    protein_padded, protein_mask = variadic_to_padded(protein_variadic, num_residues, L1)
    p_out_pad, t_out = cross_attention_pallas(protein_padded, text_input,
                                              protein_mask, text_mask, params)
    jax.block_until_ready((p_out_pad, t_out))

    residue_feature = padded_to_variadic(p_out_pad, num_residues)   # (total_residues, D)
    word_feature = t_out                                            # (N, L2, D)

    # Sanity check against the plain-JAX f32 reference (kernel uses bf16 MXU operands).
    ref_p, ref_t = reference(protein_padded, text_input, protein_mask, text_mask, params)
    assert jnp.allclose(p_out_pad, ref_p, atol=1e-2, rtol=1e-2), "protein output mismatch"
    assert jnp.allclose(t_out, ref_t, atol=1e-2, rtol=1e-2), "text output mismatch"
    assert residue_feature.shape == (total_residues, D)
    assert word_feature.shape == (N, L2, D)

    # TODO(synk): num_layers > 1 / batch_norm=True variants would loop this kernel and
    # interleave BatchNorm1d; defaults (num_layers=1, batch_norm=False) are implemented.
    print("KERNEL_OK")
</pallas_src>

<mosaic_0001>
module attributes {stable_mosaic.version = 11 : i64} {
  func.func @_cross_attention_kernel(%arg0: i32, %arg1: memref<192x32xbf16, #tpu.memory_space<vmem>>, %arg2: memref<8x24x1xf32, #tpu.memory_space<vmem>>, %arg3: memref<8x1x24xf32, #tpu.memory_space<vmem>>, %arg4: memref<1x24x24xf32, #tpu.memory_space<vmem>>, %arg5: memref<32x96xbf16, #tpu.memory_space<vmem>>, %arg6: memref<1x96xf32, #tpu.memory_space<vmem>>, %arg7: memref<8x768xf32, #tpu.memory_space<vmem>>) attributes {dimension_semantics = [#tpu.dimension_semantics<parallel>], iteration_bounds = array<i64: 1>, scalar_prefetch = 0 : i64, scratch_operands = 0 : i64, tpu.core_type = #tpu.core_type<tc>, window_params = [{transform_indices = @transform_0, window_bounds = array<i64: 192, 32>}, {transform_indices = @transform_1, window_bounds = array<i64: 8, 24, 1>}, {transform_indices = @transform_2, window_bounds = array<i64: 8, 1, 24>}, {pipeline_mode = #tpu.pipeline_mode<synchronous>, transform_indices = @transform_3, window_bounds = array<i64: 1, 24, 24>}, {pipeline_mode = #tpu.pipeline_mode<synchronous>, transform_indices = @transform_4, window_bounds = array<i64: 32, 96>}, {pipeline_mode = #tpu.pipeline_mode<synchronous>, transform_indices = @transform_5, window_bounds = array<i64: 1, 96>}, {transform_indices = @transform_6, window_bounds = array<i64: 8, 768>}]} {
    %c0 = arith.constant 0 : index
    %c0_0 = arith.constant 0 : index
    %0 = vector.load %arg1[%c0, %c0_0] : memref<192x32xbf16, #tpu.memory_space<vmem>>, vector<192x32xbf16>
    %c0_1 = arith.constant 0 : index
    %c0_2 = arith.constant 0 : index
    %1 = vector.load %arg5[%c0_1, %c0_2] : memref<32x96xbf16, #tpu.memory_space<vmem>>, vector<32x96xbf16>
    %cst = arith.constant dense<0.000000e+00> : vector<192x96xf32>
    %2 = tpu.matmul %0, %1, %cst {dimension_numbers = #tpu.dot_dimension_numbers<[1], [0], [0], [1], [0, 0, 1, 1], [], []>} : vector<192x32xbf16>, vector<32x96xbf16>, vector<192x96xf32> -> vector<192x96xf32>
    %c0_3 = arith.constant 0 : index
    %c0_4 = arith.constant 0 : index
    %3 = vector.load %arg6[%c0_3, %c0_4] : memref<1x96xf32, #tpu.memory_space<vmem>>, vector<1x96xf32>
    %4 = vector.broadcast %3 : vector<1x96xf32> to vector<192x96xf32>
    %5 = arith.addf %2, %4 : vector<192x96xf32>
    %6 = arith.truncf %5 : vector<192x96xf32> to vector<192x96xbf16>
    %7 = vector.shape_cast %6 : vector<192x96xbf16> to vector<8x24x96xbf16>
    %c0_5 = arith.constant 0 : index
    %c0_6 = arith.constant 0 : index
    %c0_7 = arith.constant 0 : index
    %8 = vector.load %arg3[%c0_5, %c0_6, %c0_7] : memref<8x1x24xf32, #tpu.memory_space<vmem>>, vector<8x1x24xf32>
    %c0_8 = arith.constant 0 : index
    %c0_9 = arith.constant 0 : index
    %c0_10 = arith.constant 0 : index
    %9 = vector.load %arg4[%c0_8, %c0_9, %c0_10] : memref<1x24x24xf32, #tpu.memory_space<vmem>>, vector<1x24x24xf32>
    %10 = vector.broadcast %8 : vector<8x1x24xf32> to vector<8x24x24xf32>
    %11 = vector.broadcast %9 : vector<1x24x24xf32> to vector<8x24x24xf32>
    %12 = arith.addf %10, %11 : vector<8x24x24xf32>
    %13 = vector.extract_strided_slice %7 {offsets = [0, 0, 0], sizes = [8, 24, 8], strides = [1, 1, 1]} : vector<8x24x96xbf16> to vector<8x24x8xbf16>
    %14 = vector.extract_strided_slice %7 {offsets = [0, 0, 32], sizes = [8, 24, 8], strides = [1, 1, 1]} : vector<8x24x96xbf16> to vector<8x24x8xbf16>
    %15 = vector.extract_strided_slice %7 {offsets = [0, 0, 64], sizes = [8, 24, 8], strides = [1, 1, 1]} : vector<8x24x96xbf16> to vector<8x24x8xbf16>
    "tpu.trace_start"() <{level = 10 : i32, message = "bqd,bkd->bqk"}> : () -> ()
    %cst_11 = arith.constant dense<0.000000e+00> : vector<8x24x24xf32>
    %16 = tpu.matmul %13, %14, %cst_11 {dimension_numbers = #tpu.dot_dimension_numbers<[2], [2], [1], [1], [0, 0, 0, 1, 1, 1], [0], [0]>} : vector<8x24x8xbf16>, vector<8x24x8xbf16>, vector<8x24x24xf32> -> vector<8x24x24xf32>
    "tpu.trace_stop"() : () -> ()
    %17 = arith.addf %16, %12 : vector<8x24x24xf32>
    %cst_12 = arith.constant dense<0xFF800000> : vector<8x24xf32>
    %18 = vector.multi_reduction <maximumf>, %17, %cst_12 [2] : vector<8x24x24xf32> to vector<8x24xf32>
    %19 = vector.shape_cast %18 : vector<8x24xf32> to vector<8x24x1xf32>
    %20 = vector.broadcast %19 : vector<8x24x1xf32> to vector<8x24x24xf32>
    %21 = arith.subf %17, %20 : vector<8x24x24xf32>
    %22 = math.exp %21 : vector<8x24x24xf32>
    %cst_13 = arith.constant dense<0.000000e+00> : vector<8x24xf32>
    %23 = vector.multi_reduction <add>, %22, %cst_13 [2] : vector<8x24x24xf32> to vector<8x24xf32>
    %24 = vector.shape_cast %23 : vector<8x24xf32> to vector<8x24x1xf32>
    %25 = tpu.reciprocal %24 {approx = true} : vector<8x24x1xf32> -> vector<8x24x1xf32>
    %26 = vector.broadcast %25 : vector<8x24x1xf32> to vector<8x24x24xf32>
    %27 = arith.mulf %22, %26 : vector<8x24x24xf32>
    %28 = arith.truncf %27 : vector<8x24x24xf32> to vector<8x24x24xbf16>
    "tpu.trace_start"() <{level = 10 : i32, message = "bqk,bkd->bqd"}> : () -> ()
    %cst_14 = arith.constant dense<0.000000e+00> : vector<8x24x8xf32>
    %29 = tpu.matmul %28, %15, %cst_14 {dimension_numbers = #tpu.dot_dimension_numbers<[2], [1], [1], [2], [0, 0, 0, 1, 1, 2], [0], [0]>} : vector<8x24x24xbf16>, vector<8x24x8xbf16>, vector<8x24x8xf32> -> vector<8x24x8xf32>
    "tpu.trace_stop"() : () -> ()
    %30 = vector.extract_strided_slice %7 {offsets = [0, 0, 8], sizes = [8, 24, 8], strides = [1, 1, 1]} : vector<8x24x96xbf16> to vector<8x24x8xbf16>
    %31 = vector.extract_strided_slice %7 {offsets = [0, 0, 40], sizes = [8, 24, 8], strides = [1, 1, 1]} : vector<8x24x96xbf16> to vector<8x24x8xbf16>
    %32 = vector.extract_strided_slice %7 {offsets = [0, 0, 72], sizes = [8, 24, 8], strides = [1, 1, 1]} : vector<8x24x96xbf16> to vector<8x24x8xbf16>
    "tpu.trace_start"() <{level = 10 : i32, message = "bqd,bkd->bqk"}> : () -> ()
    %cst_15 = arith.constant dense<0.000000e+00> : vector<8x24x24xf32>
    %33 = tpu.matmul %30, %31, %cst_15 {dimension_numbers = #tpu.dot_dimension_numbers<[2], [2], [1], [1], [0, 0, 0, 1, 1, 1], [0], [0]>} : vector<8x24x8xbf16>, vector<8x24x8xbf16>, vector<8x24x24xf32> -> vector<8x24x24xf32>
    "tpu.trace_stop"() : () -> ()
    %34 = arith.addf %33, %12 : vector<8x24x24xf32>
    %cst_16 = arith.constant dense<0xFF800000> : vector<8x24xf32>
    %35 = vector.multi_reduction <maximumf>, %34, %cst_16 [2] : vector<8x24x24xf32> to vector<8x24xf32>
    %36 = vector.shape_cast %35 : vector<8x24xf32> to vector<8x24x1xf32>
    %37 = vector.broadcast %36 : vector<8x24x1xf32> to vector<8x24x24xf32>
    %38 = arith.subf %34, %37 : vector<8x24x24xf32>
    %39 = math.exp %38 : vector<8x24x24xf32>
    %cst_17 = arith.constant dense<0.000000e+00> : vector<8x24xf32>
    %40 = vector.multi_reduction <add>, %39, %cst_17 [2] : vector<8x24x24xf32> to vector<8x24xf32>
    %41 = vector.shape_cast %40 : vector<8x24xf32> to vector<8x24x1xf32>
    %42 = tpu.reciprocal %41 {approx = true} : vector<8x24x1xf32> -> vector<8x24x1xf32>
    %43 = vector.broadcast %42 : vector<8x24x1xf32> to vector<8x24x24xf32>
    %44 = arith.mulf %39, %43 : vector<8x24x24xf32>
    %45 = arith.truncf %44 : vector<8x24x24xf32> to vector<8x24x24xbf16>
    "tpu.trace_start"() <{level = 10 : i32, message = "bqk,bkd->bqd"}> : () -> ()
    %cst_18 = arith.constant dense<0.000000e+00> : vector<8x24x8xf32>
    %46 = tpu.matmul %45, %32, %cst_18 {dimension_numbers = #tpu.dot_dimension_numbers<[2], [1], [1], [2], [0, 0, 0, 1, 1, 2], [0], [0]>} : vector<8x24x24xbf16>, vector<8x24x8xbf16>, vector<8x24x8xf32> -> vector<8x24x8xf32>
    "tpu.trace_stop"() : () -> ()
    %47 = vector.extract_strided_slice %7 {offsets = [0, 0, 16], sizes = [8, 24, 8], strides = [1, 1, 1]} : vector<8x24x96xbf16> to vector<8x24x8xbf16>
    %48 = vector.extract_strided_slice %7 {offsets = [0, 0, 48], sizes = [8, 24, 8], strides = [1, 1, 1]} : vector<8x24x96xbf16> to vector<8x24x8xbf16>
    %49 = vector.extract_strided_slice %7 {offsets = [0, 0, 80], sizes = [8, 24, 8], strides = [1, 1, 1]} : vector<8x24x96xbf16> to vector<8x24x8xbf16>
    "tpu.trace_start"() <{level = 10 : i32, message = "bqd,bkd->bqk"}> : () -> ()
    %cst_19 = arith.constant dense<0.000000e+00> : vector<8x24x24xf32>
    %50 = tpu.matmul %47, %48, %cst_19 {dimension_numbers = #tpu.dot_dimension_numbers<[2], [2], [1], [1], [0, 0, 0, 1, 1, 1], [0], [0]>} : vector<8x24x8xbf16>, vector<8x24x8xbf16>, vector<8x24x24xf32> -> vector<8x24x24xf32>
    "tpu.trace_stop"() : () -> ()
    %51 = arith.addf %50, %12 : vector<8x24x24xf32>
    %cst_20 = arith.constant dense<0xFF800000> : vector<8x24xf32>
    %52 = vector.multi_reduction <maximumf>, %51, %cst_20 [2] : vector<8x24x24xf32> to vector<8x24xf32>
    %53 = vector.shape_cast %52 : vector<8x24xf32> to vector<8x24x1xf32>
    %54 = vector.broadcast %53 : vector<8x24x1xf32> to vector<8x24x24xf32>
    %55 = arith.subf %51, %54 : vector<8x24x24xf32>
    %56 = math.exp %55 : vector<8x24x24xf32>
    %cst_21 = arith.constant dense<0.000000e+00> : vector<8x24xf32>
    %57 = vector.multi_reduction <add>, %56, %cst_21 [2] : vector<8x24x24xf32> to vector<8x24xf32>
    %58 = vector.shape_cast %57 : vector<8x24xf32> to vector<8x24x1xf32>
    %59 = tpu.reciprocal %58 {approx = true} : vector<8x24x1xf32> -> vector<8x24x1xf32>
    %60 = vector.broadcast %59 : vector<8x24x1xf32> to vector<8x24x24xf32>
    %61 = arith.mulf %56, %60 : vector<8x24x24xf32>
    %62 = arith.truncf %61 : vector<8x24x24xf32> to vector<8x24x24xbf16>
    "tpu.trace_start"() <{level = 10 : i32, message = "bqk,bkd->bqd"}> : () -> ()
    %cst_22 = arith.constant dense<0.000000e+00> : vector<8x24x8xf32>
    %63 = tpu.matmul %62, %49, %cst_22 {dimension_numbers = #tpu.dot_dimension_numbers<[2], [1], [1], [2], [0, 0, 0, 1, 1, 2], [0], [0]>} : vector<8x24x24xbf16>, vector<8x24x8xbf16>, vector<8x24x8xf32> -> vector<8x24x8xf32>
    "tpu.trace_stop"() : () -> ()
    %64 = vector.extract_strided_slice %7 {offsets = [0, 0, 24], sizes = [8, 24, 8], strides = [1, 1, 1]} : vector<8x24x96xbf16> to vector<8x24x8xbf16>
    %65 = vector.extract_strided_slice %7 {offsets = [0, 0, 56], sizes = [8, 24, 8], strides = [1, 1, 1]} : vector<8x24x96xbf16> to vector<8x24x8xbf16>
    %66 = vector.extract_strided_slice %7 {offsets = [0, 0, 88], sizes = [8, 24, 8], strides = [1, 1, 1]} : vector<8x24x96xbf16> to vector<8x24x8xbf16>
    "tpu.trace_start"() <{level = 10 : i32, message = "bqd,bkd->bqk"}> : () -> ()
    %cst_23 = arith.constant dense<0.000000e+00> : vector<8x24x24xf32>
    %67 = tpu.matmul %64, %65, %cst_23 {dimension_numbers = #tpu.dot_dimension_numbers<[2], [2], [1], [1], [0, 0, 0, 1, 1, 1], [0], [0]>} : vector<8x24x8xbf16>, vector<8x24x8xbf16>, vector<8x24x24xf32> -> vector<8x24x24xf32>
    "tpu.trace_stop"() : () -> ()
    %68 = arith.addf %67, %12 : vector<8x24x24xf32>
    %cst_24 = arith.constant dense<0xFF800000> : vector<8x24xf32>
    %69 = vector.multi_reduction <maximumf>, %68, %cst_24 [2] : vector<8x24x24xf32> to vector<8x24xf32>
    %70 = vector.shape_cast %69 : vector<8x24xf32> to vector<8x24x1xf32>
    %71 = vector.broadcast %70 : vector<8x24x1xf32> to vector<8x24x24xf32>
    %72 = arith.subf %68, %71 : vector<8x24x24xf32>
    %73 = math.exp %72 : vector<8x24x24xf32>
    %cst_25 = arith.constant dense<0.000000e+00> : vector<8x24xf32>
    %74 = vector.multi_reduction <add>, %73, %cst_25 [2] : vector<8x24x24xf32> to vector<8x24xf32>
    %75 = vector.shape_cast %74 : vector<8x24xf32> to vector<8x24x1xf32>
    %76 = tpu.reciprocal %75 {approx = true} : vector<8x24x1xf32> -> vector<8x24x1xf32>
    %77 = vector.broadcast %76 : vector<8x24x1xf32> to vector<8x24x24xf32>
    %78 = arith.mulf %73, %77 : vector<8x24x24xf32>
    %79 = arith.truncf %78 : vector<8x24x24xf32> to vector<8x24x24xbf16>
    "tpu.trace_start"() <{level = 10 : i32, message = "bqk,bkd->bqd"}> : () -> ()
    %cst_26 = arith.constant dense<0.000000e+00> : vector<8x24x8xf32>
    %80 = tpu.matmul %79, %66, %cst_26 {dimension_numbers = #tpu.dot_dimension_numbers<[2], [1], [1], [2], [0, 0, 0, 1, 1, 2], [0], [0]>} : vector<8x24x24xbf16>, vector<8x24x8xbf16>, vector<8x24x8xf32> -> vector<8x24x8xf32>
    "tpu.trace_stop"() : () -> ()
    %81 = tpu.concatenate %29, %46, %63, %80 in 2 : vector<8x24x8xf32>, vector<8x24x8xf32>, vector<8x24x8xf32>, vector<8x24x8xf32> -> vector<8x24x32xf32>
    %c0_27 = arith.constant 0 : index
    %c0_28 = arith.constant 0 : index
    %c0_29 = arith.constant 0 : index
    %82 = vector.load %arg2[%c0_27, %c0_28, %c0_29] : memref<8x24x1xf32, #tpu.memory_space<vmem>>, vector<8x24x1xf32>
    %83 = vector.broadcast %82 : vector<8x24x1xf32> to vector<8x24x32xf32>
    %84 = arith.mulf %81, %83 : vector<8x24x32xf32>
    %cst_30 = arith.constant 0.000000e+00 : f32
    %85 = vector.broadcast %cst_30 : f32 to vector<8x24x32xf32>
    %86 = arith.maximumf %84, %85 : vector<8x24x32xf32>
    %87 = vector.shape_cast %86 : vector<8x24x32xf32> to vector<8x768xf32>
    %c0_31 = arith.constant 0 : index
    %c0_32 = arith.constant 0 : index
    %88 = vector.load %arg7[%c0_31, %c0_32] : memref<8x768xf32, #tpu.memory_space<vmem>>, vector<8x768xf32>
    tpu.vector_store %arg7[%c0_31, %c0_32], %87 {strides = array<i32>} : memref<8x768xf32, #tpu.memory_space<vmem>>, vector<8x768xf32>,
    return
  }
  func.func @transform_0(%arg0: i32) -> (i32, i32) {
    %c0_i32 = arith.constant 0 : i32
    %c0_i32_0 = arith.constant 0 : i32
    return %arg0, %c0_i32 : i32, i32
  }
  func.func @transform_1(%arg0: i32) -> (i32, i32, i32) {
    %c0_i32 = arith.constant 0 : i32
    %c0_i32_0 = arith.constant 0 : i32
    %c0_i32_1 = arith.constant 0 : i32
    return %arg0, %c0_i32, %c0_i32_0 : i32, i32, i32
  }
  func.func @transform_2(%arg0: i32) -> (i32, i32, i32) {
    %c0_i32 = arith.constant 0 : i32
    %c0_i32_0 = arith.constant 0 : i32
    %c0_i32_1 = arith.constant 0 : i32
    return %arg0, %c0_i32, %c0_i32_0 : i32, i32, i32
  }
  func.func @transform_3(%arg0: i32) -> (i32, i32, i32) {
    %c0_i32 = arith.constant 0 : i32
    %c0_i32_0 = arith.constant 0 : i32
    %c0_i32_1 = arith.constant 0 : i32
    %c0_i32_2 = arith.constant 0 : i32
    return %c0_i32, %c0_i32_0, %c0_i32_1 : i32, i32, i32
  }
  func.func @transform_4(%arg0: i32) -> (i32, i32) {
    %c0_i32 = arith.constant 0 : i32
    %c0_i32_0 = arith.constant 0 : i32
    %c0_i32_1 = arith.constant 0 : i32
    return %c0_i32, %c0_i32_0 : i32, i32
  }
  func.func @transform_5(%arg0: i32) -> (i32, i32) {
    %c0_i32 = arith.constant 0 : i32
    %c0_i32_0 = arith.constant 0 : i32
    %c0_i32_1 = arith.constant 0 : i32
    return %c0_i32, %c0_i32_0 : i32, i32
  }
  func.func @transform_6(%arg0: i32) -> (i32, i32) {
    %c0_i32 = arith.constant 0 : i32
    %c0_i32_0 = arith.constant 0 : i32
    return %arg0, %c0_i32 : i32, i32
  }
}

</mosaic_0001>

<bundles_post_ra>
// kernel: tpu_custom_call.1
= control target key start
LH: loop header
LB: loop body
LE: loop exit
PB: predicated region body
PF: predicated region fallthrough
CT: control target
= control target key end

     0   :  { %s9033_s0 = inlined_call_operand.vmem [shape: bf16[192,32], index: 0, kind: input, shape index: {}]   ;;  %s9034_s1 = inlined_call_operand.vmem [shape: f32[8,24,1], index: 1, kind: input, shape index: {}]   ;;  %s9035_s2 = inlined_call_operand.vmem [shape: f32[8,1,24], index: 2, kind: input, shape index: {}]   ;;  %s9036_s3 = inlined_call_operand.vmem [shape: f32[1,24,24], index: 3, kind: input, shape index: {}]   ;;  %s9037_s4 = inlined_call_operand.vmem [shape: bf16[32,96], index: 4, kind: input, shape index: {}]   ;;  %s9038_s5 = inlined_call_operand.vmem [shape: f32[1,96], index: 5, kind: input, shape index: {}]   ;;  %s9039_s6 = inlined_call_operand.hbm [shape: f32[8,768], index: 6, kind: output, shape index: {}]  }
   0x1   :  { %v5214_v0 = vld [vmem:[%s9037_s4 + $0x8] sm:$0xff]  ;;  %v5213_v1 = vld [vmem:[%s9037_s4] sm:$0xff] }
   0x2   :  { %172 = vmatpush.bf16.msra.mxu0 %v5214_v0 }
   0x3   :  { %11 = vsyncpa [#allocation3], 0  ;;  %v5201_v2 = vld [vmem:[%s9033_s0] sm:$0xff]  ;;  %vm129_vm0 = vcmask 261120   ;;  %v5202_v3 = vld [vmem:[%s9033_s0 + $0x8] sm:$0xff]  ;;  %s5661_s22 = smov 120  }
   0x4   :  { %v5203_v4 = vld [vmem:[%s9033_s0 + $0x10] sm:$0xff]  ;;  %v5204_v5 = vld [vmem:[%s9033_s0 + $0x18] sm:$0xff]  ;;  %v5205_v6 = vld [vmem:[%s9033_s0 + $0x20] sm:$0xff]  ;;  %s5662_s23 = smov 96   ;;  %s5663_s24 = smov 56   ;;  %vm330_vm1 = vcmask 64512  }
   0x5   :  { %v5206_v7 = vld [vmem:[%s9033_s0 + $0x28] sm:$0xff]  ;;  %v5207_v8 = vld [vmem:[%s9033_s0 + $0x30] sm:$0xff]  ;;  %v5208_v9 = vld [vmem:[%s9033_s0 + $0x38] sm:$0xff]  ;;  %s5664_s25 = smov 64   ;;  %s5665_s28 = smov 80   ;;  %vm963_vm2 = vcmask 1043456  }
   0x6   :  { %173 = vmatpush.bf16.msra.mxu0 %v5213_v1  ;;  %v5209_v10 = vld [vmem:[%s9033_s0 + $0x40] sm:$0xff]  ;;  %v5210_v21 = vld [vmem:[%s9033_s0 + $0x48] sm:$0xff]  ;;  %v5211_v30 = vld [vmem:[%s9033_s0 + $0x50] sm:$0xff]  ;;  %s5666_s29 = smov 112   ;;  %vm655_vm3 = vcmask 195584   ;;  %s5670_s30 = smov 40  }
   0x7   :  { %v5758_v12 = vld [vmem:[%s9038_s5] ss:$0 sm:$0xff]  ;;  %s5660_s5 = smov 88   ;;  %v5212_v42 = vld [vmem:[%s9033_s0 + $0x58] sm:$0xff]  ;;  %s5671_s4 = smov 8   ;;  %vm4313_vm4 = vcmask 130048  }
   0x8   :  { %s5672_s0 = smov 16   ;;  %s5674_s15 = smov 24   ;;  %vm4555_vm5 = vcmask 1047556   ;;  %vm4964_vm6 = vcmask 523264   ;;  %vm4966_vm7 = vcmask 785408  }
   0x9   :  { %5061 = vmatmul.msk.bf16.vlgmr.msra.gmra.mxu0 %vm129_vm0, %v5201_v2 }
  0x19   :  { %5062 = vmatmul.msk.bf16.gmra.mxu0 %vm129_vm0, %v5202_v3 }
  0x29   :  { %5063 = vmatmul.msk.bf16.gmra.mxu0 %vm129_vm0, %v5203_v4 }
  0x39   :  { %5064 = vmatmul.msk.bf16.gmra.mxu0 %vm129_vm0, %v5204_v5 }
  0x49   :  { %5065 = vmatmul.msk.bf16.gmra.mxu0 %vm129_vm0, %v5205_v6 }
  0x59   :  { %5066 = vmatmul.msk.bf16.gmra.mxu0 %vm129_vm0, %v5206_v7 }
  0x69   :  { %5067 = vmatmul.msk.bf16.gmra.mxu0 %vm129_vm0, %v5207_v8 }
  0x79   :  { %5068 = vmatmul.msk.bf16.gmra.mxu0 %vm129_vm0, %v5208_v9 }
  0x86   :  { %v175_v11 = vpop.f32.mrf.mxu0 }
  0x87   :  { %v176_v13 = vadd.f32 %v5758_v12, %v175_v11 }
  0x89   :  { %5069 = vmatmul.msk.bf16.gmra.mxu0 %vm129_vm0, %v5209_v10  ;;  %v235_v15 = vpack.c.bf16 %v176_v13, %v176_v13 }
  0x8b   :  { %v321_v18 = vunpack.c.l.b16 %v235_v15 }
  0x8e   :  { %v177_v14 = vpop.f32.mrf.mxu0 }
  0x8f   :  { %v178_v16 = vadd.f32 %v5758_v12, %v177_v14 }
  0x91   :  { %v236_v17 = vpack.c.bf16 %v178_v16, %v178_v16 }
  0x93   :  { %v322_v19 = vunpack.c.l.b16 %v236_v17 }
  0x95   :  { %v5763_v20 = vpack.c.b16 %v322_v19, %v321_v18 }
  0x96   :  { %v180_v22 = vpop.f32.mrf.mxu0 }
  0x97   :  { %9112 = vst [vmem:[#allocation5_spill] sm:$0xff] %v5763_v20  ;;  %v181_v23 = vadd.f32 %v5758_v12, %v180_v22  ;;  %1269 = vrot.lane.b32.xlu2 %v5763_v20, %s5660_s5  ;;  %1265 = vrot.lane.b32.xlu1 %v5763_v20, %s5661_s22 }
  0x98   :  { %326 = vrot.lane.b32.xlu0 %v5763_v20, %s5662_s23 }
  0x99   :  { %v237_v24 = vpack.c.bf16 %v181_v23, %v181_v23  ;;  %5070 = vmatmul.msk.bf16.gmra.mxu0 %vm129_vm0, %v5210_v21 }
  0x9b   :  { %v323_v25 = vunpack.c.l.b16 %v237_v24 }
  0x9d   :  { %v5776_v26 = vpack.c.b16 %v323_v25, %v323_v25 }
  0x9e   :  { %v182_v27 = vpop.f32.mrf.mxu0 }
  0x9f   :  { %1865 = vrot.lane.b32.xlu2 %v5763_v20, %s5663_s24  ;;  %954 = vrot.lane.b32.xlu1 %v5776_v26, %s5664_s25  ;;  %v183_v28 = vadd.f32 %v5758_v12, %v182_v27 }
  0xa0   :  { %952 = vrot.lane.b32.xlu0 %v5763_v20, %s5664_s25 }
  0xa1   :  { %v238_v29 = vpack.c.bf16 %v183_v28, %v183_v28 }
  0xa3   :  { %v364_v33 = vunpack.c.l.b16 %v238_v29 }
  0xa6   :  { %v185_v31 = vpop.f32.mrf.mxu0 }
  0xa7   :  { %v186_v32 = vadd.f32 %v5758_v12, %v185_v31  ;;  %2181 = vrot.lane.b32.xlu2 %v5763_v20, %s5665_s28  ;;  %1271 = vrot.lane.b32.xlu1 %v5776_v26, %s5660_s5 }
  0xa8   :  { %2177 = vrot.lane.b32.xlu0 %v5763_v20, %s5666_s29 }
  0xa9   :  { %v239_v34 = vpack.c.bf16 %v186_v32, %v186_v32  ;;  %5071 = vmatmul.msk.bf16.gmra.mxu0 %vm129_vm0, %v5211_v30 }
  0xab   :  { %v365_v35 = vunpack.c.l.b16 %v239_v34 }
  0xad   :  { %v5796_v36 = vpack.c.b16 %v365_v35, %v364_v33 }
  0xae   :  { %v187_v37 = vpop.f32.mrf.mxu0 }
  0xaf   :  { %9113 = vst [vmem:[#allocation6_spill] sm:$0xff] %v5796_v36  ;;  %v188_v38 = vadd.f32 %v5758_v12, %v187_v37  ;;  %993 = vrot.lane.b32.xlu2 %v5796_v36, %s5664_s25  ;;  %1867 = vrot.lane.b32.xlu1 %v5776_v26, %s5663_s24 }
  0xb0   :  { %328 = vrot.lane.b32.xlu0 %v5776_v26, %s5662_s23 }
  0xb1   :  { %v240_v39 = vpack.c.bf16 %v188_v38, %v188_v38 }
  0xb3   :  { %v366_v40 = vunpack.c.l.b16 %v240_v39 }
  0xb5   :  { %v5805_v41 = vpack.c.b16 %v366_v40, %v366_v40 }
  0xb6   :  { %v190_v43 = vpop.f32.mrf.mxu0 }
  0xb7   :  { %1305 = vrot.lane.b32.xlu2 %v5805_v41, %s5661_s22  ;;  %2179 = vrot.lane.b32.xlu1 %v5776_v26, %s5666_s29  ;;  %v191_v45 = vadd.f32 %v5758_v12, %v190_v43 }
  0xb8   :  { %1267 = vrot.lane.b32.xlu0 %v5776_v26, %s5661_s22 }
  0xb9   :  { %5072 = vmatmul.msk.bf16.gmra.mxu0 %vm129_vm0, %v5212_v42  ;;  %v241_v47 = vpack.c.bf16 %v191_v45, %v191_v45 }
  0xbb   :  { %v406_v50 = vunpack.c.l.b16 %v241_v47 }
  0xbe   :  { %v192_v44 = vpop.f32.mrf.mxu0 }
  0xbf   :  { %v193_v46 = vadd.f32 %v5758_v12, %v192_v44  ;;  %1907 = vrot.lane.b32.xlu2 %v5805_v41, %s5663_s24  ;;  %369 = vrot.lane.b32.xlu1 %v5796_v36, %s5662_s23 }
  0xc0   :  { %2183 = vrot.lane.b32.xlu0 %v5776_v26, %s5665_s28 }
  0xc1   :  { %v242_v48 = vpack.c.bf16 %v193_v46, %v193_v46 }
  0xc3   :  { %v407_v51 = vunpack.c.l.b16 %v242_v48 }
  0xc5   :  { %v5831_v52 = vpack.c.b16 %v407_v51, %v406_v50 }
  0xc6   :  { %v195_v49 = vpop.f32.mrf.mxu0 }
  0xc7   :  { %2217 = vrot.lane.b32.xlu2 %v5805_v41, %s5666_s29  ;;  %1307 = vrot.lane.b32.xlu1 %v5796_v36, %s5660_s5  ;;  %9114 = vst [vmem:[#allocation7_spill] sm:$0xff] %v5831_v52  ;;  %v196_v54 = vadd.f32 %v5758_v12, %v195_v49 }
  0xc8   :  { %1303 = vrot.lane.b32.xlu0 %v5796_v36, %s5661_s22 }
  0xc9   :  { %v243_v55 = vpack.c.bf16 %v196_v54, %v196_v54 }
  0xcb   :  { %v408_v57 = vunpack.c.l.b16 %v243_v55 }
  0xcd   :  { %v5846_v58 = vpack.c.b16 %v408_v57, %v408_v57 }
  0xce   :  { %v197_v53 = vpop.f32.mrf.mxu0 }
  0xcf   :  { %411 = vrot.lane.b32.xlu2 %v5831_v52, %s5662_s23  ;;  %2215 = vrot.lane.b32.xlu1 %v5796_v36, %s5666_s29  ;;  %9115 = vst [vmem:[#allocation8_spill] sm:$0xff] %v5846_v58  ;;  %v198_v60 = vadd.f32 %v5758_v12, %v197_v53 }
  0xd0   :  { %1905 = vrot.lane.b32.xlu0 %v5796_v36, %s5663_s24 }
  0xd1   :  { %v244_v62 = vpack.c.bf16 %v198_v60, %v198_v60 }
  0xd3   :  { %v448_v1 = vunpack.c.l.b16 %v244_v62 }
  0xd6   :  { %v200_v56 = vpop.f32.mrf.mxu0 }
  0xd7   :  { %1341 = vrot.lane.b32.xlu2 %v5831_v52, %s5661_s22  ;;  %371 = vrot.lane.b32.xlu1 %v5805_v41, %s5662_s23  ;;  %v201_v61 = vadd.f32 %v5758_v12, %v200_v56 }
  0xd8   :  { %995 = vrot.lane.b32.xlu0 %v5805_v41, %s5664_s25 }
  0xd9   :  { %v245_v63 = vpack.c.bf16 %v201_v61, %v201_v61 }
  0xdb   :  { %v449_v2 = vunpack.c.l.b16 %v245_v63 }
  0xdd   :  { %v5862_v3 = vpack.c.b16 %v449_v2, %v448_v1 }
  0xde   :  { %v202_v59 = vpop.f32.mrf.mxu0 }
  0xdf   :  { %413 = vrot.lane.b32.xlu2 %v5846_v58, %s5662_s23  ;;  %1033 = vrot.lane.b32.xlu1 %v5831_v52, %s5664_s25  ;;  %9116 = vst [vmem:[#allocation9_spill] sm:$0xff] %v5862_v3  ;;  %v203_v5 = vadd.f32 %v5758_v12, %v202_v59 }
  0xe0   :  { %1309 = vrot.lane.b32.xlu0 %v5805_v41, %s5660_s5 }
  0xe1   :  { %v246_v7 = vpack.c.bf16 %v203_v5, %v203_v5 }
  0xe3   :  { %v450_v9 = vunpack.c.l.b16 %v246_v7 }
  0xe5   :  { %v5883_v14 = vpack.c.b16 %v450_v9, %v450_v9 }
  0xe6   :  { %v205_v0 = vpop.f32.mrf.mxu0 }
  0xe7   :  { %1347 = vrot.lane.b32.xlu2 %v5846_v58, %s5660_s5  ;;  %1343 = vrot.lane.b32.xlu1 %v5846_v58, %s5661_s22  ;;  %v206_v10 = vadd.f32 %v5758_v12, %v205_v0  ;;  %9118 = vst [vmem:[#allocation11_spill] sm:$0xff] %v5883_v14 }
  0xe8   :  { %1345 = vrot.lane.b32.xlu0 %v5831_v52, %s5660_s5 }
  0xe9   :  { %v247_v15 = vpack.c.bf16 %v206_v10, %v206_v10 }
  0xeb   :  { %v490_v18 = vunpack.c.l.b16 %v247_v15 }
  0xee   :  { %v207_v4 = vpop.f32.mrf.mxu0 }
  0xef   :  { %1073 = vrot.lane.b32.xlu2 %v5862_v3, %s5664_s25  ;;  %1947 = vrot.lane.b32.xlu1 %v5846_v58, %s5663_s24  ;;  %v208_v11 = vadd.f32 %v5758_v12, %v207_v4 }
  0xf0   :  { %1945 = vrot.lane.b32.xlu0 %v5831_v52, %s5663_s24 }
  0xf1   :  { %v5871_v6 = vpop.permute.xlu2 %1269  ;;  %v248_v16 = vpack.c.bf16 %v208_v11, %v208_v11 }
  0xf3   :  { %v491_v19 = vunpack.c.l.b16 %v248_v16 }
  0xf5   :  { %v5894_v23 = vpack.c.b16 %v491_v19, %v490_v18 }
  0xf6   :  { %v210_v8 = vpop.f32.mrf.mxu0 }
  0xf7   :  { %1383 = vrot.lane.b32.xlu2 %v5862_v3, %s5660_s5  ;;  %1379 = vrot.lane.b32.xlu1 %v5862_v3, %s5661_s22  ;;  %v211_v21 = vadd.f32 %v5758_v12, %v210_v8  ;;  %9120 = vst [vmem:[#allocation13_spill] sm:$0xff] %v5894_v23 }
  0xf8   :  { %1035 = vrot.lane.b32.xlu0 %v5846_v58, %s5664_s25 }
  0xf9   :  { %v5881_v13 = vpop.permute.xlu2 %1865  ;;  %v249_v24 = vpack.c.bf16 %v211_v21, %v211_v21 }
  0xfa   :  { %9117 = vst [vmem:[#allocation10_spill] sm:$0xff] %v5881_v13 }
  0xfb   :  { %v492_v25 = vunpack.c.l.b16 %v249_v24 }
  0xfd   :  { %v5906_v31 = vpack.c.b16 %v492_v25, %v492_v25 }
  0xfe   :  { %v212_v17 = vpop.f32.mrf.mxu0 }
  0xff   :  { %1985 = vrot.lane.b32.xlu2 %v5862_v3, %s5663_s24  ;;  %455 = vrot.lane.b32.xlu1 %v5883_v14, %s5662_s23  ;;  %9122 = vst [vmem:[#allocation15_spill] sm:$0xff] %v5906_v31  ;;  %v213_v37 = vadd.f32 %v5758_v12, %v212_v17 }
 0x100   :  { %453 = vrot.lane.b32.xlu0 %v5862_v3, %s5662_s23 }
 0x101   :  { %v5892_v22 = vpop.permute.xlu2 %2181  ;;  %v250_v43 = vpack.c.bf16 %v213_v37, %v213_v37 }
 0x102   :  { %9119 = vst [vmem:[#allocation12_spill] sm:$0xff] %v5892_v22 }
 0x103   :  { %v532_v46 = vunpack.c.l.b16 %v250_v43 }
 0x106   :  { %v215_v27 = vpop.f32.mrf.mxu0 }
 0x107   :  { %495 = vrot.lane.b32.xlu2 %v5894_v23, %s5662_s23  ;;  %1075 = vrot.lane.b32.xlu1 %v5883_v14, %s5664_s25  ;;  %v216_v38 = vadd.f32 %v5758_v12, %v215_v27 }
 0x108   :  { %1381 = vrot.lane.b32.xlu0 %v5883_v14, %s5661_s22 }
 0x109   :  { %v5902_v28 = vpop.permute.xlu2 %993  ;;  %v5904_v29 = vpop.permute.xlu1 %1265  ;;  %v251_v44 = vpack.c.bf16 %v216_v38, %v216_v38 }
 0x10a   :  { %9121 = vst [vmem:[#allocation14_spill] sm:$0xff] %v5904_v29  ;;  %v327_v30 = vpop.permute.xlu0 %326 }
 0x10b   :  { %v533_v47 = vunpack.c.l.b16 %v251_v44  ;;  %v338_v63 = vsel %vm330_vm1, %v327_v30, 0 }
 0x10d   :  { %v5945_v53 = vpack.c.b16 %v533_v47, %v532_v46 }
 0x10e   :  { %v217_v35 = vpop.f32.mrf.mxu0 }
 0x10f   :  { %1115 = vrot.lane.b32.xlu2 %v5906_v31, %s5664_s25  ;;  %1385 = vrot.lane.b32.xlu1 %v5883_v14, %s5660_s5  ;;  %v218_v48 = vadd.f32 %v5758_v12, %v217_v35 }
 0x110   :  { %1987 = vrot.lane.b32.xlu0 %v5883_v14, %s5663_s24 }
 0x111   :  { %v5914_v32 = vpop.permute.xlu2 %1305  ;;  %v5916_v33 = vpop.permute.xlu1 %954  ;;  %v252_v55 = vpack.c.bf16 %v218_v48, %v218_v48 }
 0x112   :  { %9123 = vst [vmem:[#allocation16_spill] sm:$0xff] %v5914_v32  ;;  %v5918_v34 = vpop.permute.xlu0 %952 }
 0x113   :  { %v534_v57 = vunpack.c.l.b16 %v252_v55 }
 0x115   :  { %v5958_v62 = vpack.c.b16 %v534_v57, %v534_v57 }
 0x116   :  { %v220_v45 = vpop.f32.mrf.mxu0 }
 0x117   :  { %1419 = vrot.lane.b32.xlu2 %v5906_v31, %s5661_s22  ;;  %1421 = vrot.lane.b32.xlu1 %v5894_v23, %s5660_s5  ;;  %v221_v0 = vadd.f32 %v5758_v12, %v220_v45 }
 0x118   :  { %1113 = vrot.lane.b32.xlu0 %v5894_v23, %s5664_s25 }
 0x119   :  { %v5928_v39 = vpop.permute.xlu2 %1907  ;;  %v5930_v40 = vpop.permute.xlu1 %1271  ;;  %v253_v8 = vpack.c.bf16 %v221_v0, %v221_v0 }
 0x11a   :  { %9124 = vst [vmem:[#allocation17_spill] sm:$0xff] %v5928_v39  ;;  %v5932_v42 = vpop.permute.xlu0 %2177 }
 0x11b   :  { %9125 = vst [vmem:[#allocation18_spill] sm:$0xff] %v5932_v42  ;;  %v574_v10 = vunpack.c.l.b16 %v253_v8 }
 0x11e   :  { %v222_v56 = vpop.f32.mrf.mxu0 }
 0x11f   :  { %2027 = vrot.lane.b32.xlu2 %v5906_v31, %s5663_s24  ;;  %2025 = vrot.lane.b32.xlu1 %v5894_v23, %s5663_s24  ;;  %v223_v1 = vadd.f32 %v5758_v12, %v222_v56 }
 0x120   :  { %1417 = vrot.lane.b32.xlu0 %v5894_v23, %s5661_s22 }
 0x121   :  { %v5941_v49 = vpop.permute.xlu2 %2217  ;;  %v5943_v50 = vpop.permute.xlu1 %1867  ;;  %v254_v9 = vpack.c.bf16 %v223_v1, %v223_v1 }
 0x122   :  { %9126 = vst [vmem:[#allocation19_spill] sm:$0xff] %v5941_v49  ;;  %v329_v51 = vpop.permute.xlu0 %328 }
 0x123   :  { %9127 = vst [vmem:[#allocation20_spill] sm:$0xff] %v5943_v50  ;;  %v341_v54 = vsel %vm330_vm1, %v329_v51, 0  ;;  %v575_v11 = vunpack.c.l.b16 %v254_v9 }
 0x124   :  { %349 = vmatpush.bf16.xpose.msra.mxu1 %v341_v54  ;;  %5215 = vmatpush.bf16.xpose.msra.mxu2 %v341_v54 }
 0x125   :  { %v5988_v21 = vpack.c.b16 %v575_v11, %v574_v10 }
 0x126   :  { %v225_v2 = vpop.f32.mrf.mxu0 }
 0x127   :  { %1455 = vrot.lane.b32.xlu2 %v5945_v53, %s5661_s22  ;;  %537 = vrot.lane.b32.xlu1 %v5945_v53, %s5662_s23  ;;  %v226_v24 = vadd.f32 %v5758_v12, %v225_v2 }
 0x128   :  { %497 = vrot.lane.b32.xlu0 %v5906_v31, %s5662_s23 }
 0x129   :  { %v412_v59 = vpop.permute.xlu2 %411  ;;  %v5954_v60 = vpop.permute.xlu1 %2179  ;;  %v255_v38 = vpack.c.bf16 %v226_v24, %v226_v24 }
 0x12a   :  { %9128 = vst [vmem:[#allocation21_spill] sm:$0xff] %v5954_v60  ;;  %v5956_v61 = vpop.permute.xlu0 %1267  ;;  %v422_v35 = vsel %vm330_vm1, %v412_v59, 0 }
 0x12b   :  { %9129 = vst [vmem:[#allocation22_spill] sm:$0xff] %v5956_v61  ;;  %v576_v44 = vunpack.c.l.b16 %v255_v38 }
 0x12c   :  { %350 = vmatpush.bf16.xpose.msra.mxu1 %v338_v63  ;;  %5216 = vmatpush.bf16.xpose.msra.mxu2 %v338_v63 }
 0x12d   :  { %v6021_v55 = vpack.c.b16 %v576_v44, %v576_v44 }
 0x12e   :  { %v227_v19 = vpop.f32.mrf.mxu0 }
 0x12f   :  { %539 = vrot.lane.b32.xlu2 %v5958_v62, %s5662_s23  ;;  %1153 = vrot.lane.b32.xlu1 %v5945_v53, %s5664_s25  ;;  %v228_v45 = vadd.f32 %v5758_v12, %v227_v19 }
 0x130   :  { %1423 = vrot.lane.b32.xlu0 %v5906_v31, %s5660_s5 }
 0x131   :  { %v5969_v4 = vpop.permute.xlu2 %1341  ;;  %v370_v5 = vpop.permute.xlu1 %369  ;;  %v256_v56 = vpack.c.bf16 %v228_v45, %v228_v45 }
 0x132   :  { %v5971_v7 = vpop.permute.xlu0 %2183  ;;  %v380_v8 = vsel %vm330_vm1, %v370_v5, 0 }
 0x133   :  { %9130 = vst [vmem:[#allocation23_spill] sm:$0xff] %v5971_v7  ;;  %5073 = vmatmul.msk.bf16.vlgmr.msra.gmra.mxu1 %vm330_vm1, %v5763_v20  ;;  %5074 = vmatmul.msk.bf16.vlgmr.msra.gmra.mxu2 %vm330_vm1, %v5776_v26  ;;  %v616_v59 = vunpack.c.l.b16 %v256_v56 }
 0x136   :  { %v230_v43 = vpop.f32.mrf.mxu0 }
 0x137   :  { %1461 = vrot.lane.b32.xlu2 %v5958_v62, %s5660_s5  ;;  %1457 = vrot.lane.b32.xlu1 %v5958_v62, %s5661_s22  ;;  %v231_v46 = vadd.f32 %v5758_v12, %v230_v43 }
 0x138   :  { %1459 = vrot.lane.b32.xlu0 %v5945_v53, %s5660_s5 }
 0x139   :  { %v414_v15 = vpop.permute.xlu2 %413  ;;  %v5983_v16 = vpop.permute.xlu1 %1307  ;;  %v257_v57 = vpack.c.bf16 %v231_v46, %v231_v46 }
 0x13a   :  { %v5985_v17 = vpop.permute.xlu0 %1303  ;;  %v425_v18 = vsel %vm330_vm1, %v414_v15, 0 }
 0x13b   :  { %9131 = vst [vmem:[#allocation24_spill] sm:$0xff] %v5985_v17  ;;  %433 = vmatpush.bf16.xpose.msra.mxu3 %v425_v18  ;;  %v617_v63 = vunpack.c.l.b16 %v257_v57 }
 0x13d   :  { %v6036_v9 = vpack.c.b16 %v617_v63, %v616_v59 }
 0x13f   :  { %1193 = vrot.lane.b32.xlu2 %v5988_v21, %s5664_s25  ;;  %2067 = vrot.lane.b32.xlu1 %v5958_v62, %s5663_s24 }
 0x140   :  { %2065 = vrot.lane.b32.xlu0 %v5945_v53, %s5663_s24 }
 0x141   :  { %v1348_v25 = vpop.permute.xlu2 %1347  ;;  %v5997_v27 = vpop.permute.xlu1 %2215 }
 0x142   :  { %9132 = vst [vmem:[#allocation25_spill] sm:$0xff] %v5997_v27  ;;  %v5999_v30 = vpop.permute.xlu0 %1905  ;;  %v6003_v37 = vsel %vm330_vm1, %v1348_v25, 0  ;;  %v232_v25 = vpop.f32.mrf.mxu0  ;;  %v965_v27 = vsel %vm963_vm2, %v5916_v33, 0 }
 0x143   :  { %9133 = vst [vmem:[#allocation26_spill] sm:$0xff] %v5999_v30  ;;  %434 = vmatpush.bf16.xpose.msra.mxu3 %v422_v35  ;;  %1367 = vmatpush.bf16.xpose.msrb.mxu0 %v6003_v37 }
 0x144   :  { %9134 = vst [vmem:[#allocation27_spill] sm:$0xff] %v6003_v37 }
 0x147   :  { %1497 = vrot.lane.b32.xlu2 %v5988_v21, %s5660_s5  ;;  %1493 = vrot.lane.b32.xlu1 %v5988_v21, %s5661_s22 }
 0x148   :  { %1155 = vrot.lane.b32.xlu0 %v5958_v62, %s5664_s25 }
 0x149   :  { %v6014_v47 = vpop.permute.xlu2 %1073  ;;  %v372_v48 = vpop.permute.xlu1 %371 }
 0x14a   :  { %v6016_v51 = vpop.permute.xlu0 %995  ;;  %5077 = vmatmul.msk.bf16.vlgmr.msra.gmra.mxu3 %vm330_vm1, %v5831_v52  ;;  %v383_v54 = vsel %vm330_vm1, %v372_v48, 0 }
 0x14b   :  { %391 = vmatpush.bf16.xpose.msrb.mxu2 %v383_v54 }
 0x14f   :  { %2105 = vrot.lane.b32.xlu2 %v5988_v21, %s5663_s24  ;;  %581 = vrot.lane.b32.xlu1 %v6021_v55, %s5662_s23 }
 0x150   :  { %579 = vrot.lane.b32.xlu0 %v5988_v21, %s5662_s23 }
 0x151   :  { %v6029_v0 = vpop.permute.xlu2 %1383  ;;  %v6031_v1 = vpop.permute.xlu1 %1033 }
 0x152   :  { %v6033_v2 = vpop.permute.xlu0 %1309 }
 0x153   :  { %392 = vmatpush.bf16.xpose.msrb.mxu2 %v380_v8 }
 0x157   :  { %621 = vrot.lane.b32.xlu2 %v6036_v9, %s5662_s23  ;;  %1195 = vrot.lane.b32.xlu1 %v6021_v55, %s5664_s25 }
 0x158   :  { %1495 = vrot.lane.b32.xlu0 %v6021_v55, %s5661_s22 }
 0x159   :  { %v6044_v10 = vpop.permute.xlu2 %1985  ;;  %v6046_v11 = vpop.permute.xlu1 %1343 }
 0x15a   :  { %9135 = vst [vmem:[#allocation28_spill] sm:$0xff] %v6044_v10  ;;  %v1346_v15 = vpop.permute.xlu0 %1345  ;;  %5075 = vmatmul.msk.bf16.vlgmr.msrb.gmra.mxu2 %vm330_vm1, %v5796_v36  ;;  %5078 = vmatmul.msk.bf16.gmra.mxu3 %vm330_vm1, %v5846_v58 }
 0x15b   :  { %9136 = vst [vmem:[#allocation29_spill] sm:$0xff] %v6046_v11  ;;  %v6053_v5 = vsel %vm330_vm1, %v1346_v15, 0 }
 0x15c   :  { %9137 = vst [vmem:[#allocation30_spill] sm:$0xff] %v6053_v5  ;;  %1368 = vmatpush.bf16.xpose.msrb.mxu0 %v6053_v5 }
 0x15f   :  { %2253 = vrot.lane.b32.xlu2 %v5831_v52, %s5666_s29  ;;  %1499 = vrot.lane.b32.xlu1 %v6021_v55, %s5660_s5 }
 0x160   :  { %2107 = vrot.lane.b32.xlu0 %v6021_v55, %s5663_s24 }
 0x161   :  { %v6062_v18 = vpop.permute.xlu2 %495  ;;  %v6064_v19 = vpop.permute.xlu1 %1947 }
 0x162   :  { %v6066_v24 = vpop.permute.xlu0 %1945  ;;  %v506_v33 = vsel %vm330_vm1, %v6062_v18, 0  ;;  %v6189_v18 = vld [vmem:[%s9036_s3 + $0x8] sm:$0xff] }
 0x163   :  { %5109 = vmatmul.msk.bf16.vlgmr.msrb.gmra.mxu0 %vm330_vm1, %v5969_v4  ;;  %v233_v4 = vadd.f32 %v5758_v12, %v232_v25 }
 0x165   :  { %v258_v44 = vpack.c.bf16 %v233_v4, %v233_v4 }
 0x167   :  { %2259 = vrot.lane.b32.xlu2 %v5846_v58, %s5665_s28  ;;  %1535 = vrot.lane.b32.xlu1 %v6036_v9, %s5660_s5  ;;  %v618_v48 = vunpack.c.l.b16 %v258_v44 }
 0x168   :  { %1233 = vrot.lane.b32.xlu0 %v6036_v9, %s5664_s25 }
 0x169   :  { %v6076_v35 = vpop.permute.xlu2 %1115  ;;  %v6078_v38 = vpop.permute.xlu1 %1379  ;;  %v6094_v57 = vpack.c.b16 %v618_v48, %v618_v48 }
 0x16a   :  { %9138 = vst [vmem:[#allocation31_spill] sm:$0xff] %v6078_v38  ;;  %v6080_v43 = vpop.permute.xlu0 %1035  ;;  %5076 = vmatmul.msk.bf16.gmra.mxu2 %vm330_vm1, %v5805_v41 }
 0x16f   :  { %2295 = vrot.lane.b32.xlu2 %v5862_v3, %s5665_s28  ;;  %2145 = vrot.lane.b32.xlu1 %v6036_v9, %s5663_s24 }
 0x170   :  { %1531 = vrot.lane.b32.xlu0 %v6036_v9, %s5661_s22 }
 0x171   :  { %v6091_v45 = vpop.permute.xlu2 %1419  ;;  %v456_v46 = vpop.permute.xlu1 %455 }
 0x172   :  { %9139 = vst [vmem:[#allocation32_spill] sm:$0xff] %v6091_v45  ;;  %v454_v54 = vpop.permute.xlu0 %453  ;;  %v467_v56 = vsel %vm330_vm1, %v456_v46, 0  ;;  %v5244_v45 = vld [vmem:[%s9035_s2 + $0x1] ss:$0 sm:$0xff] }
 0x173   :  { %475 = vmatpush.bf16.xpose.msrb.mxu1 %v467_v56  ;;  %v464_v8 = vsel %vm330_vm1, %v454_v54, 0 }
 0x177   :  { %2331 = vrot.lane.b32.xlu2 %v5906_v31, %s5666_s29  ;;  %2221 = vrot.lane.b32.xlu1 %v5805_v41, %s5665_s28 }
 0x178   :  { %623 = vrot.lane.b32.xlu0 %v6094_v57, %s5662_s23 }
 0x179   :  { %v6102_v12 = vpop.permute.xlu2 %2027  ;;  %v1076_v59 = vpop.permute.xlu1 %1075 }
 0x17a   :  { %9140 = vst [vmem:[#allocation33_spill] sm:$0xff] %v6102_v12  ;;  %v6104_v63 = vpop.permute.xlu0 %1381  ;;  %v1085_v22 = vsel %vm963_vm2, %v1076_v59, 0 }
 0x17b   :  { %9141 = vst [vmem:[#allocation34_spill] sm:$0xff] %v6104_v63  ;;  %476 = vmatpush.bf16.xpose.msrb.mxu1 %v464_v8 }
 0x17f   :  { %2367 = vrot.lane.b32.xlu2 %v5945_v53, %s5666_s29  ;;  %2257 = vrot.lane.b32.xlu1 %v5831_v52, %s5665_s28 }
 0x180   :  { %2219 = vrot.lane.b32.xlu0 %v5796_v36, %s5665_s28 }
 0x181   :  { %v6113_v15 = vpop.permute.xlu2 %1455  ;;  %v6115_v25 = vpop.permute.xlu1 %1385 }
 0x182   :  { %9142 = vst [vmem:[#allocation35_spill] sm:$0xff] %v6113_v15  ;;  %v6117_v4 = vpop.permute.xlu0 %1987  ;;  %5079 = vmatmul.msk.bf16.vlgmr.msrb.gmra.mxu1 %vm330_vm1, %v5862_v3 }
 0x183   :  { %9143 = vst [vmem:[#allocation36_spill] sm:$0xff] %v6117_v4 }
 0x187   :  { %1235 = vrot.lane.b32.xlu2 %v6094_v57, %s5664_s25  ;;  %2293 = vrot.lane.b32.xlu1 %v5883_v14, %s5666_s29 }
 0x188   :  { %2255 = vrot.lane.b32.xlu0 %v5846_v58, %s5666_s29 }
 0x189   :  { %v540_v44 = vpop.permute.xlu2 %539  ;;  %v6127_v46 = vpop.permute.xlu1 %1421 }
 0x18a   :  { %9144 = vst [vmem:[#allocation37_spill] sm:$0xff] %v6127_v46  ;;  %v6129_v48 = vpop.permute.xlu0 %1113  ;;  %v551_v54 = vsel %vm330_vm1, %v540_v44, 0 }
 0x18b   :  { %559 = vmatpush.bf16.xpose.msrb.mxu3 %v551_v54 }
 0x18f   :  { %1533 = vrot.lane.b32.xlu2 %v6094_v57, %s5661_s22  ;;  %2329 = vrot.lane.b32.xlu1 %v5894_v23, %s5666_s29 }
 0x190   :  { %2291 = vrot.lane.b32.xlu0 %v5862_v3, %s5666_s29 }
 0x191   :  { %v6138_v56 = vpop.permute.xlu1 %2025 }
 0x192   :  { %9145 = vst [vmem:[#allocation38_spill] sm:$0xff] %v6138_v56  ;;  %v6140_v8 = vpop.permute.xlu0 %1417  ;;  %5080 = vmatmul.msk.bf16.gmra.mxu1 %vm330_vm1, %v5883_v14 }
 0x193   :  { %9146 = vst [vmem:[#allocation39_spill] sm:$0xff] %v6140_v8 }
 0x197   :  { %2147 = vrot.lane.b32.xlu2 %v6094_v57, %s5663_s24  ;;  %2335 = vrot.lane.b32.xlu1 %v5906_v31, %s5665_s28 }
 0x198   :  { %2297 = vrot.lane.b32.xlu0 %v5883_v14, %s5665_s28 }
 0x199   :  { %v538_v44 = vpop.permute.xlu1 %537 }
 0x19a   :  { %v498_v54 = vpop.permute.xlu0 %497  ;;  %v548_v49 = vsel %vm330_vm1, %v538_v44, 0  ;;  %v6194_v44 = vld [vmem:[%s9036_s3] sm:$0xff] }
 0x19b   :  { %v509_v60 = vsel %vm330_vm1, %v498_v54, 0  ;;  %560 = vmatpush.bf16.xpose.msrb.mxu3 %v548_v49 }
 0x19c   :  { %517 = vmatpush.bf16.xpose.msra.mxu2 %v509_v60 }
 0x1a0   :  { %2333 = vrot.lane.b32.xlu0 %v5894_v23, %s5665_s28 }
 0x1a1   :  { %v6157_v42 = vpop.permute.xlu1 %1153 }
 0x1a2   :  { %v6160_v7 = vpop.permute.xlu0 %1423  ;;  %5083 = vmatmul.msk.bf16.vlgmr.msrb.gmra.mxu3 %vm330_vm1, %v5945_v53 }
 0x1a3   :  { %973 = vmatpush.bf16.msra.mxu3 %v965_v27 }
 0x1a4   :  { %518 = vmatpush.bf16.xpose.msra.mxu2 %v506_v33 }
 0x1a7   :  { %974 = vmatpush.bf16.msra.mxu3 %v5918_v34 }
 0x1a8   :  { %1537 = vrot.lane.b32.xlu0 %v6094_v57, %s5660_s5 }
 0x1a9   :  { %v6169_v34 = vpop.permute.xlu1 %1457 }
 0x1aa   :  { %9147 = vst [vmem:[#allocation40_spill] sm:$0xff] %v6169_v34  ;;  %v6171_v49 = vpop.permute.xlu0 %1459 }
 0x1ab   :  { %1093 = vmatpush.bf16.msrb.mxu3 %v1085_v22  ;;  %9148 = vst [vmem:[#allocation41_spill] sm:$0xff] %v6171_v49  ;;  %5081 = vmatmul.msk.bf16.vlgmr.msra.gmra.mxu2 %vm330_vm1, %v5894_v23  ;;  %v6181_v22 = vpop.permute.xlu2 %1461 }
 0x1ac   :  { %9151 = vst [vmem:[#allocation44_spill] sm:$0xff] %v6181_v22 }
 0x1af   :  { %1094 = vmatpush.bf16.msrb.mxu3 %v6014_v47  ;;  %v5242_v47 = vld [vmem:[%s9035_s2] ss:$0 sm:$0xff] }
 0x1b0   :  { %v352_v60 = vpop.f32.mrf.mxu1  ;;  %v6197_v33 = vadd.f32 %v5242_v47, %v6189_v18  ;;  %v6200_v63 = vadd.f32 %v5242_v47, %v6194_v44 }
 0x1b1   :  { %v6175_v27 = vpop.permute.xlu1 %2067 }
 0x1b2   :  { %9149 = vst [vmem:[#allocation42_spill] sm:$0xff] %v6175_v27  ;;  %v6177_v59 = vpop.permute.xlu0 %2065  ;;  %5084 = vmatmul.msk.bf16.gmra.mxu3 %vm330_vm1, %v5958_v62 }
 0x1b3   :  { %9150 = vst [vmem:[#allocation43_spill] sm:$0xff] %v6177_v59  ;;  %v6212_v59 = vadd.f32 %v352_v60, %v6200_v63  ;;  %v6214_v15 = vpop.permute.xlu2 %1193  ;;  %v6224_v60 = vld [vmem:[%s9036_s3 + $0x10] sm:$0xff] }
 0x1b4   :  { %9152 = vst [vmem:[#allocation45_spill] sm:$0xff] %v6197_v33 }
 0x1b5   :  { %9153 = vst [vmem:[#allocation46_spill] sm:$0xff] %v6200_v63  ;;  %v656_v11 = vsel %vm655_vm3, %v6212_v59, -inf }
 0x1b6   :  { %v357_v54 = vpop.f32.mrf.mxu2 }
 0x1b8   :  { %v354_v10 = vpop.f32.mrf.mxu1 }
 0x1b9   :  { %v6202_v38 = vpop.permute.xlu1 %1493  ;;  %v6207_v34 = vadd.f32 %v354_v10, %v6197_v33 }
 0x1ba   :  { %v6204_v4 = vpop.permute.xlu0 %1155 }
 0x1bb   :  { %5082 = vmatmul.msk.bf16.gmra.mxu2 %vm330_vm1, %v5906_v31  ;;  %v659_v30 = vsel %vm655_vm3, %v6207_v34, -inf  ;;  %v1498_v63 = vpop.permute.xlu2 %1497 }
 0x1be   :  { %v359_v27 = vpop.f32.mrf.mxu2 }
 0x1bf   :  { %v6227_v27 = vadd.f32 %v5242_v47, %v6224_v60 }
 0x1c0   :  { %660 = vmax.xlane.f32.xlu2 %v659_v30 }
 0x1c1   :  { %v582_v39 = vpop.permute.xlu1 %581  ;;  %657 = vmax.xlane.f32.xlu1 %v656_v11  ;;  %9154 = vst [vmem:[#allocation47_spill] sm:$0xff] %v6227_v27  ;;  %v6237_v11 = vadd.f32 %v357_v54, %v6227_v27 }
 0x1c2   :  { %v593_v10 = vsel %vm330_vm1, %v582_v39, 0  ;;  %v580_v33 = vpop.permute.xlu0 %579  ;;  %v1005_v39 = vsel %vm963_vm2, %v6016_v51, 0 }
 0x1c3   :  { %601 = vmatpush.bf16.xpose.msra.mxu1 %v593_v10  ;;  %v590_v49 = vsel %vm330_vm1, %v580_v33, 0  ;;  %v6242_v10 = vld [vmem:[%s9035_s2 + $0x2] ss:$0 sm:$0xff]  ;;  %v662_v51 = vsel %vm655_vm3, %v6237_v11, -inf  ;;  %v2106_v54 = vpop.permute.xlu2 %2105 }
 0x1c4   :  { %v6247_v17 = vadd.f32 %v6242_v10, %v6194_v44 }
 0x1c6   :  { %9155 = vst [vmem:[#allocation48_spill] sm:$0xff] %v6247_v17 }
 0x1c9   :  { %v6229_v32 = vpop.permute.xlu1 %1195 }
 0x1ca   :  { %v6231_v30 = vpop.permute.xlu0 %1495 }
 0x1cb   :  { %602 = vmatpush.bf16.xpose.msra.mxu1 %v590_v49  ;;  %v1125_v49 = vsel %vm963_vm2, %v6076_v35, 0 }
 0x1cd   :  { %v436_v47 = vpop.f32.mrf.mxu3 }
 0x1d1   :  { %v1500_v33 = vpop.permute.xlu1 %1499 }
 0x1d2   :  { %663 = vmax.xlane.f32.xlu0 %v662_v51  ;;  %v2108_v27 = vpop.permute.xlu0 %2107  ;;  %5085 = vmatmul.msk.bf16.vlgmr.msra.gmra.mxu1 %vm330_vm1, %v5988_v21  ;;  %v1508_v51 = vsel %vm330_vm1, %v1498_v63, 0 }
 0x1d3   :  { %1013 = vmatpush.bf16.msrb.mxu1 %v1005_v39  ;;  %v1511_v39 = vsel %vm330_vm1, %v1500_v33, 0 }
 0x1d4   :  { %1519 = vmatpush.bf16.xpose.msra.mxu0 %v1511_v39  ;;  %v622_v39 = vpop.permute.xlu2 %621 }
 0x1d5   :  { %v438_v22 = vpop.f32.mrf.mxu3 }
 0x1d7   :  { %1014 = vmatpush.bf16.msrb.mxu1 %v5902_v28  ;;  %v6257_v28 = vadd.f32 %v436_v47, %v6247_v17  ;;  %v1957_v47 = vsel %vm963_vm2, %v6064_v19, 0 }
 0x1d9   :  { %v674_v35 = vsel %vm655_vm3, %v6257_v28, -inf }
 0x1da   :  { %675 = vmax.xlane.f32.xlu0 %v674_v35  ;;  %v6265_v33 = vpop.permute.xlu0 %1233  ;;  %v2117_v35 = vsel %vm963_vm2, %v2108_v27, 0 }
 0x1db   :  { %1133 = vmatpush.bf16.msra.mxu1 %v1125_v49  ;;  %v6269_v49 = vadd.f32 %v5244_v45, %v6194_v44 }
 0x1dc   :  { %1520 = vmatpush.bf16.xpose.msra.mxu0 %v1508_v51 }
 0x1dd   :  { %9156 = vst [vmem:[#allocation49_spill] sm:$0xff] %v6269_v49  ;;  %v394_v14 = vpop.f32.mrf.mxu2  ;;  %v441_v56 = vpop.f32.mrf.mxu3 }
 0x1df   :  { %1134 = vmatpush.bf16.msra.mxu1 %v6129_v48  ;;  %v6274_v48 = vadd.f32 %v394_v14, %v6269_v49  ;;  %v6287_v14 = vadd.f32 %v5244_v45, %v6189_v18 }
 0x1e0   :  { %v1370_v5 = vpop.f32.mrf.mxu0 }
 0x1e1   :  { %v665_v63 = vsel %vm655_vm3, %v6274_v48, -inf  ;;  %9158 = vst [vmem:[#allocation51_spill] sm:$0xff] %v6287_v14 }
 0x1e2   :  { %666 = vmax.xlane.f32.xlu2 %v665_v63  ;;  %v6280_v8 = vpop.permute.xlu0 %1531  ;;  %5086 = vmatmul.msk.bf16.gmra.mxu1 %vm330_vm1, %v6021_v55 }
 0x1e3   :  { %9157 = vst [vmem:[#allocation50_spill] sm:$0xff] %v6280_v8  ;;  %5117 = vmatmul.msk.bf16.vlgmr.msra.gmra.mxu0 %vm330_vm1, %v6202_v38  ;;  %v6298_v38 = vadd.f32 %v6242_v10, %v6189_v18 }
 0x1e4   :  { %1965 = vmatpush.bf16.msrb.mxu0 %v1957_v47  ;;  %v6292_v47 = vpop.permute.xlu2 %2253 }
 0x1e5   :  { %v396_v19 = vpop.f32.mrf.mxu2  ;;  %9159 = vst [vmem:[#allocation52_spill] sm:$0xff] %v6292_v47 }
 0x1e6   :  { %v6290_v51 = vadd.f32 %v396_v19, %v6287_v14  ;;  %9160 = vst [vmem:[#allocation53_spill] sm:$0xff] %v6298_v38  ;;  %v6310_v14 = vpop.permute.xlu1 %1535 }
 0x1e7   :  { %9162 = vst [vmem:[#allocation55_spill] sm:$0xff] %v6310_v14 }
 0x1e8   :  { %1966 = vmatpush.bf16.msrb.mxu0 %v6066_v24  ;;  %v443_v24 = vpop.f32.mrf.mxu3  ;;  %v668_v27 = vsel %vm655_vm3, %v6290_v51, -inf  ;;  %v1372_v63 = vpop.f32.mrf.mxu0 }
 0x1e9   :  { %669 = vmax.xlane.f32.xlu1 %v668_v27  ;;  %v6305_v19 = vadd.f32 %v1372_v63, %v6298_v38  ;;  %v1045_v63 = vsel %vm963_vm2, %v6080_v43, 0 }
 0x1ea   :  { %v624_v49 = vpop.permute.xlu0 %623 }
 0x1eb   :  { %v635_v24 = vsel %vm330_vm1, %v624_v49, 0  ;;  %v1590_v8 = vsel %vm655_vm3, %v6305_v19, -inf  ;;  %v632_v49 = vsel %vm330_vm1, %v622_v39, 0  ;;  %v6336_v39 = vadd.f32 %v6242_v10, %v6224_v60 }
 0x1ec   :  { %2125 = vmatpush.bf16.msra.mxu0 %v2117_v35  ;;  %v6301_v35 = vadd.f32 %v5244_v45, %v6224_v60  ;;  %643 = vmatpush.bf16.xpose.msrb.mxu2 %v635_v24  ;;  %v6316_v45 = vpop.permute.xlu2 %2259  ;;  %v6324_v24 = vadd.f32 %v438_v22, %v6298_v38  ;;  %v1165_v22 = vsel %vm963_vm2, %v6204_v4, 0 }
 0x1ed   :  { %9163 = vst [vmem:[#allocation56_spill] sm:$0xff] %v6336_v39 }
 0x1ee   :  { %9161 = vst [vmem:[#allocation54_spill] sm:$0xff] %v6301_v35  ;;  %v6341_v43 = vpop.permute.xlu1 %2145 }
 0x1ef   :  { %9164 = vst [vmem:[#allocation57_spill] sm:$0xff] %v6341_v43 }
 0x1f0   :  { %2126 = vmatpush.bf16.msra.mxu0 %v2106_v54  ;;  %v399_v54 = vpop.f32.mrf.mxu2 }
 0x1f1   :  { %v6308_v47 = vadd.f32 %v399_v54, %v6301_v35  ;;  %1591 = vmax.xlane.f32.xlu1 %v1590_v8  ;;  %v6327_v54 = vadd.f32 %v1370_v5, %v6247_v17  ;;  %v677_v8 = vsel %vm655_vm3, %v6324_v24, -inf }
 0x1f2   :  { %v6375_v38 = vpop.permute.xlu0 %2219 }
 0x1f3   :  { %v671_v27 = vsel %vm655_vm3, %v6308_v47, -inf  ;;  %5118 = vmatmul.msk.bf16.gmra.mxu0 %vm330_vm1, %v6231_v30  ;;  %v5245_v30 = vld [vmem:[%s9035_s2 + $0x3] ss:$0 sm:$0xff]  ;;  %v1587_v5 = vsel %vm655_vm3, %v6327_v54, -inf  ;;  %9170 = vst [vmem:[#allocation63_spill] sm:$0xff] %v6375_v38 }
 0x1f4   :  { %672 = vmax.xlane.f32.xlu2 %v671_v27  ;;  %644 = vmatpush.bf16.xpose.msrb.mxu2 %v632_v49  ;;  %v6350_v10 = vadd.f32 %v5245_v30, %v6194_v44 }
 0x1f6   :  { %9166 = vst [vmem:[#allocation59_spill] sm:$0xff] %v6350_v10 }
 0x1f8   :  { %v401_v35 = vpop.f32.mrf.mxu2 }
 0x1f9   :  { %678 = vmax.xlane.f32.xlu1 %v677_v8  ;;  %v6345_v35 = vpop.permute.xlu2 %2295  ;;  %v6363_v8 = vpop.permute.xlu1 %2221 }
 0x1fa   :  { %9165 = vst [vmem:[#allocation58_spill] sm:$0xff] %v6345_v35  ;;  %v6391_v38 = vpop.permute.xlu0 %2255 }
 0x1fb   :  { %5087 = vmatmul.msk.bf16.vlgmr.msrb.gmra.mxu2 %vm330_vm1, %v6036_v9  ;;  %9167 = vst [vmem:[#allocation60_spill] sm:$0xff] %v6363_v8 }
 0x1fc   :  { %1053 = vmatpush.bf16.msra.mxu2 %v1045_v63  ;;  %1588 = vmax.xlane.f32.xlu2 %v1587_v5  ;;  %v6366_v5 = vadd.f32 %v5245_v30, %v6189_v18  ;;  %9173 = vst [vmem:[#allocation66_spill] sm:$0xff] %v6391_v38 }
 0x1fe   :  { %9168 = vst [vmem:[#allocation61_spill] sm:$0xff] %v6366_v5 }
 0x1ff   :  { %v478_v27 = vpop.f32.mrf.mxu1 }
 0x200   :  { %1054 = vmatpush.bf16.msra.mxu2 %v6031_v1  ;;  %v6353_v1 = vadd.f32 %v441_v56, %v6336_v39  ;;  %v6356_v49 = vadd.f32 %v478_v27, %v6350_v10 }
 0x201   :  { %v6368_v56 = vpop.permute.xlu2 %2331 }
 0x202   :  { %v680_v4 = vsel %vm655_vm3, %v6353_v1, -inf  ;;  %v683_v63 = vsel %vm655_vm3, %v6356_v49, -inf  ;;  %9169 = vst [vmem:[#allocation62_spill] sm:$0xff] %v6368_v56 }
 0x203   :  { %684 = vmax.xlane.f32.xlu0 %v683_v63  ;;  %v6382_v63 = vpop.permute.xlu1 %2257 }
 0x204   :  { %1173 = vmatpush.bf16.msrb.mxu2 %v1165_v22  ;;  %681 = vmax.xlane.f32.xlu2 %v680_v4  ;;  %v6380_v4 = vadd.f32 %v5245_v30, %v6224_v60  ;;  %v6397_v30 = vpop.permute.xlu0 %2291 }
 0x205   :  { %9175 = vst [vmem:[#allocation68_spill] sm:$0xff] %v6397_v30 }
 0x206   :  { %9171 = vst [vmem:[#allocation64_spill] sm:$0xff] %v6380_v4 }
 0x207   :  { %v480_v22 = vpop.f32.mrf.mxu1 }
 0x208   :  { %1174 = vmatpush.bf16.msrb.mxu2 %v6157_v42  ;;  %v6371_v27 = vadd.f32 %v480_v22, %v6366_v5 }
 0x209   :  { %v6384_v17 = vpop.permute.xlu2 %2367 }
 0x20a   :  { %v686_v42 = vsel %vm655_vm3, %v6371_v27, -inf  ;;  %9172 = vst [vmem:[#allocation65_spill] sm:$0xff] %v6384_v17 }
 0x20b   :  { %5088 = vmatmul.msk.bf16.gmra.mxu2 %vm330_vm1, %v6094_v57  ;;  %687 = vmax.xlane.f32.xlu1 %v686_v42  ;;  %v6393_v5 = vpop.permute.xlu1 %2293 }
 0x20c   :  { %9174 = vst [vmem:[#allocation67_spill] sm:$0xff] %v6393_v5  ;;  %v5246_v5 = vld [vmem:[%s9035_s2 + $0x5] ss:$0 sm:$0xff] }
 0x20d   :  { %v6422_v43 = vadd.f32 %v5246_v5, %v6194_v44 }
 0x20f   :  { %v483_v56 = vpop.f32.mrf.mxu1  ;;  %9182 = vst [vmem:[#allocation75_spill] sm:$0xff] %v6422_v43 }
 0x210   :  { %v6387_v22 = vadd.f32 %v483_v56, %v6380_v4  ;;  %v5247_v56 = vld [vmem:[%s9035_s2 + $0x4] ss:$0 sm:$0xff]  ;;  %v6406_v4 = vpop.permute.xlu0 %2297 }
 0x211   :  { %v6395_v42 = vpop.permute.xlu2 %1235  ;;  %9178 = vst [vmem:[#allocation71_spill] sm:$0xff] %v6406_v4 }
 0x212   :  { %v689_v35 = vsel %vm655_vm3, %v6387_v22, -inf }
 0x213   :  { %690 = vmax.xlane.f32.xlu2 %v689_v35  ;;  %v6399_v10 = vpop.permute.xlu1 %2329  ;;  %v6409_v35 = vadd.f32 %v5247_v56, %v6194_v44 }
 0x214   :  { %9176 = vst [vmem:[#allocation69_spill] sm:$0xff] %v6399_v10 }
 0x215   :  { %9179 = vst [vmem:[#allocation72_spill] sm:$0xff] %v6409_v35 }
 0x217   :  { %v485_v8 = vpop.f32.mrf.mxu1 }
 0x218   :  { %v6426_v14 = vpop.permute.xlu0 %2333 }
 0x219   :  { %v6401_v17 = vpop.permute.xlu2 %1533  ;;  %9183 = vst [vmem:[#allocation76_spill] sm:$0xff] %v6426_v14  ;;  %v6440_v14 = vadd.f32 %v5246_v5, %v6189_v18 }
 0x21a   :  { %9177 = vst [vmem:[#allocation70_spill] sm:$0xff] %v6401_v17 }
 0x21b   :  { %v6411_v8 = vpop.permute.xlu1 %2335  ;;  %9185 = vst [vmem:[#allocation78_spill] sm:$0xff] %v6440_v14 }
 0x21c   :  { %9180 = vst [vmem:[#allocation73_spill] sm:$0xff] %v6411_v8  ;;  %v6429_v8 = vadd.f32 %v5247_v56, %v6189_v18 }
 0x21e   :  { %9184 = vst [vmem:[#allocation77_spill] sm:$0xff] %v6429_v8 }
 0x221   :  { %v6416_v30 = vpop.permute.xlu2 %2147 }
 0x222   :  { %9181 = vst [vmem:[#allocation74_spill] sm:$0xff] %v6416_v30 }
 0x225   :  { %v562_v39 = vpop.f32.mrf.mxu3 }
 0x226   :  { %v6432_v30 = vadd.f32 %v562_v39, %v6422_v43 }
 0x228   :  { %v701_v39 = vsel %vm655_vm3, %v6432_v30, -inf }
 0x22d   :  { %v564_v38 = vpop.f32.mrf.mxu3 }
 0x22e   :  { %v520_v10 = vpop.f32.mrf.mxu2 }
 0x22f   :  { %v6419_v17 = vadd.f32 %v520_v10, %v6409_v35 }
 0x231   :  { %v692_v4 = vsel %vm655_vm3, %v6419_v17, -inf }
 0x232   :  { %693 = vmax.xlane.f32.xlu0 %v692_v4 }
 0x233   :  { %v661_v23 = vpop.xlane.xlu2 %660 }
 0x234   :  { %v658_v12 = vpop.xlane.xlu1 %657  ;;  %v729_v4 = vsub.f32 %v6207_v34, %v661_v23  ;;  %v6452_v23 = vpop.permute.xlu0 %1537 }
 0x235   :  { %v728_v10 = vsub.f32 %v6212_v59, %v658_v12  ;;  %v567_v35 = vpop.f32.mrf.mxu3  ;;  %v6447_v12 = vadd.f32 %v5247_v56, %v6224_v60  ;;  %9187 = vst [vmem:[#allocation80_spill] sm:$0xff] %v6452_v23 }
 0x236   :  { %v522_v37 = vpop.f32.mrf.mxu2  ;;  %v754_v59 = vmul.f32 1.442695, %v729_v4 }
 0x237   :  { %v752_v52 = vmul.f32 1.442695, %v728_v10  ;;  %v6436_v58 = vadd.f32 %v522_v37, %v6429_v8  ;;  %9186 = vst [vmem:[#allocation79_spill] sm:$0xff] %v6447_v12  ;;  %v6450_v37 = vadd.f32 %v564_v38, %v6440_v14 }
 0x239   :  { %5250 = vpow2.f32 %v752_v52  ;;  %v695_v61 = vsel %vm655_vm3, %v6436_v58, -inf  ;;  %v704_v38 = vsel %vm655_vm3, %v6450_v37, -inf }
 0x23a   :  { %696 = vmax.xlane.f32.xlu1 %v695_v61  ;;  %702 = vmax.xlane.f32.xlu0 %v701_v39  ;;  %5252 = vpow2.f32 %v754_v59  ;;  %v5248_v59 = vld [vmem:[%s9035_s2 + $0x6] ss:$0 sm:$0xff] }
 0x23d   :  { %v569_v34 = vpop.f32.mrf.mxu3 }
 0x23e   :  { %v525_v10 = vpop.f32.mrf.mxu2 }
 0x23f   :  { %v6454_v52 = vpop.eup %5250  ;;  %v6457_v43 = vadd.f32 %v525_v10, %v6447_v12 }
 0x240   :  { %v800_v61 = vsel %vm655_vm3, %v6454_v52, 0.0  ;;  %v6465_v39 = vpop.eup %5252 }
 0x241   :  { %v698_v56 = vsel %vm655_vm3, %v6457_v43, -inf  ;;  %v803_v12 = vsel %vm655_vm3, %v6465_v39, 0.0 }
 0x242   :  { %699 = vmax.xlane.f32.xlu2 %v698_v56  ;;  %705 = vmax.xlane.f32.xlu1 %v704_v38  ;;  %v6474_v56 = vadd.f32 %v5248_v59, %v6194_v44 }
 0x243   :  { %801 = vadd.xlane.f32.xlu0 %v800_v61 }
 0x244   :  { %9188 = vst [vmem:[#allocation81_spill] sm:$0xff] %v6474_v56 }
 0x245   :  { %v664_v4 = vpop.xlane.xlu0 %663 }
 0x246   :  { %v730_v34 = vsub.f32 %v6237_v11, %v664_v4  ;;  %v527_v10 = vpop.f32.mrf.mxu2  ;;  %v6482_v11 = vadd.f32 %v5246_v5, %v6224_v60 }
 0x248   :  { %v756_v14 = vmul.f32 1.442695, %v730_v34  ;;  %9189 = vst [vmem:[#allocation82_spill] sm:$0xff] %v6482_v11  ;;  %v6489_v34 = vadd.f32 %v5248_v59, %v6189_v18  ;;  %v6492_v10 = vadd.f32 %v567_v35, %v6482_v11 }
 0x24a   :  { %5254 = vpow2.f32 %v756_v14  ;;  %804 = vadd.xlane.f32.xlu1 %v803_v12  ;;  %9190 = vst [vmem:[#allocation83_spill] sm:$0xff] %v6489_v34 }
 0x24f   :  { %v604_v61 = vpop.f32.mrf.mxu1 }
 0x250   :  { %v6476_v38 = vpop.eup %5254  ;;  %v6479_v8 = vadd.f32 %v604_v61, %v6474_v56 }
 0x251   :  { %v806_v4 = vsel %vm655_vm3, %v6476_v38, 0.0 }
 0x252   :  { %807 = vadd.xlane.f32.xlu2 %v806_v4  ;;  %v710_v14 = vsel %vm655_vm3, %v6479_v8, -inf  ;;  %v707_v4 = vsel %vm655_vm3, %v6492_v10, -inf }
 0x253   :  { %711 = vmax.xlane.f32.xlu0 %v710_v14 }
 0x255   :  { %v667_v12 = vpop.xlane.xlu2 %666 }
 0x256   :  { %v731_v61 = vsub.f32 %v6274_v48, %v667_v12 }
 0x257   :  { %v606_v5 = vpop.f32.mrf.mxu1 }
 0x258   :  { %v758_v23 = vmul.f32 1.442695, %v731_v61  ;;  %v6496_v36 = vadd.f32 %v606_v5, %v6489_v34  ;;  %v6511_v61 = vadd.f32 %v5248_v59, %v6224_v60 }
 0x25a   :  { %5256 = vpow2.f32 %v758_v23  ;;  %708 = vmax.xlane.f32.xlu2 %v707_v4  ;;  %v713_v14 = vsel %vm655_vm3, %v6496_v36, -inf  ;;  %9191 = vst [vmem:[#allocation84_spill] sm:$0xff] %v6511_v61 }
 0x25b   :  { %714 = vmax.xlane.f32.xlu1 %v713_v14 }
 0x25c   :  { %v670_v20 = vpop.xlane.xlu1 %669 }
 0x25d   :  { %v732_v23 = vsub.f32 %v6290_v51, %v670_v20 }
 0x25f   :  { %v609_v35 = vpop.f32.mrf.mxu1  ;;  %v760_v14 = vmul.f32 1.442695, %v732_v23 }
 0x260   :  { %v6502_v13 = vpop.eup %5256  ;;  %v1522_v11 = vpop.f32.mrf.mxu0 }
 0x261   :  { %v6505_v48 = vadd.f32 %v1522_v11, %v6474_v56  ;;  %v809_v12 = vsel %vm655_vm3, %v6502_v13, 0.0  ;;  %v6517_v11 = vadd.f32 %v609_v35, %v6511_v61  ;;  %5258 = vpow2.f32 %v760_v14  ;;  %v5249_v14 = vld [vmem:[%s9035_s2 + $0x7] ss:$0 sm:$0xff]  ;;  %s5667_s2 = smov 48  }
 0x262   :  { %810 = vadd.xlane.f32.xlu0 %v809_v12 }
 0x263   :  { %v1623_v5 = vsel %vm655_vm3, %v6505_v48, -inf  ;;  %v716_v59 = vsel %vm655_vm3, %v6517_v11, -inf }
 0x264   :  { %1624 = vmax.xlane.f32.xlu2 %v1623_v5 }
 0x267   :  { %v673_v4 = vpop.xlane.xlu2 %672  ;;  %v611_v50 = vpop.f32.mrf.mxu1 }
 0x268   :  { %v733_v29 = vsub.f32 %v6308_v47, %v673_v4  ;;  %v1524_v31 = vpop.f32.mrf.mxu0  ;;  %v6527_v12 = vpop.eup %5258 }
 0x269   :  { %v6520_v20 = vadd.f32 %v1524_v31, %v6489_v34  ;;  %v676_v4 = vpop.xlane.xlu0 %675 }
 0x26a   :  { %v762_v56 = vmul.f32 1.442695, %v733_v29 }
 0x26b   :  { %v1626_v51 = vsel %vm655_vm3, %v6520_v20, -inf }
 0x26c   :  { %5260 = vpow2.f32 %v762_v56  ;;  %1627 = vmax.xlane.f32.xlu1 %v1626_v51  ;;  %717 = vmax.xlane.f32.xlu2 %v716_v59  ;;  %v812_v56 = vsel %vm655_vm3, %v6527_v12, 0.0 }
 0x26f   :  { %v1589_v47 = vpop.xlane.xlu2 %1588 }
 0x270   :  { %v1647_v35 = vsub.f32 %v6327_v54, %v1589_v47  ;;  %v1527_v29 = vpop.f32.mrf.mxu0  ;;  %v734_v47 = vsub.f32 %v6257_v28, %v676_v4  ;;  %v6559_v4 = vadd.f32 %v5249_v14, %v6189_v18 }
 0x271   :  { %v6532_v23 = vadd.f32 %v1527_v29, %v6511_v61 }
 0x272   :  { %v6529_v50 = vpop.eup %5260  ;;  %v1677_v31 = vmul.f32 1.442695, %v1647_v35  ;;  %v1592_v35 = vpop.xlane.xlu1 %1591  ;;  %9193 = vst [vmem:[#allocation86_spill] sm:$0xff] %v6559_v4 }
 0x273   :  { %v1629_v5 = vsel %vm655_vm3, %v6532_v23, -inf  ;;  %v815_v54 = vsel %vm655_vm3, %v6529_v50, 0.0 }
 0x274   :  { %5262 = vpow2.f32 %v1677_v31  ;;  %813 = vadd.xlane.f32.xlu1 %v812_v56  ;;  %1630 = vmax.xlane.f32.xlu0 %v1629_v5  ;;  %v6549_v31 = vadd.f32 %v5249_v14, %v6194_v44  ;;  %v764_v56 = vmul.f32 1.442695, %v734_v47 }
 0x275   :  { %816 = vadd.xlane.f32.xlu2 %v815_v54 }
 0x276   :  { %9192 = vst [vmem:[#allocation85_spill] sm:$0xff] %v6549_v31  ;;  %v685_v5 = vpop.xlane.xlu0 %684  ;;  %5264 = vpow2.f32 %v764_v56 }
 0x277   :  { %v737_v34 = vsub.f32 %v6356_v49, %v685_v5  ;;  %v6573_v5 = vadd.f32 %v5249_v14, %v6224_v60 }
 0x278   :  { %v1529_v51 = vpop.f32.mrf.mxu0 }
 0x279   :  { %v1648_v51 = vsub.f32 %v6305_v19, %v1592_v35  ;;  %v770_v3 = vmul.f32 1.442695, %v737_v34  ;;  %9194 = vst [vmem:[#allocation87_spill] sm:$0xff] %v6573_v5 }
 0x27a   :  { %v6543_v59 = vpop.eup %5262  ;;  %v679_v47 = vpop.xlane.xlu1 %678 }
 0x27b   :  { %v1731_v29 = vsel %vm655_vm3, %v6543_v59, 0.0  ;;  %v1679_v44 = vmul.f32 1.442695, %v1648_v51  ;;  %v735_v56 = vsub.f32 %v6324_v24, %v679_v47 }
 0x27c   :  { %v6561_v46 = vpop.eup %5264 }
 0x27d   :  { %1732 = vadd.xlane.f32.xlu2 %v1731_v29  ;;  %v682_v29 = vpop.xlane.xlu2 %681  ;;  %5266 = vpow2.f32 %v1679_v44  ;;  %v818_v35 = vsel %vm655_vm3, %v6561_v46, 0.0  ;;  %v766_v34 = vmul.f32 1.442695, %v735_v56 }
 0x27e   :  { %v646_v54 = vpop.f32.mrf.mxu2  ;;  %v736_v49 = vsub.f32 %v6353_v1, %v682_v29  ;;  %5268 = vpow2.f32 %v770_v3 }
 0x27f   :  { %v6552_v61 = vadd.f32 %v646_v54, %v6549_v31  ;;  %5270 = vpow2.f32 %v766_v34 }
 0x280   :  { %v768_v24 = vmul.f32 1.442695, %v736_v49 }
 0x281   :  { %v719_v28 = vsel %vm655_vm3, %v6552_v61, -inf }
 0x282   :  { %720 = vmax.xlane.f32.xlu0 %v719_v28  ;;  %v688_v51 = vpop.xlane.xlu1 %687  ;;  %5272 = vpow2.f32 %v768_v24 }
 0x283   :  { %v6575_v47 = vpop.eup %5266  ;;  %v738_v3 = vsub.f32 %v6371_v27, %v688_v51 }
 0x284   :  { %v6577_v1 = vpop.eup %5268  ;;  %v1734_v60 = vsel %vm655_vm3, %v6575_v47, 0.0 }
 0x285   :  { %v827_v56 = vsel %vm655_vm3, %v6577_v1, 0.0  ;;  %v772_v49 = vmul.f32 1.442695, %v738_v3 }
 0x286   :  { %v648_v54 = vpop.f32.mrf.mxu2  ;;  %v691_v28 = vpop.xlane.xlu2 %690 }
 0x287   :  { %v6565_v19 = vadd.f32 %v648_v54, %v6559_v4  ;;  %v739_v54 = vsub.f32 %v6387_v22, %v691_v28  ;;  %5274 = vpow2.f32 %v772_v49 }
 0x289   :  { %v722_v18 = vsel %vm655_vm3, %v6565_v19, -inf  ;;  %v774_v27 = vmul.f32 1.442695, %v739_v54 }
 0x28a   :  { %723 = vmax.xlane.f32.xlu1 %v722_v18  ;;  %819 = vadd.xlane.f32.xlu0 %v818_v35  ;;  %v6590_v18 = vpop.eup %5270 }
 0x28b   :  { %v6592_v35 = vpop.eup %5272  ;;  %5276 = vpow2.f32 %v774_v27  ;;  %v821_v22 = vsel %vm655_vm3, %v6590_v18, 0.0 }
 0x28c   :  { %v824_v24 = vsel %vm655_vm3, %v6592_v35, 0.0 }
 0x28d   :  { %v6598_v51 = vpop.eup %5274 }
 0x28e   :  { %v651_v44 = vpop.f32.mrf.mxu2 }
 0x28f   :  { %v6581_v29 = vadd.f32 %v651_v44, %v6573_v5  ;;  %v830_v44 = vsel %vm655_vm3, %v6598_v51, 0.0 }
 0x291   :  { %v725_v14 = vsel %vm655_vm3, %v6581_v29, -inf  ;;  %v6600_v28 = vpop.eup %5276 }
 0x292   :  { %1735 = vadd.xlane.f32.xlu1 %v1734_v60  ;;  %726 = vmax.xlane.f32.xlu2 %v725_v14  ;;  %v833_v3 = vsel %vm655_vm3, %v6600_v28, 0.0 }
 0x293   :  { %828 = vadd.xlane.f32.xlu0 %v827_v56 }
 0x296   :  { %v653_v34 = vpop.f32.mrf.mxu2 }
 0x29a   :  { %822 = vadd.xlane.f32.xlu1 %v821_v22  ;;  %825 = vadd.xlane.f32.xlu2 %v824_v24 }
 0x2a2   :  { %831 = vadd.xlane.f32.xlu1 %v830_v44  ;;  %834 = vadd.xlane.f32.xlu2 %v833_v3 }
 0x2a5   :  { %v694_v54 = vpop.xlane.xlu0 %693 }
 0x2a6   :  { %v740_v60 = vsub.f32 %v6419_v17, %v694_v54 }
 0x2a8   :  { %v776_v14 = vmul.f32 1.442695, %v740_v60 }
 0x2aa   :  { %5278 = vpow2.f32 %v776_v14 }
 0x2ad   :  { %v697_v56 = vpop.xlane.xlu1 %696  ;;  %v703_v49 = vpop.xlane.xlu0 %702 }
 0x2ae   :  { %v741_v27 = vsub.f32 %v6436_v58, %v697_v56  ;;  %v743_v34 = vsub.f32 %v6432_v30, %v703_v49 }
 0x2b0   :  { %v6609_v22 = vpop.eup %5278  ;;  %v778_v24 = vmul.f32 1.442695, %v741_v27  ;;  %v782_v5 = vmul.f32 1.442695, %v743_v34 }
 0x2b1   :  { %v836_v4 = vsel %vm655_vm3, %v6609_v22, 0.0 }
 0x2b2   :  { %5280 = vpow2.f32 %v778_v24  ;;  %837 = vadd.xlane.f32.xlu0 %v836_v4 }
 0x2b3   :  { %5282 = vpow2.f32 %v782_v5 }
 0x2b5   :  { %v700_v44 = vpop.xlane.xlu2 %699  ;;  %v706_v17 = vpop.xlane.xlu1 %705 }
 0x2b6   :  { %v742_v3 = vsub.f32 %v6457_v43, %v700_v44  ;;  %v744_v54 = vsub.f32 %v6450_v37, %v706_v17  ;;  %v802_v60 = vpop.xlane.xlu0 %801 }
 0x2b7   :  { %5284 = vrcp.f32 %v802_v60 }
 0x2b8   :  { %v6615_v58 = vpop.eup %5280  ;;  %v780_v30 = vmul.f32 1.442695, %v742_v3  ;;  %v784_v14 = vmul.f32 1.442695, %v744_v54 }
 0x2b9   :  { %v6617_v56 = vpop.eup %5282  ;;  %v839_v49 = vsel %vm655_vm3, %v6615_v58, 0.0 }
 0x2ba   :  { %5286 = vpow2.f32 %v780_v30  ;;  %840 = vadd.xlane.f32.xlu1 %v839_v49  ;;  %v845_v4 = vsel %vm655_vm3, %v6617_v56, 0.0 }
 0x2bb   :  { %5288 = vpow2.f32 %v784_v14  ;;  %846 = vadd.xlane.f32.xlu0 %v845_v4 }
 0x2bd   :  { %v805_v43 = vpop.xlane.xlu1 %804  ;;  %v5285_v37 = vpop.eup %5284 }
 0x2be   :  { %5290 = vrcp.f32 %v805_v43  ;;  %v896_v34 = vmul.f32 %v5285_v37, %v6454_v52 }
 0x2c0   :  { %v6623_v5 = vpop.eup %5286  ;;  %v920_v3 = vpack.c.bf16 %v896_v34, %v896_v34 }
 0x2c1   :  { %v6625_v27 = vpop.eup %5288  ;;  %v842_v24 = vsel %vm655_vm3, %v6623_v5, 0.0 }
 0x2c2   :  { %v848_v44 = vsel %vm655_vm3, %v6625_v27, 0.0  ;;  %843 = vadd.xlane.f32.xlu2 %v842_v24  ;;  %v947_v4 = vunpack.c.l.b16 %v920_v3  ;;  %v1205_v24 = vsel %vm963_vm2, %v6229_v32, 0 }
 0x2c3   :  { %849 = vadd.xlane.f32.xlu1 %v848_v44 }
 0x2c4   :  { %v5291_v17 = vpop.eup %5290 }
 0x2c5   :  { %v897_v54 = vmul.f32 %v5291_v17, %v6465_v39  ;;  %v808_v60 = vpop.xlane.xlu2 %807 }
 0x2c6   :  { %5292 = vrcp.f32 %v808_v60  ;;  %v712_v30 = vpop.xlane.xlu0 %711 }
 0x2c7   :  { %v921_v14 = vpack.c.bf16 %v897_v54, %v897_v54  ;;  %v746_v49 = vsub.f32 %v6479_v8, %v712_v30 }
 0x2c9   :  { %v948_v52 = vunpack.c.l.b16 %v921_v14  ;;  %v788_v43 = vmul.f32 1.442695, %v746_v49 }
 0x2cb   :  { %v950_v37 = vpack.c.b16 %v948_v52, %v947_v4  ;;  %5294 = vpow2.f32 %v788_v43 }
 0x2cc   :  { %v5293_v31 = vpop.eup %5292 }
 0x2cd   :  { %v709_v44 = vpop.xlane.xlu2 %708  ;;  %5089 = vmatmul.msk.bf16.vlgmr.msra.gmra.mxu3 %vm655_vm3, %v950_v37  ;;  %v898_v34 = vmul.f32 %v5293_v31, %v6476_v38 }
 0x2ce   :  { %v745_v39 = vsub.f32 %v6492_v10, %v709_v44  ;;  %1213 = vmatpush.bf16.msra.mxu3 %v1205_v24  ;;  %v715_v32 = vpop.xlane.xlu1 %714 }
 0x2cf   :  { %v922_v3 = vpack.c.bf16 %v898_v34, %v898_v34 }
 0x2d0   :  { %v786_v17 = vmul.f32 1.442695, %v745_v39 }
 0x2d1   :  { %v6639_v54 = vpop.eup %5294  ;;  %v949_v60 = vunpack.c.l.b16 %v922_v3 }
 0x2d2   :  { %5296 = vpow2.f32 %v786_v17  ;;  %1214 = vmatpush.bf16.msra.mxu3 %v6214_v15  ;;  %v854_v8 = vsel %vm655_vm3, %v6639_v54, 0.0 }
 0x2d3   :  { %855 = vadd.xlane.f32.xlu0 %v854_v8  ;;  %v951_v38 = vpack.c.b16 %v949_v60, %v949_v60  ;;  %v747_v60 = vsub.f32 %v6496_v36, %v715_v32 }
 0x2d5   :  { %v811_v15 = vpop.xlane.xlu0 %810 }
 0x2d6   :  { %5298 = vrcp.f32 %v811_v15  ;;  %v790_v15 = vmul.f32 1.442695, %v747_v60 }
 0x2d7   :  { %v1625_v14 = vpop.xlane.xlu2 %1624 }
 0x2d8   :  { %v6644_v30 = vpop.eup %5296 }
 0x2d9   :  { %v851_v10 = vsel %vm655_vm3, %v6644_v30, 0.0 }
 0x2da   :  { %852 = vadd.xlane.f32.xlu2 %v851_v10 }
 0x2dc   :  { %2371 = vrot.lane.b32.xlu1 %v5945_v53, %s5665_s28  ;;  %v5299_v52 = vpop.eup %5298 }
 0x2dd   :  { %5090 = vmatmul.msk.bf16.gmra.mxu3 %vm655_vm3, %v951_v38  ;;  %v899_v43 = vmul.f32 %v5299_v52, %v6502_v13  ;;  %v1245_v13 = vsel %vm963_vm2, %v6395_v42, 0 }
 0x2df   :  { %v1628_v31 = vpop.xlane.xlu1 %1627  ;;  %v6651_v49 = vpop.xlane.xlu2 %717  ;;  %v923_v44 = vpack.c.bf16 %v899_v43, %v899_v43 }
 0x2e0   :  { %v1660_v52 = vsub.f32 %v6520_v20, %v1628_v31 }
 0x2e1   :  { %v988_v8 = vunpack.c.l.b16 %v923_v44 }
 0x2e7   :  { %v814_v4 = vpop.xlane.xlu1 %813  ;;  %2369 = vrot.lane.b32.xlu0 %v5958_v62, %s5666_s29  ;;  %v1631_v17 = vpop.xlane.xlu0 %1630 }
 0x2e8   :  { %5300 = vrcp.f32 %v814_v4  ;;  %v817_v37 = vpop.xlane.xlu2 %816  ;;  %v1661_v32 = vsub.f32 %v6532_v23, %v1631_v17 }
 0x2e9   :  { %5302 = vrcp.f32 %v817_v37 }
 0x2ea   :  { %5304 = vpow2.f32 %v790_v15 }
 0x2ee   :  { %v5301_v24 = vpop.eup %5300 }
 0x2ef   :  { %v900_v39 = vmul.f32 %v5301_v24, %v6527_v12  ;;  %v5303_v38 = vpop.eup %5302  ;;  %v1703_v24 = vmul.f32 1.442695, %v1660_v52 }
 0x2f0   :  { %v901_v12 = vmul.f32 %v5303_v38, %v6529_v50  ;;  %v1733_v37 = vpop.xlane.xlu2 %1732  ;;  %v6669_v44 = vpop.eup %5304 }
 0x2f1   :  { %v924_v34 = vpack.c.bf16 %v900_v39, %v900_v39  ;;  %5306 = vrcp.f32 %v1733_v37  ;;  %v1705_v39 = vmul.f32 1.442695, %v1661_v32  ;;  %v857_v20 = vsel %vm655_vm3, %v6669_v44, 0.0 }
 0x2f2   :  { %2373 = vrot.lane.b32.xlu2 %v5958_v62, %s5665_s28  ;;  %v925_v43 = vpack.c.bf16 %v901_v12, %v901_v12  ;;  %5308 = vpow2.f32 %v1703_v24  ;;  %v748_v37 = vsub.f32 %v6517_v11, %v6651_v49 }
 0x2f3   :  { %v989_v3 = vunpack.c.l.b16 %v924_v34 }
 0x2f4   :  { %v990_v42 = vunpack.c.l.b16 %v925_v43 }
 0x2f5   :  { %v991_v10 = vpack.c.b16 %v989_v3, %v988_v8  ;;  %v721_v4 = vpop.xlane.xlu0 %720 }
 0x2f6   :  { %v992_v50 = vpack.c.b16 %v990_v42, %v990_v42  ;;  %v749_v23 = vsub.f32 %v6552_v61, %v721_v4 }
 0x2f7   :  { %5091 = vmatmul.msk.bf16.vlgmr.msrb.gmra.mxu1 %vm655_vm3, %v991_v10  ;;  %v5307_v8 = vpop.eup %5306 }
 0x2f8   :  { %1253 = vmatpush.bf16.msrb.mxu1 %v1245_v13  ;;  %v1815_v60 = vmul.f32 %v5307_v8, %v6543_v59  ;;  %v6679_v10 = vpop.eup %5308 }
 0x2f9   :  { %v1770_v61 = vsel %vm655_vm3, %v6679_v10, 0.0 }
 0x2fa   :  { %v1839_v13 = vpack.c.bf16 %v1815_v60, %v1815_v60 }
 0x2fc   :  { %1254 = vmatpush.bf16.msrb.mxu1 %v6265_v33  ;;  %v1659_v33 = vsub.f32 %v6505_v48, %v1625_v14  ;;  %v794_v48 = vmul.f32 1.442695, %v749_v23  ;;  %v1940_v32 = vunpack.c.l.b16 %v1839_v13 }
 0x2fd   :  { %v6666_v36 = vpop.xlane.xlu1 %723  ;;  %v820_v34 = vpop.xlane.xlu0 %819 }
 0x2fe   :  { %v1701_v3 = vmul.f32 1.442695, %v1659_v33  ;;  %v2271_v33 = vsel %vm330_vm1, %v6316_v45, 0 }
 0x305   :  { %v1736_v31 = vpop.xlane.xlu1 %1735  ;;  %v6676_v17 = vpop.xlane.xlu2 %726 }
 0x306   :  { %858 = vadd.xlane.f32.xlu1 %v857_v20  ;;  %5310 = vrcp.f32 %v1736_v31  ;;  %v829_v12 = vpop.xlane.xlu0 %828  ;;  %v792_v31 = vmul.f32 1.442695, %v748_v37 }
 0x307   :  { %5092 = vmatmul.msk.bf16.gmra.mxu1 %vm655_vm3, %v992_v50  ;;  %5312 = vpow2.f32 %v1705_v39 }
 0x308   :  { %5314 = vrcp.f32 %v820_v34 }
 0x309   :  { %5316 = vpow2.f32 %v1701_v3 }
 0x30c   :  { %v5311_v14 = vpop.eup %5310 }
 0x30d   :  { %v6681_v38 = vpop.eup %5312  ;;  %v1816_v15 = vmul.f32 %v5311_v14, %v6575_v47  ;;  %v823_v4 = vpop.xlane.xlu1 %822 }
 0x30e   :  { %v5315_v52 = vpop.eup %5314  ;;  %1771 = vadd.xlane.f32.xlu1 %v1770_v61  ;;  %5318 = vrcp.f32 %v823_v4  ;;  %v1773_v43 = vsel %vm655_vm3, %v6681_v38, 0.0  ;;  %v826_v42 = vpop.xlane.xlu2 %825  ;;  %v1283_v61 = vsel %vm330_vm1, %v5930_v40, 0 }
 0x30f   :  { %5320 = vpow2.f32 %v794_v48  ;;  %v1840_v59 = vpack.c.bf16 %v1816_v15, %v1816_v15  ;;  %v902_v47 = vmul.f32 %v5315_v52, %v6561_v46  ;;  %v6691_v39 = vpop.eup %5316 }
 0x310   :  { %5322 = vrcp.f32 %v829_v12 }
 0x311   :  { %v1941_v24 = vunpack.c.l.b16 %v1840_v59  ;;  %1774 = vadd.xlane.f32.xlu0 %v1773_v43  ;;  %v926_v8 = vpack.c.bf16 %v902_v47, %v902_v47  ;;  %5324 = vrcp.f32 %v826_v42 }
 0x313   :  { %v1943_v34 = vpack.c.b16 %v1941_v24, %v1940_v32  ;;  %v1028_v60 = vunpack.c.l.b16 %v926_v8 }
 0x314   :  { %v5319_v50 = vpop.eup %5318 }
 0x315   :  { %v6695_v20 = vpop.eup %5320  ;;  %v903_v23 = vmul.f32 %v5319_v50, %v6590_v18  ;;  %v832_v11 = vpop.xlane.xlu1 %831  ;;  %5125 = vmatmul.msk.bf16.vlgmr.msrb.gmra.mxu0 %vm655_vm3, %v1943_v34  ;;  %v1767_v18 = vsel %vm655_vm3, %v6691_v39, 0.0  ;;  %v1280_v34 = vsel %vm330_vm1, %v5871_v6, 0 }
 0x316   :  { %v5323_v46 = vpop.eup %5322  ;;  %5326 = vrcp.f32 %v832_v11  ;;  %2279 = vmatpush.bf16.xpose.msrb.mxu0 %v2271_v33  ;;  %v863_v3 = vsel %vm655_vm3, %v6695_v20, 0.0  ;;  %v835_v15 = vpop.xlane.xlu2 %834 }
 0x317   :  { %v927_v49 = vpack.c.bf16 %v903_v23, %v903_v23  ;;  %5328 = vpow2.f32 %v792_v31  ;;  %v905_v45 = vmul.f32 %v5323_v46, %v6577_v1  ;;  %v5325_v14 = vpop.eup %5324  ;;  %v2268_v1 = vsel %vm330_vm1, %v6382_v63, 0 }
 0x318   :  { %5330 = vrcp.f32 %v835_v15  ;;  %v904_v37 = vmul.f32 %v5325_v14, %v6592_v35  ;;  %v1321_v63 = vsel %vm330_vm1, %v6033_v2, 0  ;;  %v1318_v2 = vsel %vm330_vm1, %v5983_v16, 0 }
 0x319   :  { %v1029_v48 = vunpack.c.l.b16 %v927_v49  ;;  %864 = vadd.xlane.f32.xlu0 %v863_v3  ;;  %v929_v4 = vpack.c.bf16 %v905_v45, %v905_v45 }
 0x31b   :  { %v1031_v13 = vpack.c.b16 %v1029_v48, %v1028_v60  ;;  %1768 = vadd.xlane.f32.xlu2 %v1767_v18  ;;  %v1068_v32 = vunpack.c.l.b16 %v929_v4  ;;  %v1397_v4 = vsel %vm330_vm1, %v6115_v25, 0  ;;  %v1394_v25 = vsel %vm330_vm1, %v6029_v0, 0  ;;  %v9195_v0 = vld [vmem:[#allocation37_spill] sm:$0xff] }
 0x31c   :  { %v5327_v12 = vpop.eup %5326 }
 0x31d   :  { %v906_v52 = vmul.f32 %v5327_v12, %v6598_v51  ;;  %5093 = vmatmul.msk.bf16.vlgmr.msra.gmra.mxu2 %vm655_vm3, %v1031_v13  ;;  %v6710_v59 = vpop.eup %5328  ;;  %v928_v51 = vpack.c.bf16 %v904_v37, %v904_v37 }
 0x31e   :  { %1291 = vmatpush.bf16.xpose.msra.mxu2 %v1283_v61  ;;  %2280 = vmatpush.bf16.xpose.msrb.mxu0 %v2268_v1  ;;  %v860_v40 = vsel %vm655_vm3, %v6710_v59, 0.0  ;;  %v5331_v42 = vpop.eup %5330 }
 0x31f   :  { %v930_v43 = vpack.c.bf16 %v906_v52, %v906_v52  ;;  %v1030_v35 = vunpack.c.l.b16 %v928_v51  ;;  %v907_v33 = vmul.f32 %v5331_v42, %v6600_v28  ;;  %v1432_v42 = vsel %vm330_vm1, %v9195_v0, 0  ;;  %v9216_v0 = vld [vmem:[#allocation39_spill] sm:$0xff] }
 0x321   :  { %v1069_v47 = vunpack.c.l.b16 %v930_v43  ;;  %v1032_v31 = vpack.c.b16 %v1030_v35, %v1030_v35  ;;  %v931_v8 = vpack.c.bf16 %v907_v33, %v907_v33  ;;  %v9197_v35 = vld [vmem:[#allocation9_spill] sm:$0xff] }
 0x323   :  { %v1071_v24 = vpack.c.b16 %v1069_v47, %v1068_v32  ;;  %861 = vadd.xlane.f32.xlu2 %v860_v40  ;;  %v1070_v28 = vunpack.c.l.b16 %v931_v8 }
 0x325   :  { %5095 = vmatmul.msk.bf16.vlgmr.msrb.gmra.mxu3 %vm655_vm3, %v1071_v24  ;;  %v838_v50 = vpop.xlane.xlu0 %837  ;;  %v1072_v49 = vpack.c.b16 %v1070_v28, %v1070_v28 }
 0x326   :  { %1292 = vmatpush.bf16.xpose.msra.mxu2 %v1280_v34  ;;  %1329 = vmatpush.bf16.xpose.msrb.mxu3 %v1321_v63  ;;  %5332 = vrcp.f32 %v838_v50  ;;  %v750_v63 = vsub.f32 %v6565_v19, %v6666_v36  ;;  %v9199_v36 = vld [vmem:[#allocation15_spill] sm:$0xff] }
 0x327   :  { %2407 = vrot.lane.b32.xlu1 %v6021_v55, %s5666_s29 }
 0x328   :  { %v796_v34 = vmul.f32 1.442695, %v750_v63  ;;  %v9217_v63 = vld [vmem:[#allocation30_spill] sm:$0xff] }
 0x32c   :  { %v5333_v6 = vpop.eup %5332 }
 0x32d   :  { %v841_v23 = vpop.xlane.xlu1 %840  ;;  %5094 = vmatmul.msk.bf16.gmra.mxu2 %vm655_vm3, %v1032_v31  ;;  %2405 = vrot.lane.b32.xlu0 %v5988_v21, %s5666_s29  ;;  %v908_v46 = vmul.f32 %v5333_v6, %v6609_v22 }
 0x32e   :  { %5334 = vrcp.f32 %v841_v23  ;;  %1330 = vmatpush.bf16.xpose.msrb.mxu3 %v1318_v2  ;;  %v847_v11 = vpop.xlane.xlu0 %846  ;;  %v751_v2 = vsub.f32 %v6581_v29, %v6676_v17 }
 0x32f   :  { %2443 = vrot.lane.b32.xlu1 %v6036_v9, %s5666_s29  ;;  %5336 = vrcp.f32 %v847_v11  ;;  %v932_v60 = vpack.c.bf16 %v908_v46, %v908_v46 }
 0x330   :  { %v798_v11 = vmul.f32 1.442695, %v751_v2 }
 0x331   :  { %v1108_v22 = vunpack.c.l.b16 %v932_v60  ;;  %v9202_v60 = vld [vmem:[#allocation14_spill] sm:$0xff] }
 0x334   :  { %v5335_v3 = vpop.eup %5334 }
 0x335   :  { %v909_v45 = vmul.f32 %v5335_v3, %v6615_v58  ;;  %v844_v16 = vpop.xlane.xlu2 %843  ;;  %5096 = vmatmul.msk.bf16.gmra.mxu3 %vm655_vm3, %v1072_v49  ;;  %2411 = vrot.lane.b32.xlu0 %v6021_v55, %s5665_s28  ;;  %v5337_v18 = vpop.eup %5336  ;;  %v9201_v49 = vld [vmem:[#allocation20_spill] sm:$0xff] }
 0x336   :  { %v850_v48 = vpop.xlane.xlu1 %849  ;;  %5338 = vrcp.f32 %v844_v16  ;;  %v911_v15 = vmul.f32 %v5337_v18, %v6617_v56  ;;  %v1877_v3 = vsel %vm963_vm2, %v9201_v49, 0 }
 0x337   :  { %v933_v14 = vpack.c.bf16 %v909_v45, %v909_v45  ;;  %5340 = vrcp.f32 %v850_v48  ;;  %2449 = vrot.lane.b32.xlu1 %v6094_v57, %s5665_s28  ;;  %v9204_v48 = vld [vmem:[#allocation10_spill] sm:$0xff] }
 0x338   :  { %v935_v52 = vpack.c.bf16 %v911_v15, %v911_v15  ;;  %v9207_v15 = vld [vmem:[#allocation6_spill] sm:$0xff] }
 0x339   :  { %v1109_v13 = vunpack.c.l.b16 %v933_v14  ;;  %v9206_v14 = vld [vmem:[#allocation5_spill] sm:$0xff] }
 0x33a   :  { %v1148_v37 = vunpack.c.l.b16 %v935_v52 }
 0x33b   :  { %v1111_v12 = vpack.c.b16 %v1109_v13, %v1108_v22  ;;  %2409 = vrot.lane.b32.xlu2 %v5988_v21, %s5665_s28 }
 0x33c   :  { %v5339_v58 = vpop.eup %5338 }
 0x33d   :  { %v5341_v61 = vpop.eup %5340  ;;  %5097 = vmatmul.msk.bf16.vlgmr.msra.gmra.mxu1 %vm655_vm3, %v1111_v12  ;;  %2447 = vrot.lane.b32.xlu0 %v6036_v9, %s5665_s28  ;;  %v910_v56 = vmul.f32 %v5339_v58, %v6623_v5  ;;  %s5668_s28 = smov 72  }
 0x33e   :  { %v912_v1 = vmul.f32 %v5341_v61, %v6625_v27  ;;  %1405 = vmatpush.bf16.xpose.msra.mxu1 %v1397_v4  ;;  %v1435_v27 = vsel %vm330_vm1, %v6160_v7, 0  ;;  %v9209_v61 = vld [vmem:[#allocation22_spill] sm:$0xff] }
 0x33f   :  { %v934_v47 = vpack.c.bf16 %v910_v56, %v910_v56  ;;  %v9210_v56 = vld [vmem:[#allocation8_spill] sm:$0xff] }
 0x340   :  { %v936_v43 = vpack.c.bf16 %v912_v1, %v912_v1 }
 0x341   :  { %v1110_v5 = vunpack.c.l.b16 %v934_v47  ;;  %v9212_v47 = vld [vmem:[#allocation7_spill] sm:$0xff] }
 0x342   :  { %v1149_v32 = vunpack.c.l.b16 %v936_v43 }
 0x343   :  { %2445 = vrot.lane.b32.xlu2 %v6094_v57, %s5666_s29  ;;  %v1112_v24 = vpack.c.b16 %v1110_v5, %v1110_v5  ;;  %s5669_s29 = smov 104  }
 0x344   :  { %v1151_v40 = vpack.c.b16 %v1149_v32, %v1148_v37 }
 0x345   :  { %2779 = vrot.lane.b32.xlu0 %v5776_v26, %s5667_s2 }
 0x346   :  { %5099 = vmatmul.msk.bf16.vlgmr.msrb.gmra.mxu2 %vm655_vm3, %v1151_v40  ;;  %1406 = vmatpush.bf16.xpose.msra.mxu1 %v1394_v25  ;;  %v856_v45 = vpop.xlane.xlu0 %855 }
 0x347   :  { %1443 = vmatpush.bf16.xpose.msrb.mxu2 %v1435_v27  ;;  %v9214_v27 = vld [vmem:[#allocation13_spill] sm:$0xff] }
 0x34d   :  { %v853_v51 = vpop.xlane.xlu2 %852  ;;  %5098 = vmatmul.msk.bf16.gmra.mxu1 %vm655_vm3, %v1112_v24  ;;  %2819 = vrot.lane.b32.xlu0 %v5805_v41, %s5667_s2  ;;  %v9215_v24 = vld [vmem:[#allocation33_spill] sm:$0xff] }
 0x34e   :  { %5342 = vrcp.f32 %v853_v51  ;;  %v6793_v16 = vpop.permute.xlu1 %2371  ;;  %v2037_v51 = vsel %vm963_vm2, %v9215_v24, 0 }
 0x34f   :  { %1444 = vmatpush.bf16.xpose.msrb.mxu2 %v1432_v42  ;;  %5344 = vpow2.f32 %v796_v34  ;;  %9203 = vst [vmem:[#allocation20_spill] sm:$0xff] %v6793_v16  ;;  %v9218_v34 = vld [vmem:[#allocation38_spill] sm:$0xff] }
 0x350   :  { %v6763_v7 = vpop.f32.mrf.mxu3  ;;  %5346 = vpow2.f32 %v798_v11 }
 0x351   :  { %9196 = vst [vmem:[#allocation37_spill] sm:$0xff] %v6763_v7  ;;  %5348 = vrcp.f32 %v856_v45  ;;  %v9226_v45 = vld [vmem:[#allocation44_spill] sm:$0xff]  ;;  %v9273_v7 = vld [vmem:[#allocation77_spill] sm:$0xff] }
 0x354   :  { %v5343_v50 = vpop.eup %5342 }
 0x355   :  { %2897 = vrot.lane.b32.xlu0 %v9197_v35, %s5667_s2  ;;  %v913_v33 = vmul.f32 %v5343_v50, %v6644_v30  ;;  %v6772_v19 = vpop.eup %5344  ;;  %v6818_v40 = vpop.permute.xlu2 %2373  ;;  %v9219_v50 = vld [vmem:[#allocation11_spill] sm:$0xff] }
 0x356   :  { %v866_v30 = vsel %vm655_vm3, %v6772_v19, 0.0  ;;  %v6783_v29 = vpop.eup %5346 }
 0x357   :  { %v937_v31 = vpack.c.bf16 %v913_v33, %v913_v33  ;;  %v869_v46 = vsel %vm655_vm3, %v6783_v29, 0.0  ;;  %v5349_v13 = vpop.eup %5348 }
 0x358   :  { %v6768_v8 = vpop.f32.mrf.mxu3  ;;  %v914_v58 = vmul.f32 %v5349_v13, %v6639_v54 }
 0x359   :  { %9198 = vst [vmem:[#allocation9_spill] sm:$0xff] %v6768_v8  ;;  %v1150_v23 = vunpack.c.l.b16 %v937_v31 }
 0x35a   :  { %v938_v52 = vpack.c.bf16 %v914_v58, %v914_v58 }
 0x35b   :  { %v1152_v6 = vpack.c.b16 %v1150_v23, %v1150_v23  ;;  %v9220_v23 = vld [vmem:[#allocation32_spill] sm:$0xff] }
 0x35c   :  { %v1188_v54 = vunpack.c.l.b16 %v938_v52 }
 0x35d   :  { %5100 = vmatmul.msk.bf16.gmra.mxu2 %vm655_vm3, %v1152_v6  ;;  %2939 = vrot.lane.b32.xlu0 %v9199_v36, %s5667_s2 }
 0x360   :  { %v6779_v28 = vpop.f32.mrf.mxu3 }
 0x361   :  { %9200 = vst [vmem:[#allocation15_spill] sm:$0xff] %v6779_v28  ;;  %867 = vadd.xlane.f32.xlu1 %v866_v30 }
 0x365   :  { %3017 = vrot.lane.b32.xlu0 %v5988_v21, %s5667_s2 }
 0x368   :  { %v983_v17 = vpop.f32.mrf.mxu3 }
 0x36c   :  { %870 = vadd.xlane.f32.xlu2 %v869_v46 }
 0x36d   :  { %5105 = vmatmul.msk.bf16.vlgmr.msra.gmra.mxu2 %vm330_vm1, %v9202_v60  ;;  %3059 = vrot.lane.b32.xlu0 %v6094_v57, %s5667_s2 }
 0x36e   :  { %1885 = vmatpush.bf16.msra.mxu2 %v1877_v3 }
 0x372   :  { %1886 = vmatpush.bf16.msra.mxu2 %v9204_v48  ;;  %v1473_v48 = vsel %vm330_vm1, %v9226_v45, 0 }
 0x374   :  { %v6796_v18 = vpop.f32.mrf.mxu1 }
 0x375   :  { %9205 = vst [vmem:[#allocation14_spill] sm:$0xff] %v6796_v18  ;;  %3093 = vrot.lane.b32.xlu0 %v9206_v14, %s5668_s28  ;;  %v9267_v18 = vld [vmem:[#allocation70_spill] sm:$0xff] }
 0x379   :  { %v859_v22 = vpop.xlane.xlu1 %858 }
 0x37a   :  { %5350 = vrcp.f32 %v859_v22  ;;  %2817 = vrot.lane.b32.xlu1 %v9207_v15, %s5667_s2  ;;  %v9227_v22 = vld [vmem:[#allocation24_spill] sm:$0xff] }
 0x37c   :  { %v6802_v12 = vpop.f32.mrf.mxu1 }
 0x37d   :  { %9208 = vst [vmem:[#allocation10_spill] sm:$0xff] %v6802_v12  ;;  %5106 = vmatmul.msk.bf16.gmra.mxu2 %vm330_vm1, %v9209_v61  ;;  %3129 = vrot.lane.b32.xlu0 %v5805_v41, %s5669_s29 }
 0x380   :  { %v5351_v4 = vpop.eup %5350 }
 0x381   :  { %v915_v1 = vmul.f32 %v5351_v4, %v6669_v44  ;;  %v9213_v44 = vld [vmem:[#allocation27_spill] sm:$0xff]  ;;  %v6882_v4 = vpop.permute.xlu0 %2369 }
 0x382   :  { %2859 = vrot.lane.b32.xlu1 %v9210_v56, %s5667_s2  ;;  %9230 = vst [vmem:[#allocation39_spill] sm:$0xff] %v6882_v4 }
 0x383   :  { %v939_v43 = vpack.c.bf16 %v915_v1, %v915_v1  ;;  %v9232_v1 = vld [vmem:[#allocation41_spill] sm:$0xff] }
 0x384   :  { %v6812_v37 = vpop.f32.mrf.mxu1  ;;  %2777 = vrot.lane.b32.xlu2 %v9206_v14, %s5667_s2 }
 0x385   :  { %9211 = vst [vmem:[#allocation5_spill] sm:$0xff] %v6812_v37  ;;  %v1189_v32 = vunpack.c.l.b16 %v939_v43  ;;  %3165 = vrot.lane.b32.xlu0 %v9212_v47, %s5669_s29  ;;  %v1470_v43 = vsel %vm330_vm1, %v9232_v1, 0 }
 0x387   :  { %v1191_v25 = vpack.c.b16 %v1189_v32, %v1188_v54 }
 0x389   :  { %5101 = vmatmul.msk.bf16.vlgmr.msra.gmra.mxu3 %vm655_vm3, %v1191_v25  ;;  %v6892_v32 = vpop.xlane.xlu0 %1774 }
 0x38a   :  { %5217 = vmatpush.bf16.xpose.msra.mxu3 %v9213_v44  ;;  %2937 = vrot.lane.b32.xlu1 %v9214_v27, %s5667_s2 }
 0x38c   :  { %v1023_v5 = vpop.f32.mrf.mxu1  ;;  %2857 = vrot.lane.b32.xlu2 %v9212_v47, %s5667_s2 }
 0x38d   :  { %5113 = vmatmul.msk.bf16.vlgmr.msrb.gmra.mxu2 %vm330_vm1, %v9216_v0  ;;  %3171 = vrot.lane.b32.xlu0 %v9210_v56, %s5668_s28  ;;  %v9235_v5 = vld [vmem:[#allocation16_spill] sm:$0xff] }
 0x38e   :  { %2045 = vmatpush.bf16.msrb.mxu2 %v2037_v51  ;;  %v6832_v42 = vpop.xlane.xlu2 %1768 }
 0x391   :  { %v865_v51 = vpop.xlane.xlu0 %864 }
 0x392   :  { %5218 = vmatpush.bf16.xpose.msra.mxu3 %v9217_v63  ;;  %2979 = vrot.lane.b32.xlu1 %v5958_v62, %s5667_s2 }
 0x393   :  { %2046 = vmatpush.bf16.msrb.mxu2 %v9218_v34 }
 0x394   :  { %2899 = vrot.lane.b32.xlu2 %v9219_v50, %s5667_s2 }
 0x395   :  { %3207 = vrot.lane.b32.xlu0 %v9197_v35, %s5668_s28 }
 0x396   :  { %v862_v33 = vpop.xlane.xlu2 %861 }
 0x397   :  { %5352 = vrcp.f32 %v862_v33 }
 0x398   :  { %5354 = vrcp.f32 %v865_v51 }
 0x39a   :  { %3057 = vrot.lane.b32.xlu1 %v6036_v9, %s5667_s2 }
 0x39c   :  { %2977 = vrot.lane.b32.xlu2 %v5945_v53, %s5667_s2 }
 0x39d   :  { %v5353_v31 = vpop.eup %5352  ;;  %5114 = vmatmul.msk.bf16.gmra.mxu2 %vm330_vm1, %v9220_v23 }
 0x39e   :  { %v916_v2 = vmul.f32 %v5353_v31, %v6710_v59  ;;  %v6864_v59 = vpop.xlane.xlu1 %1771  ;;  %v6912_v63 = vpop.permute.xlu2 %2409 }
 0x39f   :  { %v5355_v23 = vpop.eup %5354 }
 0x3a0   :  { %v6849_v6 = vpop.f32.mrf.mxu2  ;;  %v940_v11 = vpack.c.bf16 %v916_v2, %v916_v2  ;;  %v9239_v2 = vld [vmem:[#allocation17_spill] sm:$0xff]  ;;  %v917_v45 = vmul.f32 %v5355_v23, %v6695_v20  ;;  %v9246_v23 = vld [vmem:[#allocation42_spill] sm:$0xff] }
 0x3a1   :  { %9221 = vst [vmem:[#allocation6_spill] sm:$0xff] %v6849_v6 }
 0x3a2   :  { %3091 = vrot.lane.b32.xlu1 %v5776_v26, %s5669_s29  ;;  %v1190_v30 = vunpack.c.l.b16 %v940_v11  ;;  %v1917_v11 = vsel %vm963_vm2, %v9239_v2, 0  ;;  %v941_v1 = vpack.c.bf16 %v917_v45, %v917_v45  ;;  %v2077_v45 = vsel %vm963_vm2, %v9246_v23, 0 }
 0x3a4   :  { %3019 = vrot.lane.b32.xlu2 %v6021_v55, %s5667_s2  ;;  %v1192_v17 = vpack.c.b16 %v1190_v30, %v1190_v30  ;;  %v9240_v30 = vld [vmem:[#allocation29_spill] sm:$0xff]  ;;  %v1228_v51 = vunpack.c.l.b16 %v941_v1 }
 0x3a6   :  { %5102 = vmatmul.msk.bf16.gmra.mxu3 %vm655_vm3, %v1192_v17  ;;  %v6878_v13 = vpop.permute.xlu1 %2407  ;;  %v6922_v17 = vpop.permute.xlu2 %2445 }
 0x3a7   :  { %9228 = vst [vmem:[#allocation13_spill] sm:$0xff] %v6878_v13 }
 0x3a8   :  { %v6856_v46 = vpop.f32.mrf.mxu2  ;;  %v6858_v49 = vpop.f32.mrf.mxu3  ;;  %9241 = vst [vmem:[#allocation41_spill] sm:$0xff] %v6922_v17 }
 0x3a9   :  { %9222 = vst [vmem:[#allocation22_spill] sm:$0xff] %v6856_v46 }
 0x3aa   :  { %9223 = vst [vmem:[#allocation8_spill] sm:$0xff] %v6858_v49  ;;  %3127 = vrot.lane.b32.xlu1 %v9207_v15, %s5669_s29  ;;  %v9271_v49 = vld [vmem:[#allocation51_spill] sm:$0xff] }
 0x3ac   :  { %3089 = vrot.lane.b32.xlu2 %v9206_v14, %s5669_s29 }
 0x3ae   :  { %v6894_v25 = vpop.permute.xlu1 %2443 }
 0x3af   :  { %9233 = vst [vmem:[#allocation38_spill] sm:$0xff] %v6894_v25  ;;  %v9280_v25 = vld [vmem:[#allocation56_spill] sm:$0xff] }
 0x3b0   :  { %v6866_v3 = vpop.f32.mrf.mxu2  ;;  %v6868_v60 = vpop.f32.mrf.mxu3 }
 0x3b1   :  { %9224 = vst [vmem:[#allocation7_spill] sm:$0xff] %v6866_v3  ;;  %v9270_v3 = vld [vmem:[#allocation72_spill] sm:$0xff] }
 0x3b2   :  { %9225 = vst [vmem:[#allocation27_spill] sm:$0xff] %v6868_v60  ;;  %3133 = vrot.lane.b32.xlu1 %v5805_v41, %s5668_s28 }
 0x3b4   :  { %3095 = vrot.lane.b32.xlu2 %v5776_v26, %s5668_s28 }
 0x3b6   :  { %5107 = vmatmul.msk.bf16.vlgmr.msrb.gmra.mxu3 %vm330_vm1, %v9227_v22  ;;  %v6908_v0 = vpop.permute.xlu1 %2449 }
 0x3b7   :  { %1481 = vmatpush.bf16.xpose.msrb.mxu3 %v1473_v48  ;;  %9237 = vst [vmem:[#allocation44_spill] sm:$0xff] %v6908_v0 }
 0x3b8   :  { %v1063_v58 = vpop.f32.mrf.mxu2  ;;  %v6880_v61 = vpop.f32.mrf.mxu3 }
 0x3b9   :  { %9229 = vst [vmem:[#allocation33_spill] sm:$0xff] %v6880_v61  ;;  %v9243_v58 = vld [vmem:[#allocation26_spill] sm:$0xff] }
 0x3ba   :  { %3169 = vrot.lane.b32.xlu1 %v9212_v47, %s5668_s28  ;;  %v6886_v52 = vpop.f32.mrf.mxu1 }
 0x3bb   :  { %9231 = vst [vmem:[#allocation30_spill] sm:$0xff] %v6886_v52 }
 0x3bc   :  { %3131 = vrot.lane.b32.xlu2 %v9207_v15, %s5668_s28 }
 0x3bf   :  { %1482 = vmatpush.bf16.xpose.msrb.mxu3 %v1470_v43 }
 0x3c0   :  { %v1103_v54 = vpop.f32.mrf.mxu3 }
 0x3c2   :  { %3205 = vrot.lane.b32.xlu1 %v9219_v50, %s5669_s29  ;;  %v6898_v44 = vpop.f32.mrf.mxu1 }
 0x3c3   :  { %9234 = vst [vmem:[#allocation11_spill] sm:$0xff] %v6898_v44 }
 0x3c4   :  { %3167 = vrot.lane.b32.xlu2 %v9210_v56, %s5669_s29 }
 0x3c6   :  { %5108 = vmatmul.msk.bf16.gmra.mxu3 %vm330_vm1, %v9235_v5 }
 0x3c9   :  { %v6914_v34 = vpop.f32.mrf.mxu2 }
 0x3ca   :  { %3241 = vrot.lane.b32.xlu1 %v9214_v27, %s5669_s29  ;;  %v6906_v24 = vpop.f32.mrf.mxu1  ;;  %9238 = vst [vmem:[#allocation24_spill] sm:$0xff] %v6914_v34 }
 0x3cb   :  { %9236 = vst [vmem:[#allocation32_spill] sm:$0xff] %v6906_v24 }
 0x3cc   :  { %3203 = vrot.lane.b32.xlu2 %v9197_v35, %s5669_s29 }
 0x3d1   :  { %v6925_v48 = vpop.f32.mrf.mxu2 }
 0x3d2   :  { %v1143_v33 = vpop.f32.mrf.mxu1  ;;  %9242 = vst [vmem:[#allocation16_spill] sm:$0xff] %v6925_v48 }
 0x3d4   :  { %v868_v31 = vpop.xlane.xlu1 %867  ;;  %3209 = vrot.lane.b32.xlu2 %v9219_v50, %s5668_s28 }
 0x3d5   :  { %5356 = vrcp.f32 %v868_v31 }
 0x3d6   :  { %5110 = vmatmul.msk.bf16.vlgmr.msra.gmra.mxu3 %vm330_vm1, %v9240_v30  ;;  %v9245_v30 = vld [vmem:[#allocation80_spill] sm:$0xff] }
 0x3d7   :  { %1925 = vmatpush.bf16.msra.mxu3 %v1917_v11  ;;  %v1549_v11 = vsel %vm330_vm1, %v9245_v30, 0  ;;  %v9250_v30 = vld [vmem:[#allocation40_spill] sm:$0xff] }
 0x3db   :  { %v5357_v22 = vpop.eup %5356  ;;  %1926 = vmatpush.bf16.msra.mxu3 %v9243_v58  ;;  %v9247_v58 = vld [vmem:[#allocation35_spill] sm:$0xff] }
 0x3dc   :  { %v918_v43 = vmul.f32 %v5357_v22, %v6772_v19 }
 0x3de   :  { %v942_v54 = vpack.c.bf16 %v918_v43, %v918_v43  ;;  %v9248_v43 = vld [vmem:[#allocation43_spill] sm:$0xff] }
 0x3df   :  { %v871_v5 = vpop.xlane.xlu2 %870 }
 0x3e0   :  { %v1229_v33 = vunpack.c.l.b16 %v942_v54  ;;  %5358 = vrcp.f32 %v871_v5  ;;  %v6929_v31 = vpop.f32.mrf.mxu2  ;;  %v9249_v54 = vld [vmem:[#allocation55_spill] sm:$0xff] }
 0x3e1   :  { %9244 = vst [vmem:[#allocation17_spill] sm:$0xff] %v6929_v31  ;;  %v1546_v5 = vsel %vm330_vm1, %v9249_v54, 0  ;;  %v6969_v31 = vpop.permute.xlu0 %2405 }
 0x3e2   :  { %v1231_v2 = vpack.c.b16 %v1229_v33, %v1228_v51  ;;  %9259 = vst [vmem:[#allocation26_spill] sm:$0xff] %v6969_v31 }
 0x3e4   :  { %5103 = vmatmul.msk.bf16.vlgmr.msrb.gmra.mxu1 %vm655_vm3, %v1231_v2 }
 0x3e5   :  { %1557 = vmatpush.bf16.xpose.msrb.mxu1 %v1549_v11  ;;  %v9251_v11 = vld [vmem:[#allocation46_spill] sm:$0xff] }
 0x3e6   :  { %v5359_v20 = vpop.eup %5358  ;;  %5115 = vmatmul.msk.bf16.vlgmr.msrb.gmra.mxu3 %vm330_vm1, %v9247_v58 }
 0x3e7   :  { %2085 = vmatpush.bf16.msrb.mxu3 %v2077_v45  ;;  %v919_v19 = vmul.f32 %v5359_v20, %v6783_v29  ;;  %v9252_v20 = vld [vmem:[#allocation45_spill] sm:$0xff]  ;;  %v6982_v37 = vpop.permute.xlu2 %2777 }
 0x3e8   :  { %v1183_v22 = vpop.f32.mrf.mxu2 }
 0x3e9   :  { %v943_v1 = vpack.c.bf16 %v919_v19, %v919_v19 }
 0x3eb   :  { %2086 = vmatpush.bf16.msrb.mxu3 %v9248_v43  ;;  %v1230_v51 = vunpack.c.l.b16 %v943_v1  ;;  %v9253_v1 = vld [vmem:[#allocation47_spill] sm:$0xff] }
 0x3ec   :  { %v6986_v60 = vpop.permute.xlu1 %2817 }
 0x3ed   :  { %1558 = vmatpush.bf16.xpose.msrb.mxu1 %v1546_v5  ;;  %v1232_v2 = vpack.c.b16 %v1230_v51, %v1230_v51  ;;  %v9254_v5 = vld [vmem:[#allocation36_spill] sm:$0xff]  ;;  %9266 = vst [vmem:[#allocation43_spill] sm:$0xff] %v6986_v60 }
 0x3ee   :  { %v1997_v51 = vsel %vm963_vm2, %v9254_v5, 0  ;;  %v9261_v5 = vld [vmem:[#allocation74_spill] sm:$0xff] }
 0x3f0   :  { %v1294_v33 = vpop.f32.mrf.mxu2 }
 0x3f1   :  { %v6946_v23 = vadd.f32 %v1294_v33, %v9251_v11  ;;  %v9255_v33 = vld [vmem:[#allocation31_spill] sm:$0xff] }
 0x3f3   :  { %v1569_v19 = vsel %vm655_vm3, %v6946_v23, -inf }
 0x3f4   :  { %5104 = vmatmul.msk.bf16.gmra.mxu1 %vm655_vm3, %v1232_v2 }
 0x3f6   :  { %5116 = vmatmul.msk.bf16.gmra.mxu3 %vm330_vm1, %v9250_v30  ;;  %v9256_v30 = vld [vmem:[#allocation28_spill] sm:$0xff] }
 0x3f8   :  { %v1296_v29 = vpop.f32.mrf.mxu2 }
 0x3f9   :  { %v6949_v45 = vadd.f32 %v1296_v29, %v9252_v20 }
 0x3fb   :  { %v1572_v58 = vsel %vm655_vm3, %v6949_v45, -inf }
 0x3fc   :  { %1573 = vmax.xlane.f32.xlu1 %v1572_v58  ;;  %v9257_v58 = vld [vmem:[#allocation34_spill] sm:$0xff] }
 0x3fd   :  { %1570 = vmax.xlane.f32.xlu2 %v1569_v19 }
 0x400   :  { %v1299_v22 = vpop.f32.mrf.mxu2 }
 0x401   :  { %v6956_v43 = vadd.f32 %v1299_v22, %v9253_v1 }
 0x403   :  { %v1575_v54 = vsel %vm655_vm3, %v6956_v43, -inf }
 0x404   :  { %5111 = vmatmul.msk.bf16.vlgmr.msra.gmra.mxu1 %vm330_vm1, %v9255_v33  ;;  %1576 = vmax.xlane.f32.xlu0 %v1575_v54  ;;  %v2157_v33 = vsel %vm963_vm2, %v9261_v5, 0  ;;  %v9262_v54 = vld [vmem:[#allocation50_spill] sm:$0xff]  ;;  %v6990_v5 = vpop.permute.xlu2 %2857 }
 0x405   :  { %2005 = vmatpush.bf16.msra.mxu1 %v1997_v51  ;;  %v6977_v51 = vpop.permute.xlu0 %2411 }
 0x408   :  { %v1301_v2 = vpop.f32.mrf.mxu2 }
 0x409   :  { %2006 = vmatpush.bf16.msra.mxu1 %v9256_v30  ;;  %v9263_v30 = vld [vmem:[#allocation57_spill] sm:$0xff] }
 0x40c   :  { %v6967_v19 = vpop.f32.mrf.mxu3 }
 0x40d   :  { %9258 = vst [vmem:[#allocation29_spill] sm:$0xff] %v6967_v19  ;;  %v6984_v61 = vpop.permute.xlu0 %2447 }
 0x40e   :  { %9265 = vst [vmem:[#allocation35_spill] sm:$0xff] %v6984_v61 }
 0x410   :  { %v1446_v29 = vpop.f32.mrf.mxu2 }
 0x411   :  { %v7004_v28 = vadd.f32 %v1446_v29, %v9270_v3 }
 0x413   :  { %v1605_v6 = vsel %vm655_vm3, %v7004_v28, -inf }
 0x414   :  { %5112 = vmatmul.msk.bf16.gmra.mxu1 %vm330_vm1, %v9257_v58  ;;  %v6971_v24 = vpop.f32.mrf.mxu3 }
 0x415   :  { %9260 = vst [vmem:[#allocation80_spill] sm:$0xff] %v6971_v24 }
 0x418   :  { %v1448_v22 = vpop.f32.mrf.mxu2 }
 0x419   :  { %v7018_v24 = vadd.f32 %v1448_v22, %v9273_v7 }
 0x420   :  { %v1451_v34 = vpop.f32.mrf.mxu2 }
 0x424   :  { %5119 = vmatmul.msk.bf16.vlgmr.msrb.gmra.mxu1 %vm330_vm1, %v9262_v54  ;;  %v9268_v54 = vld [vmem:[#allocation49_spill] sm:$0xff] }
 0x425   :  { %2165 = vmatpush.bf16.msrb.mxu1 %v2157_v33 }
 0x428   :  { %v1453_v2 = vpop.f32.mrf.mxu2 }
 0x429   :  { %2166 = vmatpush.bf16.msrb.mxu1 %v9263_v30  ;;  %v6980_v58 = vpop.f32.mrf.mxu3  ;;  %v6995_v2 = vpop.permute.xlu0 %2779 }
 0x42a   :  { %9264 = vst [vmem:[#allocation42_spill] sm:$0xff] %v6980_v58  ;;  %v7001_v58 = vpop.permute.xlu2 %2899 }
 0x42b   :  { %9269 = vst [vmem:[#allocation55_spill] sm:$0xff] %v7001_v58 }
 0x431   :  { %v1223_v12 = vpop.f32.mrf.mxu3 }
 0x432   :  { %v6999_v12 = vpop.permute.xlu1 %2859  ;;  %v7020_v48 = vpop.permute.xlu2 %2977 }
 0x433   :  { %9274 = vst [vmem:[#allocation36_spill] sm:$0xff] %v7020_v48 }
 0x434   :  { %5120 = vmatmul.msk.bf16.gmra.mxu1 %vm330_vm1, %v9267_v18 }
 0x439   :  { %v1332_v33 = vpop.f32.mrf.mxu3 }
 0x43a   :  { %v6993_v52 = vadd.f32 %v1332_v33, %v9268_v54  ;;  %v7015_v8 = vpop.permute.xlu1 %2937  ;;  %v7036_v7 = vpop.permute.xlu2 %3019 }
 0x43b   :  { %9279 = vst [vmem:[#allocation34_spill] sm:$0xff] %v7036_v7 }
 0x43c   :  { %v1578_v30 = vsel %vm655_vm3, %v6993_v52, -inf }
 0x43d   :  { %1579 = vmax.xlane.f32.xlu2 %v1578_v30  ;;  %v7013_v30 = vpop.permute.xlu0 %2819 }
 0x43e   :  { %9272 = vst [vmem:[#allocation40_spill] sm:$0xff] %v7013_v30  ;;  %v9310_v30 = vld [vmem:[#allocation85_spill] sm:$0xff] }
 0x441   :  { %v1334_v18 = vpop.f32.mrf.mxu3 }
 0x442   :  { %v7007_v46 = vadd.f32 %v1334_v18, %v9271_v49  ;;  %v9275_v18 = vld [vmem:[#allocation54_spill] sm:$0xff]  ;;  %v9277_v49 = vld [vmem:[#allocation79_spill] sm:$0xff]  ;;  %v7034_v17 = vpop.permute.xlu1 %2979 }
 0x443   :  { %v7032_v54 = vadd.f32 %v1451_v34, %v9277_v49  ;;  %9278 = vst [vmem:[#allocation28_spill] sm:$0xff] %v7034_v17 }
 0x444   :  { %v1581_v33 = vsel %vm655_vm3, %v7007_v46, -inf }
 0x445   :  { %1582 = vmax.xlane.f32.xlu1 %v1581_v33  ;;  %1606 = vmax.xlane.f32.xlu2 %v1605_v6  ;;  %v1608_v33 = vsel %vm655_vm3, %v7018_v24, -inf  ;;  %v7029_v6 = vpop.permute.xlu0 %2897 }
 0x446   :  { %9276 = vst [vmem:[#allocation31_spill] sm:$0xff] %v7029_v6 }
 0x449   :  { %v1337_v29 = vpop.f32.mrf.mxu3 }
 0x44a   :  { %v7023_v44 = vadd.f32 %v1337_v29, %v9275_v18  ;;  %v1611_v29 = vsel %vm655_vm3, %v7032_v54, -inf }
 0x44c   :  { %v1584_v19 = vsel %vm655_vm3, %v7023_v44, -inf }
 0x44d   :  { %1585 = vmax.xlane.f32.xlu0 %v1584_v19  ;;  %1609 = vmax.xlane.f32.xlu1 %v1608_v33  ;;  %v7040_v3 = vpop.permute.xlu0 %2939  ;;  %v7045_v33 = vpop.permute.xlu1 %3057 }
 0x44e   :  { %9281 = vst [vmem:[#allocation74_spill] sm:$0xff] %v7045_v33 }
 0x451   :  { %v1339_v22 = vpop.f32.mrf.mxu3 }
 0x452   :  { %v7049_v22 = vpop.permute.xlu2 %3089 }
 0x453   :  { %9282 = vst [vmem:[#allocation50_spill] sm:$0xff] %v7049_v22 }
 0x455   :  { %1612 = vmax.xlane.f32.xlu0 %v1611_v29  ;;  %v7053_v20 = vpop.permute.xlu0 %3017  ;;  %v7055_v29 = vpop.permute.xlu1 %3091 }
 0x456   :  { %9284 = vst [vmem:[#allocation70_spill] sm:$0xff] %v7053_v20 }
 0x457   :  { %9285 = vst [vmem:[#allocation88_spill] sm:$0xff] %v7055_v29 }
 0x459   :  { %v1375_v18 = vpop.f32.mrf.mxu3 }
 0x45a   :  { %v7043_v19 = vadd.f32 %v1375_v18, %v9280_v25  ;;  %v7057_v6 = vpop.permute.xlu2 %3095 }
 0x45b   :  { %9286 = vst [vmem:[#allocation89_spill] sm:$0xff] %v7057_v6 }
 0x45c   :  { %v1593_v34 = vsel %vm655_vm3, %v7043_v19, -inf }
 0x45d   :  { %1594 = vmax.xlane.f32.xlu0 %v1593_v34  ;;  %v7061_v25 = vpop.permute.xlu0 %3059  ;;  %v7063_v33 = vpop.permute.xlu1 %3127 }
 0x45e   :  { %9288 = vst [vmem:[#allocation91_spill] sm:$0xff] %v7061_v25  ;;  %v9296_v25 = vld [vmem:[#allocation59_spill] sm:$0xff] }
 0x45f   :  { %9289 = vst [vmem:[#allocation92_spill] sm:$0xff] %v7063_v33 }
 0x461   :  { %v7051_v49 = vpop.f32.mrf.mxu1  ;;  %v1377_v1 = vpop.f32.mrf.mxu3 }
 0x462   :  { %9283 = vst [vmem:[#allocation57_spill] sm:$0xff] %v7051_v49  ;;  %v7067_v22 = vpop.permute.xlu2 %3131 }
 0x463   :  { %9291 = vst [vmem:[#allocation94_spill] sm:$0xff] %v7067_v22 }
 0x465   :  { %v7069_v49 = vpop.permute.xlu0 %3093  ;;  %v7071_v61 = vpop.permute.xlu1 %3133 }
 0x466   :  { %9292 = vst [vmem:[#allocation95_spill] sm:$0xff] %v7069_v49 }
 0x467   :  { %9293 = vst [vmem:[#allocation96_spill] sm:$0xff] %v7071_v61 }
 0x469   :  { %v7059_v11 = vpop.f32.mrf.mxu1  ;;  %v1484_v18 = vpop.f32.mrf.mxu3 }
 0x46a   :  { %9287 = vst [vmem:[#allocation90_spill] sm:$0xff] %v7059_v11  ;;  %v7073_v29 = vpop.permute.xlu2 %3167 }
 0x46b   :  { %9294 = vst [vmem:[#allocation97_spill] sm:$0xff] %v7073_v29  ;;  %v9300_v29 = vld [vmem:[#allocation61_spill] sm:$0xff] }
 0x46d   :  { %v7075_v48 = vpop.permute.xlu0 %3129  ;;  %v7080_v33 = vpop.permute.xlu1 %3169 }
 0x46e   :  { %9295 = vst [vmem:[#allocation98_spill] sm:$0xff] %v7075_v48 }
 0x46f   :  { %9297 = vst [vmem:[#allocation99_spill] sm:$0xff] %v7080_v33 }
 0x471   :  { %v7065_v58 = vpop.f32.mrf.mxu1  ;;  %v1486_v34 = vpop.f32.mrf.mxu3 }
 0x472   :  { %9290 = vst [vmem:[#allocation93_spill] sm:$0xff] %v7065_v58  ;;  %v7084_v22 = vpop.permute.xlu2 %3203 }
 0x473   :  { %9298 = vst [vmem:[#allocation100_spill] sm:$0xff] %v7084_v22 }
 0x479   :  { %v1263_v1 = vpop.f32.mrf.mxu1  ;;  %v1489_v4 = vpop.f32.mrf.mxu3 }
 0x47a   :  { %v9299_v1 = vld [vmem:[#allocation75_spill] sm:$0xff]  ;;  %v7100_v22 = vpop.permute.xlu2 %3209 }
 0x47b   :  { %v7087_v49 = vadd.f32 %v1484_v18, %v9299_v1  ;;  %9303 = vst [vmem:[#allocation103_spill] sm:$0xff] %v7100_v22  ;;  %v9304_v18 = vld [vmem:[#allocation78_spill] sm:$0xff] }
 0x47c   :  { %v7103_v33 = vadd.f32 %v1486_v34, %v9304_v18  ;;  %v9308_v22 = vld [vmem:[#allocation82_spill] sm:$0xff] }
 0x47d   :  { %v1614_v48 = vsel %vm655_vm3, %v7087_v49, -inf  ;;  %v7117_v34 = vadd.f32 %v1489_v4, %v9308_v22 }
 0x481   :  { %v1408_v6 = vpop.f32.mrf.mxu1  ;;  %v1491_v11 = vpop.f32.mrf.mxu3 }
 0x482   :  { %v7078_v0 = vadd.f32 %v1408_v6, %v9296_v25  ;;  %v7092_v11 = vpop.permute.xlu0 %3165  ;;  %v1617_v25 = vsel %vm655_vm3, %v7103_v33, -inf }
 0x483   :  { %9301 = vst [vmem:[#allocation101_spill] sm:$0xff] %v7092_v11 }
 0x484   :  { %v1596_v58 = vsel %vm655_vm3, %v7078_v0, -inf }
 0x485   :  { %1597 = vmax.xlane.f32.xlu2 %v1596_v58  ;;  %v7098_v58 = vpop.permute.xlu1 %3205 }
 0x486   :  { %9302 = vst [vmem:[#allocation102_spill] sm:$0xff] %v7098_v58  ;;  %v1571_v58 = vpop.xlane.xlu2 %1570 }
 0x489   :  { %v1410_v61 = vpop.f32.mrf.mxu1 }
 0x48a   :  { %v7090_v17 = vadd.f32 %v1410_v61, %v9300_v29  ;;  %v9305_v61 = vld [vmem:[#allocation64_spill] sm:$0xff] }
 0x48c   :  { %v1599_v6 = vsel %vm655_vm3, %v7090_v17, -inf }
 0x48d   :  { %1600 = vmax.xlane.f32.xlu1 %v1599_v6  ;;  %1615 = vmax.xlane.f32.xlu2 %v1614_v48  ;;  %v7112_v48 = vpop.permute.xlu0 %3171  ;;  %v7114_v6 = vpop.permute.xlu1 %3241 }
 0x48e   :  { %9306 = vst [vmem:[#allocation104_spill] sm:$0xff] %v7112_v48 }
 0x48f   :  { %9307 = vst [vmem:[#allocation105_spill] sm:$0xff] %v7114_v6 }
 0x491   :  { %v1413_v1 = vpop.f32.mrf.mxu1 }
 0x492   :  { %v7106_v29 = vadd.f32 %v1413_v1, %v9305_v61  ;;  %v1641_v1 = vsub.f32 %v6946_v23, %v1571_v58  ;;  %v1620_v61 = vsel %vm655_vm3, %v7117_v34, -inf }
 0x494   :  { %v1602_v11 = vsel %vm655_vm3, %v7106_v29, -inf  ;;  %v1665_v13 = vmul.f32 1.442695, %v1641_v1  ;;  %v9311_v1 = vld [vmem:[#allocation86_spill] sm:$0xff] }
 0x495   :  { %1603 = vmax.xlane.f32.xlu0 %v1602_v11  ;;  %1618 = vmax.xlane.f32.xlu1 %v1617_v25  ;;  %v7122_v60 = vpop.permute.xlu0 %3207  ;;  %v1574_v11 = vpop.xlane.xlu1 %1573 }
 0x496   :  { %9309 = vst [vmem:[#allocation106_spill] sm:$0xff] %v7122_v60  ;;  %v1642_v6 = vsub.f32 %v6949_v45, %v1574_v11  ;;  %5360 = vpow2.f32 %v1665_v13 }
 0x498   :  { %v1667_v23 = vmul.f32 1.442695, %v1642_v6 }
 0x499   :  { %v1415_v18 = vpop.f32.mrf.mxu1 }
 0x49a   :  { %5362 = vpow2.f32 %v1667_v23 }
 0x49c   :  { %v7130_v18 = vpop.eup %5360 }
 0x49d   :  { %1621 = vmax.xlane.f32.xlu0 %v1620_v61  ;;  %v1577_v58 = vpop.xlane.xlu0 %1576  ;;  %v1713_v13 = vsel %vm655_vm3, %v7130_v18, 0.0 }
 0x49e   :  { %v1643_v60 = vsub.f32 %v6956_v43, %v1577_v58 }
 0x4a0   :  { %v1669_v45 = vmul.f32 1.442695, %v1643_v60  ;;  %v7140_v11 = vpop.eup %5362 }
 0x4a1   :  { %v1560_v25 = vpop.f32.mrf.mxu1  ;;  %v1716_v58 = vsel %vm655_vm3, %v7140_v11, 0.0 }
 0x4a2   :  { %v7125_v48 = vadd.f32 %v1560_v25, %v9310_v30  ;;  %5364 = vpow2.f32 %v1669_v45 }
 0x4a4   :  { %v1632_v4 = vsel %vm655_vm3, %v7125_v48, -inf }
 0x4a5   :  { %1633 = vmax.xlane.f32.xlu2 %v1632_v4 }
 0x4a9   :  { %v1562_v61 = vpop.f32.mrf.mxu1 }
 0x4aa   :  { %v7133_v22 = vadd.f32 %v1562_v61, %v9311_v1  ;;  %v9312_v61 = vld [vmem:[#allocation87_spill] sm:$0xff] }
 0x4ac   :  { %v1635_v25 = vsel %vm655_vm3, %v7133_v22, -inf }
 0x4ad   :  { %1636 = vmax.xlane.f32.xlu1 %v1635_v25  ;;  %1714 = vadd.xlane.f32.xlu2 %v1713_v13  ;;  %v7150_v13 = vpop.eup %5364 }
 0x4ae   :  { %v1719_v20 = vsel %vm655_vm3, %v7150_v13, 0.0 }
 0x4b0   :  { %v1580_v6 = vpop.xlane.xlu2 %1579 }
 0x4b1   :  { %v1644_v4 = vsub.f32 %v6993_v52, %v1580_v6  ;;  %v1565_v30 = vpop.f32.mrf.mxu1 }
 0x4b2   :  { %v7144_v1 = vadd.f32 %v1565_v30, %v9312_v61 }
 0x4b3   :  { %v1671_v43 = vmul.f32 1.442695, %v1644_v4 }
 0x4b4   :  { %v1638_v23 = vsel %vm655_vm3, %v7144_v1, -inf }
 0x4b5   :  { %5366 = vpow2.f32 %v1671_v43  ;;  %1639 = vmax.xlane.f32.xlu0 %v1638_v23  ;;  %1717 = vadd.xlane.f32.xlu1 %v1716_v58 }
 0x4b8   :  { %v1583_v60 = vpop.xlane.xlu1 %1582  ;;  %v1607_v25 = vpop.xlane.xlu2 %1606 }
 0x4b9   :  { %v1645_v52 = vsub.f32 %v7007_v46, %v1583_v60  ;;  %v1653_v30 = vsub.f32 %v7004_v28, %v1607_v25  ;;  %v1567_v6 = vpop.f32.mrf.mxu1 }
 0x4bb   :  { %v7154_v45 = vpop.eup %5366  ;;  %v1673_v4 = vmul.f32 1.442695, %v1645_v52  ;;  %v1689_v61 = vmul.f32 1.442695, %v1653_v30 }
 0x4bc   :  { %v1722_v43 = vsel %vm655_vm3, %v7154_v45, 0.0 }
 0x4bd   :  { %5368 = vpow2.f32 %v1673_v4  ;;  %1720 = vadd.xlane.f32.xlu0 %v1719_v20  ;;  %1723 = vadd.xlane.f32.xlu2 %v1722_v43 }
 0x4be   :  { %5370 = vpow2.f32 %v1689_v61 }
 0x4c0   :  { %v1610_v23 = vpop.xlane.xlu1 %1609  ;;  %v1586_v58 = vpop.xlane.xlu0 %1585 }
 0x4c1   :  { %v1654_v46 = vsub.f32 %v7018_v24, %v1610_v23  ;;  %v1646_v28 = vsub.f32 %v7023_v44, %v1586_v58 }
 0x4c3   :  { %v7162_v60 = vpop.eup %5368  ;;  %v1691_v25 = vmul.f32 1.442695, %v1654_v46  ;;  %v1675_v52 = vmul.f32 1.442695, %v1646_v28 }
 0x4c4   :  { %v7164_v30 = vpop.eup %5370  ;;  %v1725_v6 = vsel %vm655_vm3, %v7162_v60, 0.0 }
 0x4c5   :  { %5372 = vpow2.f32 %v1691_v25  ;;  %1726 = vadd.xlane.f32.xlu1 %v1725_v6  ;;  %v1749_v20 = vsel %vm655_vm3, %v7164_v30, 0.0 }
 0x4c6   :  { %5374 = vpow2.f32 %v1675_v52  ;;  %1750 = vadd.xlane.f32.xlu2 %v1749_v20 }
 0x4c8   :  { %v1613_v61 = vpop.xlane.xlu0 %1612 }
 0x4c9   :  { %v1655_v24 = vsub.f32 %v7032_v54, %v1613_v61 }
 0x4cb   :  { %v7171_v44 = vpop.eup %5372  ;;  %v1693_v4 = vmul.f32 1.442695, %v1655_v24 }
 0x4cc   :  { %v7173_v43 = vpop.eup %5374  ;;  %v1752_v23 = vsel %vm655_vm3, %v7171_v44, 0.0 }
 0x4cd   :  { %5376 = vpow2.f32 %v1693_v4  ;;  %1753 = vadd.xlane.f32.xlu1 %v1752_v23  ;;  %v1728_v58 = vsel %vm655_vm3, %v7173_v43, 0.0 }
 0x4ce   :  { %1729 = vadd.xlane.f32.xlu0 %v1728_v58 }
 0x4d0   :  { %v1595_v46 = vpop.xlane.xlu0 %1594 }
 0x4d1   :  { %v1649_v28 = vsub.f32 %v7043_v19, %v1595_v46 }
 0x4d3   :  { %v7180_v25 = vpop.eup %5376  ;;  %v1681_v54 = vmul.f32 1.442695, %v1649_v28 }
 0x4d4   :  { %v1755_v52 = vsel %vm655_vm3, %v7180_v25, 0.0 }
 0x4d5   :  { %5378 = vpow2.f32 %v1681_v54 }
 0x4d6   :  { %1756 = vadd.xlane.f32.xlu0 %v1755_v52 }
 0x4db   :  { %v7184_v6 = vpop.eup %5378 }
 0x4dc   :  { %v1737_v20 = vsel %vm655_vm3, %v7184_v6, 0.0 }
 0x4de   :  { %1738 = vadd.xlane.f32.xlu0 %v1737_v20 }
 0x4f8   :  { %v1598_v61 = vpop.xlane.xlu2 %1597 }
 0x4f9   :  { %v1650_v24 = vsub.f32 %v7078_v0, %v1598_v61 }
 0x4fb   :  { %v1683_v4 = vmul.f32 1.442695, %v1650_v24 }
 0x4fd   :  { %5380 = vpow2.f32 %v1683_v4 }
 0x500   :  { %v1601_v19 = vpop.xlane.xlu1 %1600  ;;  %v1616_v23 = vpop.xlane.xlu2 %1615 }
 0x501   :  { %v1651_v58 = vsub.f32 %v7090_v17, %v1601_v19  ;;  %v1656_v46 = vsub.f32 %v7087_v49, %v1616_v23 }
 0x503   :  { %v7191_v28 = vpop.eup %5380  ;;  %v1685_v54 = vmul.f32 1.442695, %v1651_v58  ;;  %v1695_v52 = vmul.f32 1.442695, %v1656_v46 }
 0x504   :  { %v1740_v31 = vsel %vm655_vm3, %v7191_v28, 0.0 }
 0x505   :  { %5382 = vpow2.f32 %v1685_v54  ;;  %1741 = vadd.xlane.f32.xlu2 %v1740_v31 }
 0x506   :  { %5384 = vpow2.f32 %v1695_v52 }
 0x508   :  { %v1619_v20 = vpop.xlane.xlu1 %1618  ;;  %v1604_v0 = vpop.xlane.xlu0 %1603 }
 0x509   :  { %v1657_v61 = vsub.f32 %v7103_v33, %v1619_v20  ;;  %v1652_v24 = vsub.f32 %v7106_v29, %v1604_v0 }
 0x50b   :  { %v7197_v4 = vpop.eup %5382  ;;  %v1697_v17 = vmul.f32 1.442695, %v1657_v61  ;;  %v1687_v49 = vmul.f32 1.442695, %v1652_v24 }
 0x50c   :  { %v7199_v19 = vpop.eup %5384  ;;  %v1743_v23 = vsel %vm655_vm3, %v7197_v4, 0.0 }
 0x50d   :  { %5386 = vpow2.f32 %v1697_v17  ;;  %1744 = vadd.xlane.f32.xlu1 %v1743_v23  ;;  %v1758_v31 = vsel %vm655_vm3, %v7199_v19, 0.0 }
 0x50e   :  { %5388 = vpow2.f32 %v1687_v49  ;;  %1759 = vadd.xlane.f32.xlu2 %v1758_v31 }
 0x510   :  { %v1622_v58 = vpop.xlane.xlu0 %1621 }
 0x511   :  { %v1658_v33 = vsub.f32 %v7117_v34, %v1622_v58 }
 0x513   :  { %v7206_v29 = vpop.eup %5386  ;;  %v1699_v46 = vmul.f32 1.442695, %v1658_v33 }
 0x514   :  { %v7208_v54 = vpop.eup %5388  ;;  %v1761_v52 = vsel %vm655_vm3, %v7206_v29, 0.0 }
 0x515   :  { %5390 = vpow2.f32 %v1699_v46  ;;  %1762 = vadd.xlane.f32.xlu1 %v1761_v52  ;;  %v1746_v20 = vsel %vm655_vm3, %v7208_v54, 0.0 }
 0x516   :  { %1747 = vadd.xlane.f32.xlu0 %v1746_v20 }
 0x518   :  { %v1634_v0 = vpop.xlane.xlu2 %1633 }
 0x519   :  { %v1662_v61 = vsub.f32 %v7125_v48, %v1634_v0 }
 0x51b   :  { %v7215_v24 = vpop.eup %5390  ;;  %v1707_v34 = vmul.f32 1.442695, %v1662_v61 }
 0x51c   :  { %v1764_v17 = vsel %vm655_vm3, %v7215_v24, 0.0 }
 0x51d   :  { %5392 = vpow2.f32 %v1707_v34 }
 0x51e   :  { %1765 = vadd.xlane.f32.xlu0 %v1764_v17 }
 0x520   :  { %v7219_v49 = vpop.xlane.xlu1 %1636  ;;  %v1715_v23 = vpop.xlane.xlu2 %1714 }
 0x521   :  { %5394 = vrcp.f32 %v1715_v23 }
 0x523   :  { %v7221_v31 = vpop.eup %5392 }
 0x524   :  { %9313 = vst [vmem:[#allocation107_spill] sm:$0xff] %v7221_v31  ;;  %v1776_v58 = vsel %vm655_vm3, %v7221_v31, 0.0 }
 0x525   :  { %1777 = vadd.xlane.f32.xlu2 %v1776_v58 }
 0x527   :  { %v5395_v46 = vpop.eup %5394 }
 0x528   :  { %v1718_v33 = vpop.xlane.xlu1 %1717  ;;  %v1640_v48 = vpop.xlane.xlu0 %1639  ;;  %v1809_v52 = vmul.f32 %v5395_v46, %v7130_v18  ;;  %v9314_v18 = vld [vmem:[#allocation23_spill] sm:$0xff] }
 0x529   :  { %5396 = vrcp.f32 %v1718_v33  ;;  %v2195_v46 = vsel %vm330_vm1, %v9314_v18, 0 }
 0x52a   :  { %v1833_v0 = vpack.c.bf16 %v1809_v52, %v1809_v52 }
 0x52c   :  { %v1860_v58 = vunpack.c.l.b16 %v1833_v0 }
 0x52e   :  { %3247 = vrot.lane.b32.xlu1 %v9199_v36, %s5668_s28 }
 0x52f   :  { %v5397_v20 = vpop.eup %5396 }
 0x530   :  { %v1810_v61 = vmul.f32 %v5397_v20, %v7140_v11  ;;  %v1721_v34 = vpop.xlane.xlu0 %1720  ;;  %v1724_v17 = vpop.xlane.xlu2 %1723 }
 0x531   :  { %5398 = vrcp.f32 %v1721_v34 }
 0x532   :  { %v1834_v23 = vpack.c.bf16 %v1810_v61, %v1810_v61  ;;  %3243 = vrot.lane.b32.xlu0 %v9199_v36, %s5669_s29  ;;  %5400 = vrcp.f32 %v1724_v17 }
 0x534   :  { %v1861_v31 = vunpack.c.l.b16 %v1834_v23  ;;  %v9315_v23 = vld [vmem:[#allocation12_spill] sm:$0xff] }
 0x536   :  { %v1863_v33 = vpack.c.b16 %v1861_v31, %v1860_v58  ;;  %v2192_v58 = vsel %vm330_vm1, %v9315_v23, 0 }
 0x537   :  { %v5399_v7 = vpop.eup %5398 }
 0x538   :  { %5121 = vmatmul.msk.bf16.vlgmr.msra.gmra.mxu2 %vm655_vm3, %v1863_v33  ;;  %v1727_v52 = vpop.xlane.xlu1 %1726  ;;  %v5401_v16 = vpop.eup %5400  ;;  %v1811_v11 = vmul.f32 %v5399_v7, %v7150_v13 }
 0x539   :  { %2203 = vmatpush.bf16.xpose.msra.mxu2 %v2195_v46  ;;  %5402 = vrcp.f32 %v1727_v52  ;;  %v1812_v20 = vmul.f32 %v5401_v16, %v7154_v45  ;;  %v1751_v17 = vpop.xlane.xlu2 %1750  ;;  %v1663_v45 = vsub.f32 %v7133_v22, %v7219_v49 }
 0x53a   :  { %v1835_v0 = vpack.c.bf16 %v1811_v11, %v1811_v11 }
 0x53b   :  { %v1836_v31 = vpack.c.bf16 %v1812_v20, %v1812_v20 }
 0x53c   :  { %v1862_v7 = vunpack.c.l.b16 %v1835_v0 }
 0x53d   :  { %3245 = vrot.lane.b32.xlu2 %v9214_v27, %s5668_s28  ;;  %v1900_v16 = vunpack.c.l.b16 %v1836_v31 }
 0x53e   :  { %v1864_v52 = vpack.c.b16 %v1862_v7, %v1862_v7 }
 0x53f   :  { %v5403_v61 = vpop.eup %5402 }
 0x540   :  { %v1813_v34 = vmul.f32 %v5403_v61, %v7162_v60  ;;  %v1754_v33 = vpop.xlane.xlu1 %1753  ;;  %v9316_v61 = vld [vmem:[#allocation60_spill] sm:$0xff] }
 0x541   :  { %2204 = vmatpush.bf16.xpose.msra.mxu2 %v2192_v58  ;;  %5404 = vrcp.f32 %v1754_v33  ;;  %v1730_v18 = vpop.xlane.xlu0 %1729  ;;  %v2233_v23 = vsel %vm330_vm1, %v9316_v61, 0 }
 0x542   :  { %v1837_v46 = vpack.c.bf16 %v1813_v34, %v1813_v34  ;;  %5406 = vrcp.f32 %v1730_v18  ;;  %v1664_v34 = vsub.f32 %v7144_v1, %v1640_v48 }
 0x543   :  { %5408 = vrcp.f32 %v1751_v17  ;;  %v1709_v17 = vmul.f32 1.442695, %v1663_v45 }
 0x544   :  { %v1901_v13 = vunpack.c.l.b16 %v1837_v46  ;;  %v1711_v49 = vmul.f32 1.442695, %v1664_v34  ;;  %v9317_v46 = vld [vmem:[#allocation63_spill] sm:$0xff] }
 0x545   :  { %3281 = vrot.lane.b32.xlu2 %v5958_v62, %s5669_s29  ;;  %5410 = vpow2.f32 %v1709_v17  ;;  %v2230_v7 = vsel %vm330_vm1, %v9317_v46, 0 }
 0x546   :  { %v1903_v60 = vpack.c.b16 %v1901_v13, %v1900_v16  ;;  %5412 = vpow2.f32 %v1711_v49 }
 0x547   :  { %v5405_v11 = vpop.eup %5404 }
 0x548   :  { %v5407_v20 = vpop.eup %5406  ;;  %5122 = vmatmul.msk.bf16.gmra.mxu2 %vm655_vm3, %v1864_v52  ;;  %5123 = vmatmul.msk.bf16.vlgmr.msra.gmra.mxu3 %vm655_vm3, %v1903_v60  ;;  %v1822_v58 = vmul.f32 %v5405_v11, %v7171_v44 }
 0x549   :  { %v5409_v0 = vpop.eup %5408  ;;  %2241 = vmatpush.bf16.xpose.msra.mxu3 %v2233_v23  ;;  %v1757_v31 = vpop.xlane.xlu0 %1756  ;;  %v1814_v22 = vmul.f32 %v5407_v20, %v7173_v43  ;;  %v9318_v23 = vld [vmem:[#allocation73_spill] sm:$0xff] }
 0x54a   :  { %v1821_v33 = vmul.f32 %v5409_v0, %v7164_v30  ;;  %v1846_v1 = vpack.c.bf16 %v1822_v58, %v1822_v58  ;;  %5414 = vrcp.f32 %v1757_v31  ;;  %v2347_v34 = vsel %vm330_vm1, %v9318_v23, 0 }
 0x54b   :  { %v1838_v48 = vpack.c.bf16 %v1814_v22, %v1814_v22  ;;  %v7257_v13 = vpop.eup %5410 }
 0x54c   :  { %v1845_v18 = vpack.c.bf16 %v1821_v33, %v1821_v33  ;;  %v2021_v44 = vunpack.c.l.b16 %v1846_v1  ;;  %v7261_v45 = vpop.eup %5412  ;;  %v1779_v11 = vsel %vm655_vm3, %v7257_v13, 0.0  ;;  %v9319_v1 = vld [vmem:[#allocation76_spill] sm:$0xff] }
 0x54d   :  { %3317 = vrot.lane.b32.xlu2 %v5988_v21, %s5669_s29  ;;  %v1902_v43 = vunpack.c.l.b16 %v1838_v48  ;;  %v1782_v17 = vsel %vm655_vm3, %v7261_v45, 0.0  ;;  %v2344_v48 = vsel %vm330_vm1, %v9319_v1, 0 }
 0x54e   :  { %v2020_v30 = vunpack.c.l.b16 %v1845_v18 }
 0x54f   :  { %v1904_v20 = vpack.c.b16 %v1902_v43, %v1902_v43 }
 0x550   :  { %v2023_v60 = vpack.c.b16 %v2021_v44, %v2020_v30  ;;  %v5415_v52 = vpop.eup %5414 }
 0x551   :  { %2242 = vmatpush.bf16.xpose.msra.mxu3 %v2230_v7  ;;  %v1739_v16 = vpop.xlane.xlu0 %1738  ;;  %v1823_v31 = vmul.f32 %v5415_v52, %v7180_v25 }
 0x552   :  { %5416 = vrcp.f32 %v1739_v16 }
 0x553   :  { %5418 = vrcp.f32 %v6832_v42  ;;  %v1847_v49 = vpack.c.bf16 %v1823_v31, %v1823_v31 }
 0x554   :  { %5420 = vrcp.f32 %v6864_v59 }
 0x555   :  { %3323 = vrot.lane.b32.xlu2 %v6021_v55, %s5668_s28  ;;  %v2022_v25 = vunpack.c.l.b16 %v1847_v49  ;;  %5422 = vrcp.f32 %v6892_v32  ;;  %v2789_v32 = vsel %vm963_vm2, %v6995_v2, 0 }
 0x557   :  { %v2024_v46 = vpack.c.b16 %v2022_v25, %v2022_v25 }
 0x558   :  { %v5417_v61 = vpop.eup %5416  ;;  %1780 = vadd.xlane.f32.xlu1 %v1779_v11  ;;  %5129 = vmatmul.msk.bf16.vlgmr.msrb.gmra.mxu2 %vm655_vm3, %v2023_v60 }
 0x559   :  { %v1817_v0 = vmul.f32 %v5417_v61, %v7184_v6  ;;  %2355 = vmatpush.bf16.xpose.msrb.mxu2 %v2347_v34  ;;  %5124 = vmatmul.msk.bf16.gmra.mxu3 %vm655_vm3, %v1904_v20  ;;  %v5419_v33 = vpop.eup %5418  ;;  %v9321_v34 = vld [vmem:[#allocation21_spill] sm:$0xff] }
 0x55a   :  { %v5421_v42 = vpop.eup %5420  ;;  %v1827_v18 = vmul.f32 %v5419_v33, %v6691_v39  ;;  %v9322_v33 = vld [vmem:[#allocation71_spill] sm:$0xff] }
 0x55b   :  { %v1841_v58 = vpack.c.bf16 %v1817_v0, %v1817_v0  ;;  %v1828_v59 = vmul.f32 %v5421_v42, %v6679_v10  ;;  %v5423_v39 = vpop.eup %5422  ;;  %v2309_v1 = vsel %vm330_vm1, %v9322_v33, 0 }
 0x55c   :  { %1783 = vadd.xlane.f32.xlu0 %v1782_v17  ;;  %v1851_v7 = vpack.c.bf16 %v1827_v18, %v1827_v18  ;;  %v1829_v10 = vmul.f32 %v5423_v39, %v6681_v38  ;;  %v2420_v38 = vsel %vm330_vm1, %v6912_v63, 0 }
 0x55d   :  { %3359 = vrot.lane.b32.xlu2 %v6036_v9, %s5668_s28  ;;  %v1942_v22 = vunpack.c.l.b16 %v1841_v58  ;;  %v1852_v16 = vpack.c.bf16 %v1828_v59, %v1828_v59 }
 0x55e   :  { %v2100_v44 = vunpack.c.l.b16 %v1851_v7 }
 0x55f   :  { %v1944_v6 = vpack.c.b16 %v1942_v22, %v1942_v22  ;;  %v2101_v43 = vunpack.c.l.b16 %v1852_v16 }
 0x561   :  { %2356 = vmatpush.bf16.xpose.msrb.mxu2 %v2344_v48  ;;  %5126 = vmatmul.msk.bf16.gmra.mxu0 %vm655_vm3, %v1944_v6  ;;  %v2103_v30 = vpack.c.b16 %v2101_v43, %v2100_v44  ;;  %v2949_v43 = vsel %vm963_vm2, %v7040_v3, 0 }
 0x565   :  { %3691 = vrot.lane.b32.xlu2 %v5776_v26, %s5670_s30  ;;  %v2423_v26 = vsel %vm330_vm1, %v6977_v51, 0  ;;  %v9320_v51 = vld [vmem:[#allocation18_spill] sm:$0xff] }
 0x568   :  { %5130 = vmatmul.msk.bf16.gmra.mxu2 %vm655_vm3, %v2024_v46  ;;  %v9323_v46 = vld [vmem:[#allocation52_spill] sm:$0xff] }
 0x56d   :  { %3769 = vrot.lane.b32.xlu2 %v9212_v47, %s5670_s30  ;;  %v1853_v47 = vpack.c.bf16 %v1829_v10, %v1829_v10 }
 0x570   :  { %3279 = vrot.lane.b32.xlu0 %v5945_v53, %s5669_s29 }
 0x571   :  { %3283 = vrot.lane.b32.xlu1 %v5945_v53, %s5668_s28  ;;  %5133 = vmatmul.msk.bf16.vlgmr.msra.gmra.mxu0 %vm655_vm3, %v2103_v30  ;;  %v9325_v30 = vld [vmem:[#allocation69_spill] sm:$0xff] }
 0x572   :  { %2431 = vmatpush.bf16.xpose.msra.mxu0 %v2423_v26 }
 0x575   :  { %3811 = vrot.lane.b32.xlu2 %v9219_v50, %s5670_s30  ;;  %v2102_v50 = vunpack.c.l.b16 %v1853_v47 }
 0x577   :  { %v2104_v2 = vpack.c.b16 %v2102_v50, %v2102_v50  ;;  %v9334_v50 = vld [vmem:[#allocation43_spill] sm:$0xff] }
 0x578   :  { %3285 = vrot.lane.b32.xlu0 %v5958_v62, %s5668_s28  ;;  %v1742_v60 = vpop.xlane.xlu2 %1741  ;;  %5137 = vmatmul.msk.bf16.vlgmr.msra.gmra.mxu2 %vm330_vm1, %v9320_v51  ;;  %v9332_v51 = vld [vmem:[#allocation40_spill] sm:$0xff] }
 0x579   :  { %2797 = vmatpush.bf16.msra.mxu2 %v2789_v32  ;;  %3319 = vrot.lane.b32.xlu1 %v6021_v55, %s5669_s29  ;;  %5424 = vrcp.f32 %v1742_v60  ;;  %v9330_v32 = vld [vmem:[#allocation26_spill] sm:$0xff] }
 0x57a   :  { %2432 = vmatpush.bf16.xpose.msra.mxu0 %v2420_v38  ;;  %v9331_v60 = vld [vmem:[#allocation70_spill] sm:$0xff]  ;;  %v9333_v38 = vld [vmem:[#allocation25_spill] sm:$0xff] }
 0x57d   :  { %2798 = vmatpush.bf16.msra.mxu2 %v6982_v37  ;;  %3889 = vrot.lane.b32.xlu2 %v5945_v53, %s5670_s30 }
 0x57f   :  { %v5425_v11 = vpop.eup %5424 }
 0x580   :  { %3321 = vrot.lane.b32.xlu0 %v5988_v21, %s5668_s28  ;;  %v1745_v52 = vpop.xlane.xlu1 %1744  ;;  %v1818_v63 = vmul.f32 %v5425_v11, %v7191_v28 }
 0x581   :  { %5426 = vrcp.f32 %v1745_v52  ;;  %v1760_v20 = vpop.xlane.xlu2 %1759  ;;  %3355 = vrot.lane.b32.xlu1 %v6036_v9, %s5669_s29  ;;  %5134 = vmatmul.msk.bf16.gmra.mxu0 %vm655_vm3, %v2104_v2  ;;  %v9335_v52 = vld [vmem:[#allocation13_spill] sm:$0xff] }
 0x582   :  { %5428 = vrcp.f32 %v1760_v20  ;;  %v1842_v61 = vpack.c.bf16 %v1818_v63, %v1818_v63  ;;  %v9336_v63 = vld [vmem:[#allocation19_spill] sm:$0xff] }
 0x584   :  { %v1980_v28 = vunpack.c.l.b16 %v1842_v61 }
 0x587   :  { %v5427_v37 = vpop.eup %5426 }
 0x588   :  { %v1819_v53 = vmul.f32 %v5427_v37, %v7197_v4  ;;  %3357 = vrot.lane.b32.xlu0 %v6094_v57, %s5669_s29  ;;  %v1763_v23 = vpop.xlane.xlu1 %1762  ;;  %5138 = vmatmul.msk.bf16.gmra.mxu2 %vm330_vm1, %v9321_v34  ;;  %v5429_v0 = vpop.eup %5428 }
 0x589   :  { %5430 = vrcp.f32 %v1763_v23  ;;  %v1748_v31 = vpop.xlane.xlu0 %1747  ;;  %3361 = vrot.lane.b32.xlu1 %v6094_v57, %s5668_s28  ;;  %v1824_v22 = vmul.f32 %v5429_v0, %v7199_v19  ;;  %v2869_v19 = vsel %vm963_vm2, %v6999_v12, 0  ;;  %v7392_v34 = vpop.f32.mrf.mxu0 }
 0x58a   :  { %v1843_v17 = vpack.c.bf16 %v1819_v53, %v1819_v53  ;;  %5432 = vrcp.f32 %v1748_v31  ;;  %v9338_v31 = vld [vmem:[#allocation107_spill] sm:$0xff] }
 0x58b   :  { %v1848_v48 = vpack.c.bf16 %v1824_v22, %v1824_v22 }
 0x58c   :  { %v1981_v58 = vunpack.c.l.b16 %v1843_v17 }
 0x58e   :  { %v1983_v4 = vpack.c.b16 %v1981_v58, %v1980_v28 }
 0x58f   :  { %v5431_v49 = vpop.eup %5430 }
 0x590   :  { %v5433_v6 = vpop.eup %5432  ;;  %v1825_v42 = vmul.f32 %v5431_v49, %v7206_v29  ;;  %3689 = vrot.lane.b32.xlu0 %v9206_v14, %s5670_s30  ;;  %5127 = vmatmul.msk.bf16.vlgmr.msra.gmra.mxu1 %vm655_vm3, %v1983_v4  ;;  %v2060_v29 = vunpack.c.l.b16 %v1848_v48 }
 0x591   :  { %2317 = vmatpush.bf16.xpose.msra.mxu1 %v2309_v1  ;;  %v1766_v25 = vpop.xlane.xlu0 %1765  ;;  %3729 = vrot.lane.b32.xlu1 %v9207_v15, %s5670_s30  ;;  %v1820_v59 = vmul.f32 %v5433_v6, %v7208_v54  ;;  %v9324_v15 = vld [vmem:[#allocation58_spill] sm:$0xff]  ;;  %v2385_v54 = vsel %vm330_vm1, %v6818_v40, 0  ;;  %v9326_v40 = vld [vmem:[#allocation20_spill] sm:$0xff]  ;;  %v7400_v1 = vpop.f32.mrf.mxu0 }
 0x592   :  { %v1849_v18 = vpack.c.bf16 %v1825_v42, %v1825_v42  ;;  %5434 = vrcp.f32 %v1766_v25  ;;  %5141 = vmatmul.msk.bf16.vlgmr.msrb.gmra.mxu0 %vm330_vm1, %v9323_v46  ;;  %v2306_v12 = vsel %vm330_vm1, %v9324_v15, 0  ;;  %v2382_v3 = vsel %vm330_vm1, %v9326_v40, 0  ;;  %v9339_v25 = vld [vmem:[#allocation28_spill] sm:$0xff] }
 0x593   :  { %2877 = vmatpush.bf16.msrb.mxu0 %v2869_v19  ;;  %v1844_v16 = vpack.c.bf16 %v1820_v59, %v1820_v59  ;;  %v2989_v19 = vsel %vm963_vm2, %v9339_v25, 0 }
 0x594   :  { %v2061_v14 = vunpack.c.l.b16 %v1849_v18  ;;  %v9340_v18 = vld [vmem:[#allocation65_spill] sm:$0xff] }
 0x596   :  { %v2063_v7 = vpack.c.b16 %v2061_v14, %v2060_v29  ;;  %v9341_v29 = vld [vmem:[#allocation44_spill] sm:$0xff] }
 0x597   :  { %2878 = vmatpush.bf16.msrb.mxu0 %v6990_v5 }
 0x598   :  { %v5435_v44 = vpop.eup %5434  ;;  %3731 = vrot.lane.b32.xlu0 %v5805_v41, %s5670_s30  ;;  %5131 = vmatmul.msk.bf16.vlgmr.msrb.gmra.mxu3 %vm655_vm3, %v2063_v7  ;;  %v1982_v41 = vunpack.c.l.b16 %v1844_v16  ;;  %v1778_v2 = vpop.xlane.xlu2 %1777 }
 0x599   :  { %2318 = vmatpush.bf16.xpose.msra.mxu1 %v2306_v12  ;;  %5145 = vmatmul.msk.bf16.vlgmr.msrb.gmra.mxu2 %vm330_vm1, %v9325_v30  ;;  %v1826_v5 = vmul.f32 %v5435_v44, %v7215_v24  ;;  %v9327_v24 = vld [vmem:[#allocation66_spill] sm:$0xff]  ;;  %5436 = vrcp.f32 %v1778_v2  ;;  %v9342_v44 = vld [vmem:[#allocation36_spill] sm:$0xff]  ;;  %v9352_v2 = vld [vmem:[#allocation45_spill] sm:$0xff] }
 0x59a   :  { %2393 = vmatpush.bf16.xpose.msrb.mxu3 %v2385_v54  ;;  %2957 = vmatpush.bf16.msrb.mxu2 %v2949_v43  ;;  %v1984_v39 = vpack.c.b16 %v1982_v41, %v1982_v41  ;;  %v9344_v43 = vld [vmem:[#allocation35_spill] sm:$0xff] }
 0x59b   :  { %3809 = vrot.lane.b32.xlu1 %v9197_v35, %s5670_s30  ;;  %v1850_v26 = vpack.c.bf16 %v1826_v5, %v1826_v5  ;;  %v2458_v30 = vsel %vm330_vm1, %v9344_v43, 0  ;;  %v9361_v43 = vld [vmem:[#allocation72_spill] sm:$0xff] }
 0x59d   :  { %v2062_v10 = vunpack.c.l.b16 %v1850_v26  ;;  %v9345_v26 = vld [vmem:[#allocation39_spill] sm:$0xff] }
 0x59e   :  { %2958 = vmatpush.bf16.msrb.mxu2 %v7015_v8  ;;  %v9328_v8 = vld [vmem:[#allocation62_spill] sm:$0xff] }
 0x59f   :  { %v2064_v35 = vpack.c.b16 %v2062_v10, %v2062_v10  ;;  %v5437_v23 = vpop.eup %5436 }
 0x5a0   :  { %3771 = vrot.lane.b32.xlu0 %v9210_v56, %s5670_s30  ;;  %5128 = vmatmul.msk.bf16.gmra.mxu1 %vm655_vm3, %v1984_v39  ;;  %v9329_v56 = vld [vmem:[#allocation34_spill] sm:$0xff]  ;;  %v7382_v11 = vpop.permute.xlu1 %3247  ;;  %v1830_v17 = vmul.f32 %v5437_v23, %v9338_v31  ;;  %v9353_v31 = vld [vmem:[#allocation67_spill] sm:$0xff] }
 0x5a1   :  { %v3029_v47 = vsel %vm963_vm2, %v9329_v56, 0 }
 0x5a2   :  { %2394 = vmatpush.bf16.xpose.msrb.mxu3 %v2382_v3  ;;  %5142 = vmatmul.msk.bf16.gmra.mxu0 %vm330_vm1, %v9327_v24  ;;  %v1854_v22 = vpack.c.bf16 %v1830_v17, %v1830_v17  ;;  %v9354_v17 = vld [vmem:[#allocation47_spill] sm:$0xff] }
 0x5a3   :  { %3851 = vrot.lane.b32.xlu1 %v9199_v36, %s5670_s30  ;;  %v2829_v36 = vsel %vm963_vm2, %v9332_v51, 0 }
 0x5a4   :  { %v7388_v37 = vpop.permute.xlu0 %3243  ;;  %v2140_v48 = vunpack.c.l.b16 %v1854_v22 }
 0x5a5   :  { %9337 = vst [vmem:[#allocation23_spill] sm:$0xff] %v7388_v37 }
 0x5a8   :  { %3849 = vrot.lane.b32.xlu0 %v9214_v27, %s5670_s30  ;;  %5132 = vmatmul.msk.bf16.gmra.mxu3 %vm655_vm3, %v2064_v35  ;;  %v9348_v35 = vld [vmem:[#allocation55_spill] sm:$0xff] }
 0x5a9   :  { %5146 = vmatmul.msk.bf16.gmra.mxu2 %vm330_vm1, %v9328_v8  ;;  %v2909_v8 = vsel %vm963_vm2, %v9348_v35, 0 }
 0x5b2   :  { %5149 = vmatmul.msk.bf16.vlgmr.msra.gmra.mxu0 %vm330_vm1, %v9330_v32  ;;  %v9350_v32 = vld [vmem:[#allocation46_spill] sm:$0xff] }
 0x5b3   :  { %3037 = vmatpush.bf16.msra.mxu0 %v3029_v47  ;;  %v9349_v47 = vld [vmem:[#allocation68_spill] sm:$0xff] }
 0x5b7   :  { %3038 = vmatpush.bf16.msra.mxu0 %v9331_v60 }
 0x5b8   :  { %5139 = vmatmul.msk.bf16.vlgmr.msra.gmra.mxu3 %vm330_vm1, %v9333_v38  ;;  %v9351_v38 = vld [vmem:[#allocation31_spill] sm:$0xff] }
 0x5b9   :  { %2837 = vmatpush.bf16.msra.mxu3 %v2829_v36 }
 0x5bb   :  { %v7377_v27 = vpop.f32.mrf.mxu2 }
 0x5bd   :  { %2838 = vmatpush.bf16.msra.mxu3 %v9334_v50 }
 0x5c2   :  { %5150 = vmatmul.msk.bf16.gmra.mxu0 %vm330_vm1, %v9335_v52 }
 0x5c3   :  { %v7384_v20 = vpop.f32.mrf.mxu2 }
 0x5c8   :  { %5140 = vmatmul.msk.bf16.gmra.mxu3 %vm330_vm1, %v9336_v63 }
 0x5cb   :  { %v1781_v61 = vpop.xlane.xlu1 %1780  ;;  %v7390_v53 = vpop.f32.mrf.mxu2 }
 0x5cc   :  { %5438 = vrcp.f32 %v1781_v61  ;;  %v7394_v0 = vpop.f32.mrf.mxu3 }
 0x5cf   :  { %v1784_v28 = vpop.xlane.xlu0 %1783 }
 0x5d0   :  { %5440 = vrcp.f32 %v1784_v28 }
 0x5d2   :  { %v5439_v58 = vpop.eup %5438 }
 0x5d3   :  { %v1831_v4 = vmul.f32 %v5439_v58, %v7257_v13  ;;  %v1895_v49 = vpop.f32.mrf.mxu2  ;;  %v2461_v13 = vsel %vm330_vm1, %v9341_v29, 0  ;;  %v9358_v29 = vld [vmem:[#allocation91_spill] sm:$0xff] }
 0x5d4   :  { %v7398_v6 = vpop.f32.mrf.mxu3  ;;  %v9355_v49 = vld [vmem:[#allocation48_spill] sm:$0xff] }
 0x5d5   :  { %v1855_v33 = vpack.c.bf16 %v1831_v4, %v1831_v4 }
 0x5d6   :  { %v5441_v46 = vpop.eup %5440 }
 0x5d7   :  { %v2141_v42 = vunpack.c.l.b16 %v1855_v33  ;;  %v1832_v16 = vmul.f32 %v5441_v46, %v7261_v45 }
 0x5d8   :  { %5147 = vmatmul.msk.bf16.vlgmr.msrb.gmra.mxu3 %vm330_vm1, %v9340_v18  ;;  %v9357_v18 = vld [vmem:[#allocation53_spill] sm:$0xff] }
 0x5d9   :  { %v2143_v59 = vpack.c.b16 %v2141_v42, %v2140_v48  ;;  %2997 = vmatpush.bf16.msrb.mxu3 %v2989_v19  ;;  %v1856_v12 = vpack.c.bf16 %v1832_v16, %v1832_v16 }
 0x5db   :  { %v7408_v14 = vpop.f32.mrf.mxu2  ;;  %5135 = vmatmul.msk.bf16.vlgmr.msrb.gmra.mxu1 %vm655_vm3, %v2143_v59  ;;  %v2142_v41 = vunpack.c.l.b16 %v1856_v12 }
 0x5dc   :  { %2469 = vmatpush.bf16.xpose.msrb.mxu1 %v2461_v13  ;;  %v7411_v7 = vpop.f32.mrf.mxu3  ;;  %v3069_v13 = vsel %vm963_vm2, %v9358_v29, 0  ;;  %v7503_v29 = vpop.permute.xlu2 %3245 }
 0x5dd   :  { %2998 = vmatpush.bf16.msrb.mxu3 %v9342_v44  ;;  %v2144_v40 = vpack.c.b16 %v2142_v41, %v2142_v41  ;;  %v9360_v44 = vld [vmem:[#allocation38_spill] sm:$0xff] }
 0x5de   :  { %v7415_v15 = vpop.f32.mrf.mxu0 }
 0x5e3   :  { %v7417_v54 = vpop.f32.mrf.mxu2 }
 0x5e4   :  { %9343 = vst [vmem:[#allocation12_spill] sm:$0xff] %v7417_v54  ;;  %2470 = vmatpush.bf16.xpose.msrb.mxu1 %v2458_v30  ;;  %v1935_v5 = vpop.f32.mrf.mxu3 }
 0x5e6   :  { %v1975_v39 = vpop.f32.mrf.mxu0 }
 0x5e8   :  { %5148 = vmatmul.msk.bf16.gmra.mxu3 %vm330_vm1, %v9345_v26  ;;  %v9362_v26 = vld [vmem:[#allocation56_spill] sm:$0xff] }
 0x5eb   :  { %v7423_v3 = vpop.f32.mrf.mxu2  ;;  %5136 = vmatmul.msk.bf16.gmra.mxu1 %vm655_vm3, %v2144_v40 }
 0x5ee   :  { %v7426_v45 = vpop.f32.mrf.mxu0 }
 0x5ef   :  { %9346 = vst [vmem:[#allocation60_spill] sm:$0xff] %v7426_v45 }
 0x5f3   :  { %v2055_v24 = vpop.f32.mrf.mxu2 }
 0x5f4   :  { %v9363_v24 = vld [vmem:[#allocation74_spill] sm:$0xff] }
 0x5f6   :  { %v7428_v10 = vpop.f32.mrf.mxu0 }
 0x5f7   :  { %9347 = vst [vmem:[#allocation63_spill] sm:$0xff] %v7428_v10 }
 0x5fb   :  { %v2206_v56 = vpop.f32.mrf.mxu2  ;;  %5143 = vmatmul.msk.bf16.vlgmr.msra.gmra.mxu1 %vm330_vm1, %v9349_v47  ;;  %v9365_v47 = vld [vmem:[#allocation77_spill] sm:$0xff] }
 0x5fc   :  { %v7435_v60 = vadd.f32 %v2206_v56, %v9350_v32  ;;  %2917 = vmatpush.bf16.msra.mxu1 %v2909_v8 }
 0x5fe   :  { %v7437_v51 = vpop.f32.mrf.mxu0  ;;  %v2481_v36 = vsel %vm655_vm3, %v7435_v60, -inf }
 0x5ff   :  { %2482 = vmax.xlane.f32.xlu2 %v2481_v36 }
 0x600   :  { %2918 = vmatpush.bf16.msra.mxu1 %v9351_v38 }
 0x603   :  { %v2208_v50 = vpop.f32.mrf.mxu2 }
 0x604   :  { %v7443_v52 = vadd.f32 %v2208_v50, %v9352_v2 }
 0x606   :  { %v2135_v63 = vpop.f32.mrf.mxu0  ;;  %v2484_v61 = vsel %vm655_vm3, %v7443_v52, -inf }
 0x607   :  { %2485 = vmax.xlane.f32.xlu0 %v2484_v61 }
 0x60b   :  { %v2211_v23 = vpop.f32.mrf.mxu2  ;;  %5144 = vmatmul.msk.bf16.gmra.mxu1 %vm330_vm1, %v9353_v31 }
 0x60c   :  { %v7450_v28 = vadd.f32 %v2211_v23, %v9354_v17  ;;  %v9366_v23 = vld [vmem:[#allocation41_spill] sm:$0xff] }
 0x60d   :  { %v7452_v58 = vpop.f32.mrf.mxu1 }
 0x60e   :  { %v2487_v22 = vsel %vm655_vm3, %v7450_v28, -inf }
 0x60f   :  { %v2282_v4 = vpop.f32.mrf.mxu0  ;;  %2488 = vmax.xlane.f32.xlu1 %v2487_v22  ;;  %v9367_v22 = vld [vmem:[#allocation79_spill] sm:$0xff] }
 0x610   :  { %v7457_v33 = vadd.f32 %v2282_v4, %v9355_v49 }
 0x612   :  { %v2499_v48 = vsel %vm655_vm3, %v7457_v33, -inf }
 0x613   :  { %2500 = vmax.xlane.f32.xlu2 %v2499_v48  ;;  %v2213_v42 = vpop.f32.mrf.mxu2 }
 0x615   :  { %v7461_v25 = vpop.f32.mrf.mxu1 }
 0x616   :  { %9356 = vst [vmem:[#allocation73_spill] sm:$0xff] %v7461_v25 }
 0x617   :  { %v2284_v19 = vpop.f32.mrf.mxu0 }
 0x618   :  { %v7464_v59 = vadd.f32 %v2284_v19, %v9357_v18 }
 0x61a   :  { %v2502_v46 = vsel %vm655_vm3, %v7464_v59, -inf }
 0x61b   :  { %2503 = vmax.xlane.f32.xlu0 %v2502_v46  ;;  %v7470_v16 = vpop.f32.mrf.mxu3  ;;  %5151 = vmatmul.msk.bf16.vlgmr.msrb.gmra.mxu1 %vm330_vm1, %v9360_v44 }
 0x61c   :  { %9359 = vst [vmem:[#allocation76_spill] sm:$0xff] %v7470_v16  ;;  %v2358_v12 = vpop.f32.mrf.mxu2  ;;  %3077 = vmatpush.bf16.msrb.mxu1 %v3069_v13 }
 0x61d   :  { %v7475_v30 = vadd.f32 %v2358_v12, %v9361_v43  ;;  %v7477_v5 = vpop.f32.mrf.mxu1  ;;  %v9368_v12 = vld [vmem:[#allocation49_spill] sm:$0xff] }
 0x61f   :  { %v2287_v41 = vpop.f32.mrf.mxu0  ;;  %v2517_v39 = vsel %vm655_vm3, %v7475_v30, -inf }
 0x620   :  { %v7482_v40 = vadd.f32 %v2287_v41, %v9362_v26  ;;  %2518 = vmax.xlane.f32.xlu2 %v2517_v39  ;;  %3078 = vmatpush.bf16.msrb.mxu1 %v9363_v24 }
 0x622   :  { %v2505_v35 = vsel %vm655_vm3, %v7482_v40, -inf }
 0x623   :  { %2506 = vmax.xlane.f32.xlu1 %v2505_v35  ;;  %v7487_v8 = vpop.f32.mrf.mxu3  ;;  %v7510_v35 = vpop.permute.xlu2 %3281 }
 0x624   :  { %9364 = vst [vmem:[#allocation18_spill] sm:$0xff] %v7487_v8  ;;  %v2360_v56 = vpop.f32.mrf.mxu2 }
 0x625   :  { %v7490_v36 = vadd.f32 %v2360_v56, %v9365_v47  ;;  %v2015_v38 = vpop.f32.mrf.mxu1  ;;  %9369 = vst [vmem:[#allocation21_spill] sm:$0xff] %v7510_v35 }
 0x626   :  { %v9370_v38 = vld [vmem:[#allocation51_spill] sm:$0xff] }
 0x627   :  { %v2289_v50 = vpop.f32.mrf.mxu0  ;;  %v2520_v63 = vsel %vm655_vm3, %v7490_v36, -inf }
 0x628   :  { %2521 = vmax.xlane.f32.xlu0 %v2520_v63 }
 0x62b   :  { %v7494_v61 = vpop.f32.mrf.mxu3  ;;  %5152 = vmatmul.msk.bf16.gmra.mxu1 %vm330_vm1, %v9366_v23 }
 0x62c   :  { %v2363_v31 = vpop.f32.mrf.mxu2 }
 0x62d   :  { %v7499_v4 = vadd.f32 %v2363_v31, %v9367_v22  ;;  %v7517_v31 = vpop.permute.xlu0 %3279 }
 0x62e   :  { %9371 = vst [vmem:[#allocation71_spill] sm:$0xff] %v7517_v31 }
 0x62f   :  { %v2434_v48 = vpop.f32.mrf.mxu0  ;;  %v2523_v42 = vsel %vm655_vm3, %v7499_v4, -inf }
 0x630   :  { %2524 = vmax.xlane.f32.xlu1 %v2523_v42  ;;  %v7519_v42 = vpop.permute.xlu2 %3317 }
 0x631   :  { %9372 = vst [vmem:[#allocation52_spill] sm:$0xff] %v7519_v42 }
 0x633   :  { %v2095_v19 = vpop.f32.mrf.mxu3 }
 0x634   :  { %v2365_v46 = vpop.f32.mrf.mxu2 }
 0x635   :  { %v9373_v46 = vld [vmem:[#allocation54_spill] sm:$0xff] }
 0x637   :  { %v2436_v13 = vpop.f32.mrf.mxu0 }
 0x63b   :  { %v2244_v44 = vpop.f32.mrf.mxu3 }
 0x63c   :  { %v7506_v41 = vadd.f32 %v2244_v44, %v9368_v12 }
 0x63e   :  { %v2490_v39 = vsel %vm655_vm3, %v7506_v41, -inf }
 0x63f   :  { %v2439_v24 = vpop.f32.mrf.mxu0  ;;  %2491 = vmax.xlane.f32.xlu2 %v2490_v39 }
 0x643   :  { %v2246_v56 = vpop.f32.mrf.mxu3 }
 0x644   :  { %v7513_v50 = vadd.f32 %v2246_v56, %v9370_v38  ;;  %v7526_v56 = vpop.permute.xlu0 %3285  ;;  %v7528_v38 = vpop.permute.xlu2 %3323 }
 0x645   :  { %9374 = vst [vmem:[#allocation58_spill] sm:$0xff] %v7526_v56 }
 0x646   :  { %v2493_v63 = vsel %vm655_vm3, %v7513_v50, -inf  ;;  %9375 = vst [vmem:[#allocation69_spill] sm:$0xff] %v7528_v38 }
 0x647   :  { %v2441_v23 = vpop.f32.mrf.mxu0  ;;  %2494 = vmax.xlane.f32.xlu0 %v2493_v63  ;;  %v7532_v63 = vpop.permute.xlu1 %3283 }
 0x648   :  { %9377 = vst [vmem:[#allocation66_spill] sm:$0xff] %v7532_v63  ;;  %v9389_v63 = vld [vmem:[#allocation59_spill] sm:$0xff] }
 0x64b   :  { %v2249_v19 = vpop.f32.mrf.mxu3 }
 0x64c   :  { %v7522_v44 = vadd.f32 %v2249_v19, %v9373_v46  ;;  %v7534_v47 = vpop.permute.xlu0 %3321  ;;  %v7536_v43 = vpop.permute.xlu2 %3359 }
 0x64d   :  { %9378 = vst [vmem:[#allocation62_spill] sm:$0xff] %v7534_v47 }
 0x64e   :  { %v2496_v39 = vsel %vm655_vm3, %v7522_v44, -inf  ;;  %9379 = vst [vmem:[#allocation34_spill] sm:$0xff] %v7536_v43 }
 0x64f   :  { %2497 = vmax.xlane.f32.xlu1 %v2496_v39  ;;  %v7540_v26 = vpop.permute.xlu1 %3319 }
 0x650   :  { %9381 = vst [vmem:[#allocation70_spill] sm:$0xff] %v7540_v26 }
 0x653   :  { %v2251_v22 = vpop.f32.mrf.mxu3 }
 0x654   :  { %v7542_v39 = vpop.permute.xlu0 %3357  ;;  %v7546_v18 = vpop.permute.xlu2 %3691 }
 0x655   :  { %9382 = vst [vmem:[#allocation40_spill] sm:$0xff] %v7542_v39 }
 0x656   :  { %9384 = vst [vmem:[#allocation43_spill] sm:$0xff] %v7546_v18 }
 0x657   :  { %v7548_v35 = vpop.permute.xlu1 %3355 }
 0x658   :  { %v7530_v12 = vpop.f32.mrf.mxu1  ;;  %9385 = vst [vmem:[#allocation13_spill] sm:$0xff] %v7548_v35 }
 0x659   :  { %9376 = vst [vmem:[#allocation20_spill] sm:$0xff] %v7530_v12 }
 0x65b   :  { %v2396_v23 = vpop.f32.mrf.mxu3 }
 0x65c   :  { %v7550_v17 = vpop.permute.xlu0 %3689  ;;  %v7552_v2 = vpop.permute.xlu2 %3769 }
 0x65d   :  { %9386 = vst [vmem:[#allocation19_spill] sm:$0xff] %v7550_v17 }
 0x65e   :  { %9387 = vst [vmem:[#allocation107_spill] sm:$0xff] %v7552_v2  ;;  %v9393_v2 = vld [vmem:[#allocation61_spill] sm:$0xff] }
 0x65f   :  { %v7554_v42 = vpop.permute.xlu1 %3361 }
 0x660   :  { %v7538_v19 = vpop.f32.mrf.mxu1  ;;  %9388 = vst [vmem:[#allocation28_spill] sm:$0xff] %v7554_v42 }
 0x661   :  { %9380 = vst [vmem:[#allocation26_spill] sm:$0xff] %v7538_v19 }
 0x663   :  { %v2398_v46 = vpop.f32.mrf.mxu3 }
 0x664   :  { %v7561_v47 = vpop.permute.xlu0 %3731  ;;  %v7563_v56 = vpop.permute.xlu2 %3811 }
 0x665   :  { %9390 = vst [vmem:[#allocation65_spill] sm:$0xff] %v7561_v47  ;;  %v9398_v47 = vld [vmem:[#allocation75_spill] sm:$0xff] }
 0x666   :  { %9391 = vst [vmem:[#allocation44_spill] sm:$0xff] %v7563_v56 }
 0x667   :  { %v7571_v42 = vpop.permute.xlu1 %3729 }
 0x668   :  { %v7544_v22 = vpop.f32.mrf.mxu1  ;;  %9394 = vst [vmem:[#allocation36_spill] sm:$0xff] %v7571_v42  ;;  %v9399_v42 = vld [vmem:[#allocation64_spill] sm:$0xff] }
 0x669   :  { %9383 = vst [vmem:[#allocation25_spill] sm:$0xff] %v7544_v22 }
 0x66b   :  { %v2401_v49 = vpop.f32.mrf.mxu3 }
 0x66c   :  { %v7579_v56 = vpop.permute.xlu2 %3889 }
 0x66d   :  { %9396 = vst [vmem:[#allocation39_spill] sm:$0xff] %v7579_v56 }
 0x670   :  { %v2175_v31 = vpop.f32.mrf.mxu1 }
 0x671   :  { %v9392_v31 = vld [vmem:[#allocation81_spill] sm:$0xff] }
 0x672   :  { %v7566_v35 = vadd.f32 %v2434_v48, %v9392_v31  ;;  %v9397_v48 = vld [vmem:[#allocation83_spill] sm:$0xff] }
 0x673   :  { %v2403_v32 = vpop.f32.mrf.mxu3  ;;  %v7582_v31 = vadd.f32 %v2436_v13, %v9397_v48  ;;  %v9402_v48 = vld [vmem:[#allocation78_spill] sm:$0xff] }
 0x678   :  { %v2320_v43 = vpop.f32.mrf.mxu1 }
 0x679   :  { %v7557_v26 = vadd.f32 %v2320_v43, %v9389_v63  ;;  %v2535_v63 = vsel %vm655_vm3, %v7566_v35, -inf }
 0x67b   :  { %v2508_v39 = vsel %vm655_vm3, %v7557_v26, -inf }
 0x67c   :  { %2509 = vmax.xlane.f32.xlu2 %v2508_v39  ;;  %v7577_v39 = vpop.permute.xlu0 %3771 }
 0x67d   :  { %9395 = vst [vmem:[#allocation35_spill] sm:$0xff] %v7577_v39 }
 0x680   :  { %v2322_v38 = vpop.f32.mrf.mxu1 }
 0x681   :  { %v7569_v32 = vadd.f32 %v2322_v38, %v9393_v2  ;;  %v7585_v38 = vadd.f32 %v2396_v23, %v9398_v47  ;;  %v9401_v23 = vld [vmem:[#allocation84_spill] sm:$0xff] }
 0x682   :  { %v7599_v47 = vadd.f32 %v2439_v24, %v9401_v23  ;;  %v9405_v23 = vld [vmem:[#allocation82_spill] sm:$0xff] }
 0x683   :  { %v2511_v43 = vsel %vm655_vm3, %v7569_v32, -inf  ;;  %v2526_v13 = vsel %vm655_vm3, %v7585_v38, -inf }
 0x684   :  { %2512 = vmax.xlane.f32.xlu0 %v2511_v43  ;;  %2536 = vmax.xlane.f32.xlu2 %v2535_v63  ;;  %v2538_v63 = vsel %vm655_vm3, %v7582_v31, -inf  ;;  %v7594_v43 = vpop.permute.xlu1 %3809  ;;  %v7604_v56 = vpop.permute.xlu0 %3849 }
 0x685   :  { %9400 = vst [vmem:[#allocation55_spill] sm:$0xff] %v7594_v43 }
 0x686   :  { %9403 = vst [vmem:[#allocation68_spill] sm:$0xff] %v7604_v56 }
 0x688   :  { %v2325_v2 = vpop.f32.mrf.mxu1 }
 0x689   :  { %v7588_v37 = vadd.f32 %v2325_v2, %v9399_v42  ;;  %v7602_v2 = vadd.f32 %v2398_v46, %v9402_v48  ;;  %v2483_v42 = vpop.xlane.xlu2 %2482  ;;  %v7614_v46 = vadd.f32 %v2401_v49, %v9405_v23 }
 0x68a   :  { %v2553_v19 = vsub.f32 %v7435_v60, %v2483_v42 }
 0x68b   :  { %v2514_v22 = vsel %vm655_vm3, %v7588_v37, -inf }
 0x68c   :  { %2515 = vmax.xlane.f32.xlu1 %v2514_v22  ;;  %2539 = vmax.xlane.f32.xlu0 %v2538_v63  ;;  %v2541_v22 = vsel %vm655_vm3, %v7599_v47, -inf  ;;  %v2529_v63 = vsel %vm655_vm3, %v7602_v2, -inf  ;;  %v2577_v24 = vmul.f32 1.442695, %v2553_v19  ;;  %v2486_v43 = vpop.xlane.xlu0 %2485 }
 0x68d   :  { %2527 = vmax.xlane.f32.xlu2 %v2526_v13  ;;  %v7611_v13 = vpop.permute.xlu1 %3851  ;;  %v2554_v42 = vsub.f32 %v7443_v52, %v2486_v43 }
 0x68e   :  { %9404 = vst [vmem:[#allocation31_spill] sm:$0xff] %v7611_v13  ;;  %5442 = vpow2.f32 %v2577_v24 }
 0x68f   :  { %v2579_v23 = vmul.f32 1.442695, %v2554_v42 }
 0x690   :  { %v2327_v39 = vpop.f32.mrf.mxu1 }
 0x691   :  { %v2501_v48 = vpop.xlane.xlu2 %2500  ;;  %v9406_v39 = vld [vmem:[#allocation85_spill] sm:$0xff] }
 0x692   :  { %v2559_v60 = vsub.f32 %v7457_v33, %v2501_v48  ;;  %v9407_v48 = vld [vmem:[#allocation86_spill] sm:$0xff] }
 0x694   :  { %2542 = vmax.xlane.f32.xlu1 %v2541_v22  ;;  %2530 = vmax.xlane.f32.xlu0 %v2529_v63  ;;  %v2532_v22 = vsel %vm655_vm3, %v7614_v46, -inf  ;;  %v2589_v63 = vmul.f32 1.442695, %v2559_v60  ;;  %v7625_v12 = vpop.eup %5442 }
 0x695   :  { %v2489_v49 = vpop.xlane.xlu1 %2488  ;;  %v2625_v42 = vsel %vm655_vm3, %v7625_v12, 0.0 }
 0x696   :  { %v2555_v33 = vsub.f32 %v7450_v28, %v2489_v49  ;;  %5444 = vpow2.f32 %v2589_v63 }
 0x697   :  { %5446 = vpow2.f32 %v2579_v23 }
 0x698   :  { %v2472_v56 = vpop.f32.mrf.mxu1 }
 0x699   :  { %v7617_v10 = vadd.f32 %v2472_v56, %v9406_v39  ;;  %v2519_v13 = vpop.xlane.xlu2 %2518  ;;  %v2504_v56 = vpop.xlane.xlu0 %2503 }
 0x69a   :  { %v2565_v43 = vsub.f32 %v7475_v30, %v2519_v13 }
 0x69b   :  { %v2544_v19 = vsel %vm655_vm3, %v7617_v10, -inf }
 0x69c   :  { %2533 = vmax.xlane.f32.xlu1 %v2532_v22  ;;  %2545 = vmax.xlane.f32.xlu2 %v2544_v19  ;;  %v2560_v22 = vsub.f32 %v7464_v59, %v2504_v56  ;;  %v2581_v19 = vmul.f32 1.442695, %v2555_v33  ;;  %v2601_v39 = vmul.f32 1.442695, %v2565_v43  ;;  %v9408_v59 = vld [vmem:[#allocation87_spill] sm:$0xff] }
 0x69d   :  { %v2507_v49 = vpop.xlane.xlu1 %2506 }
 0x69e   :  { %v2591_v28 = vmul.f32 1.442695, %v2560_v22  ;;  %5448 = vpow2.f32 %v2581_v19  ;;  %v2561_v13 = vsub.f32 %v7482_v40, %v2507_v49 }
 0x69f   :  { %5450 = vpow2.f32 %v2601_v39 }
 0x6a0   :  { %v2474_v24 = vpop.f32.mrf.mxu1  ;;  %5452 = vpow2.f32 %v2591_v28 }
 0x6a1   :  { %v7629_v52 = vadd.f32 %v2474_v24, %v9407_v48  ;;  %v7637_v24 = vpop.eup %5444  ;;  %v2522_v63 = vpop.xlane.xlu0 %2521 }
 0x6a2   :  { %v7639_v30 = vpop.eup %5446  ;;  %v2566_v56 = vsub.f32 %v7490_v36, %v2522_v63  ;;  %v2643_v43 = vsel %vm655_vm3, %v7637_v24, 0.0 }
 0x6a3   :  { %v2547_v60 = vsel %vm655_vm3, %v7629_v52, -inf  ;;  %v2628_v22 = vsel %vm655_vm3, %v7639_v30, 0.0 }
 0x6a4   :  { %2548 = vmax.xlane.f32.xlu0 %v2547_v60  ;;  %2626 = vadd.xlane.f32.xlu2 %v2625_v42  ;;  %v7652_v60 = vpop.eup %5448  ;;  %v2603_v39 = vmul.f32 1.442695, %v2566_v56 }
 0x6a5   :  { %v7654_v40 = vpop.eup %5450  ;;  %v2631_v49 = vsel %vm655_vm3, %v7652_v60, 0.0 }
 0x6a6   :  { %v7656_v36 = vpop.eup %5452  ;;  %v2661_v63 = vsel %vm655_vm3, %v7654_v40, 0.0 }
 0x6a8   :  { %v2477_v48 = vpop.f32.mrf.mxu1 }
 0x6a9   :  { %v7642_v23 = vadd.f32 %v2477_v48, %v9408_v59  ;;  %v2593_v48 = vmul.f32 1.442695, %v2561_v13  ;;  %v2646_v13 = vsel %vm655_vm3, %v7656_v36, 0.0 }
 0x6ab   :  { %9409 = vst [vmem:[#allocation67_spill] sm:$0xff] %v7642_v23  ;;  %v2550_v33 = vsel %vm655_vm3, %v7642_v23, -inf  ;;  %5454 = vpow2.f32 %v2593_v48 }
 0x6ac   :  { %2551 = vmax.xlane.f32.xlu1 %v2550_v33  ;;  %2644 = vadd.xlane.f32.xlu2 %v2643_v43  ;;  %5456 = vpow2.f32 %v2603_v39 }
 0x6ad   :  { %2629 = vadd.xlane.f32.xlu0 %v2628_v22 }
 0x6b0   :  { %v2479_v42 = vpop.f32.mrf.mxu1 }
 0x6b1   :  { %v7665_v33 = vpop.eup %5454 }
 0x6b2   :  { %v2492_v19 = vpop.xlane.xlu2 %2491  ;;  %v7667_v43 = vpop.eup %5456  ;;  %v2649_v48 = vsel %vm655_vm3, %v7665_v33, 0.0 }
 0x6b3   :  { %v2556_v28 = vsub.f32 %v7506_v41, %v2492_v19  ;;  %v2664_v39 = vsel %vm655_vm3, %v7667_v43, 0.0 }
 0x6b4   :  { %2632 = vadd.xlane.f32.xlu1 %v2631_v49  ;;  %2662 = vadd.xlane.f32.xlu2 %v2661_v63  ;;  %v2525_v63 = vpop.xlane.xlu1 %2524 }
 0x6b5   :  { %v2583_v56 = vmul.f32 1.442695, %v2556_v28  ;;  %2647 = vadd.xlane.f32.xlu0 %v2646_v13  ;;  %v2567_v13 = vsub.f32 %v7499_v4, %v2525_v63 }
 0x6b7   :  { %5458 = vpow2.f32 %v2583_v56 }
 0x6ba   :  { %v2495_v22 = vpop.xlane.xlu0 %2494 }
 0x6bb   :  { %v2557_v41 = vsub.f32 %v7513_v50, %v2495_v22 }
 0x6bc   :  { %2650 = vadd.xlane.f32.xlu1 %v2649_v48 }
 0x6bd   :  { %v7674_v42 = vpop.eup %5458  ;;  %v2585_v19 = vmul.f32 1.442695, %v2557_v41  ;;  %2665 = vadd.xlane.f32.xlu0 %v2664_v39  ;;  %v2605_v41 = vmul.f32 1.442695, %v2567_v13 }
 0x6be   :  { %v2634_v28 = vsel %vm655_vm3, %v7674_v42, 0.0 }
 0x6bf   :  { %5460 = vpow2.f32 %v2585_v19  ;;  %2635 = vadd.xlane.f32.xlu2 %v2634_v28 }
 0x6c2   :  { %v2498_v48 = vpop.xlane.xlu1 %2497 }
 0x6c3   :  { %v2558_v19 = vsub.f32 %v7522_v44, %v2498_v48 }
 0x6c5   :  { %v7678_v49 = vpop.eup %5460  ;;  %v2587_v59 = vmul.f32 1.442695, %v2558_v19 }
 0x6c6   :  { %v2637_v50 = vsel %vm655_vm3, %v7678_v49, 0.0 }
 0x6c7   :  { %2638 = vadd.xlane.f32.xlu0 %v2637_v50 }
 0x6d5   :  { %3929 = vrot.lane.b32.xlu1 %v5988_v21, %s5670_s30 }
 0x6ef   :  { %v2510_v56 = vpop.xlane.xlu2 %2509 }
 0x6f0   :  { %v2562_v22 = vsub.f32 %v7557_v26, %v2510_v56 }
 0x6f2   :  { %v2595_v39 = vmul.f32 1.442695, %v2562_v22 }
 0x6f4   :  { %5462 = vpow2.f32 %v2595_v39 }
 0x6f5   :  { %5464 = vpow2.f32 %v2605_v41 }
 0x6f6   :  { %5466 = vpow2.f32 %v2587_v59 }
 0x6f7   :  { %v2513_v28 = vpop.xlane.xlu0 %2512  ;;  %v2537_v26 = vpop.xlane.xlu2 %2536 }
 0x6f8   :  { %v2563_v50 = vsub.f32 %v7569_v32, %v2513_v28 }
 0x6fa   :  { %v7688_v17 = vpop.eup %5462  ;;  %v2597_v21 = vmul.f32 1.442695, %v2563_v50 }
 0x6fb   :  { %v7690_v8 = vpop.eup %5464  ;;  %v2652_v4 = vsel %vm655_vm3, %v7688_v17, 0.0 }
 0x6fc   :  { %2653 = vadd.xlane.f32.xlu2 %v2652_v4  ;;  %5468 = vpow2.f32 %v2597_v21  ;;  %v2667_v44 = vsel %vm655_vm3, %v7690_v8, 0.0  ;;  %v7697_v32 = vpop.eup %5466 }
 0x6fd   :  { %v2640_v48 = vsel %vm655_vm3, %v7697_v32, 0.0 }
 0x6ff   :  { %2668 = vadd.xlane.f32.xlu1 %v2667_v44  ;;  %v2516_v63 = vpop.xlane.xlu1 %2515  ;;  %v7703_v59 = vpop.xlane.xlu0 %2539 }
 0x700   :  { %v2564_v13 = vsub.f32 %v7588_v37, %v2516_v63  ;;  %v2528_v39 = vpop.xlane.xlu2 %2527 }
 0x702   :  { %v2599_v56 = vmul.f32 1.442695, %v2564_v13  ;;  %v7699_v22 = vpop.eup %5468 }
 0x703   :  { %v2655_v41 = vsel %vm655_vm3, %v7699_v22, 0.0 }
 0x704   :  { %5470 = vpow2.f32 %v2599_v56  ;;  %2656 = vadd.xlane.f32.xlu0 %v2655_v41 }
 0x707   :  { %2641 = vadd.xlane.f32.xlu1 %v2640_v48  ;;  %v2543_v19 = vpop.xlane.xlu1 %2542  ;;  %v7712_v4 = vpop.xlane.xlu0 %2530 }
 0x708   :  { %v2573_v37 = vsub.f32 %v7599_v47, %v2543_v19 }
 0x70a   :  { %v2617_v28 = vmul.f32 1.442695, %v2573_v37  ;;  %v7708_v50 = vpop.eup %5470 }
 0x70b   :  { %9410 = vst [vmem:[#allocation91_spill] sm:$0xff] %v7708_v50  ;;  %v2658_v21 = vsel %vm655_vm3, %v7708_v50, 0.0 }
 0x70c   :  { %5472 = vpow2.f32 %v2617_v28 }
 0x70f   :  { %2659 = vadd.xlane.f32.xlu1 %v2658_v21  ;;  %v7714_v44 = vpop.xlane.xlu2 %2545  ;;  %v7720_v13 = vpop.xlane.xlu1 %2533 }
 0x712   :  { %v7716_v63 = vpop.eup %5472 }
 0x713   :  { %9411 = vst [vmem:[#allocation38_spill] sm:$0xff] %v7716_v63  ;;  %v2685_v47 = vsel %vm655_vm3, %v7716_v63, 0.0 }
 0x714   :  { %3931 = vrot.lane.b32.xlu2 %v6021_v55, %s5670_s30 }
 0x717   :  { %2686 = vadd.xlane.f32.xlu1 %v2685_v47  ;;  %v2627_v56 = vpop.xlane.xlu2 %2626  ;;  %v7724_v41 = vpop.xlane.xlu0 %2548 }
 0x718   :  { %3891 = vrot.lane.b32.xlu0 %v5958_v62, %s5670_s30  ;;  %5474 = vrcp.f32 %v2627_v56  ;;  %v2571_v56 = vsub.f32 %v7566_v35, %v2537_v26 }
 0x71e   :  { %v5475_v28 = vpop.eup %5474 }
 0x71f   :  { %v7728_v48 = vpop.xlane.xlu1 %2551  ;;  %v2645_v19 = vpop.xlane.xlu2 %2644  ;;  %v2721_v55 = vmul.f32 %v5475_v28, %v7625_v12  ;;  %v2568_v28 = vsub.f32 %v7585_v38, %v2528_v39 }
 0x720   :  { %9412 = vst [vmem:[#allocation74_spill] sm:$0xff] %v7728_v48  ;;  %v2630_v37 = vpop.xlane.xlu0 %2629 }
 0x721   :  { %5476 = vrcp.f32 %v2630_v37  ;;  %v2745_v63 = vpack.c.bf16 %v2721_v55, %v2721_v55 }
 0x722   :  { %5478 = vrcp.f32 %v2645_v19  ;;  %v2613_v19 = vmul.f32 1.442695, %v2571_v56 }
 0x723   :  { %v2772_v50 = vunpack.c.l.b16 %v2745_v63  ;;  %v9414_v63 = vld [vmem:[#allocation95_spill] sm:$0xff] }
 0x727   :  { %v5477_v21 = vpop.eup %5476  ;;  %v2633_v45 = vpop.xlane.xlu1 %2632 }
 0x728   :  { %v2722_v47 = vmul.f32 %v5477_v21, %v7639_v30  ;;  %v2648_v18 = vpop.xlane.xlu0 %2647  ;;  %5480 = vrcp.f32 %v2633_v45  ;;  %v5479_v54 = vpop.eup %5478  ;;  %v9413_v30 = vld [vmem:[#allocation89_spill] sm:$0xff]  ;;  %v2572_v21 = vsub.f32 %v7582_v31, %v7703_v59 }
 0x729   :  { %v2663_v62 = vpop.xlane.xlu2 %2662  ;;  %5482 = vrcp.f32 %v2648_v18  ;;  %v2727_v37 = vmul.f32 %v5479_v54, %v7637_v24  ;;  %v3107_v45 = vsel %vm330_vm1, %v9413_v30, 0  ;;  %v2607_v24 = vmul.f32 1.442695, %v2568_v28 }
 0x72a   :  { %v2746_v16 = vpack.c.bf16 %v2722_v47, %v2722_v47  ;;  %v2615_v26 = vmul.f32 1.442695, %v2572_v21  ;;  %v2569_v47 = vsub.f32 %v7602_v2, %v7712_v4 }
 0x72b   :  { %v2751_v18 = vpack.c.bf16 %v2727_v37, %v2727_v37 }
 0x72c   :  { %v2773_v23 = vunpack.c.l.b16 %v2746_v16  ;;  %v2609_v2 = vmul.f32 1.442695, %v2569_v47 }
 0x72d   :  { %v2852_v39 = vunpack.c.l.b16 %v2751_v18 }
 0x72e   :  { %v2775_v48 = vpack.c.b16 %v2773_v23, %v2772_v50  ;;  %v5481_v12 = vpop.eup %5480 }
 0x72f   :  { %v2651_v55 = vpop.xlane.xlu1 %2650  ;;  %v5483_v25 = vpop.eup %5482  ;;  %v2723_v16 = vmul.f32 %v5481_v12, %v7652_v60 }
 0x730   :  { %5153 = vmatmul.msk.bf16.vlgmr.msra.gmra.mxu2 %vm655_vm3, %v2775_v48  ;;  %3971 = vrot.lane.b32.xlu1 %v6094_v57, %s5670_s30  ;;  %v2728_v54 = vmul.f32 %v5483_v25, %v7656_v36  ;;  %5484 = vrcp.f32 %v2651_v55  ;;  %v2666_v35 = vpop.xlane.xlu0 %2665  ;;  %v3104_v25 = vsel %vm330_vm1, %v9414_v63, 0  ;;  %v9415_v36 = vld [vmem:[#allocation104_spill] sm:$0xff] }
 0x731   :  { %3115 = vmatpush.bf16.xpose.msra.mxu2 %v3107_v45  ;;  %5486 = vpow2.f32 %v2613_v19  ;;  %v2747_v59 = vpack.c.bf16 %v2723_v16, %v2723_v16  ;;  %v3183_v48 = vsel %vm330_vm1, %v9415_v36, 0 }
 0x732   :  { %v2636_v38 = vpop.xlane.xlu2 %2635  ;;  %v2752_v23 = vpack.c.bf16 %v2728_v54, %v2728_v54 }
 0x733   :  { %5488 = vrcp.f32 %v2636_v38  ;;  %v2774_v37 = vunpack.c.l.b16 %v2747_v59 }
 0x734   :  { %v2853_v31 = vunpack.c.l.b16 %v2752_v23  ;;  %5490 = vpow2.f32 %v2607_v24 }
 0x735   :  { %5492 = vpow2.f32 %v2615_v26  ;;  %v2776_v30 = vpack.c.b16 %v2774_v37, %v2774_v37 }
 0x736   :  { %v2855_v50 = vpack.c.b16 %v2853_v31, %v2852_v39  ;;  %v5485_v57 = vpop.eup %5484  ;;  %5494 = vrcp.f32 %v2666_v35 }
 0x737   :  { %v7748_v60 = vpop.eup %5486  ;;  %5496 = vrcp.f32 %v2663_v62  ;;  %v2729_v19 = vmul.f32 %v5485_v57, %v7665_v33  ;;  %v2575_v33 = vsub.f32 %v7629_v52, %v7724_v41 }
 0x738   :  { %4029 = vrot.lane.b32.xlu1 %v7390_v53, %s5671_s4  ;;  %5157 = vmatmul.msk.bf16.vlgmr.msrb.gmra.mxu0 %vm655_vm3, %v2855_v50  ;;  %v2574_v53 = vsub.f32 %v7617_v10, %v7714_v44  ;;  %v2679_v28 = vsel %vm655_vm3, %v7748_v60, 0.0  ;;  %v9416_v44 = vld [vmem:[#allocation99_spill] sm:$0xff] }
 0x739   :  { %3116 = vmatpush.bf16.xpose.msra.mxu2 %v3104_v25  ;;  %3191 = vmatpush.bf16.xpose.msrb.mxu0 %v3183_v48  ;;  %v5489_v12 = vpop.eup %5488  ;;  %v2753_v18 = vpack.c.bf16 %v2729_v19, %v2729_v19  ;;  %v3180_v16 = vsel %vm330_vm1, %v9416_v44, 0  ;;  %v2621_v41 = vmul.f32 1.442695, %v2575_v33  ;;  %v9418_v19 = vld [vmem:[#allocation94_spill] sm:$0xff] }
 0x73a   :  { %v2639_v56 = vpop.xlane.xlu0 %2638  ;;  %v7760_v55 = vpop.eup %5490  ;;  %v2724_v62 = vmul.f32 %v5489_v12, %v7674_v42  ;;  %v2619_v21 = vmul.f32 1.442695, %v2574_v53  ;;  %v3259_v12 = vsel %vm330_vm1, %v7382_v11, 0 }
 0x73b   :  { %5498 = vrcp.f32 %v2639_v56  ;;  %v7762_v4 = vpop.eup %5492  ;;  %v2670_v52 = vsel %vm655_vm3, %v7760_v55, 0.0 }
 0x73c   :  { %v5495_v45 = vpop.eup %5494  ;;  %5500 = vpow2.f32 %v2609_v2  ;;  %v2748_v35 = vpack.c.bf16 %v2724_v62, %v2724_v62  ;;  %v2682_v24 = vsel %vm655_vm3, %v7762_v4, 0.0  ;;  %v3256_v2 = vsel %vm330_vm1, %v7503_v29, 0 }
 0x73d   :  { %2680 = vadd.xlane.f32.xlu2 %v2679_v28  ;;  %v5497_v54 = vpop.eup %5496  ;;  %v2734_v42 = vmul.f32 %v5495_v45, %v7667_v43  ;;  %5502 = vpow2.f32 %v2619_v21  ;;  %v3142_v28 = vsel %vm330_vm1, %v9418_v19, 0  ;;  %v9433_v19 = vld [vmem:[#allocation63_spill] sm:$0xff] }
 0x73e   :  { %v2733_v23 = vmul.f32 %v5497_v54, %v7654_v40  ;;  %v2812_v43 = vunpack.c.l.b16 %v2748_v35  ;;  %5504 = vpow2.f32 %v2621_v41  ;;  %v9417_v40 = vld [vmem:[#allocation96_spill] sm:$0xff] }
 0x73f   :  { %v2758_v39 = vpack.c.bf16 %v2734_v42, %v2734_v42  ;;  %v3145_v25 = vsel %vm330_vm1, %v9417_v40, 0  ;;  %v9422_v42 = vld [vmem:[#allocation67_spill] sm:$0xff]  ;;  %v9428_v40 = vld [vmem:[#allocation50_spill] sm:$0xff] }
 0x740   :  { %5154 = vmatmul.msk.bf16.gmra.mxu2 %vm655_vm3, %v2776_v30  ;;  %4035 = vrot.lane.b32.xlu1 %v7411_v7, %s5671_s4  ;;  %v2854_v7 = vunpack.c.l.b16 %v2753_v18  ;;  %v2757_v50 = vpack.c.bf16 %v2733_v23, %v2733_v23 }
 0x741   :  { %v5499_v10 = vpop.eup %5498  ;;  %3192 = vmatpush.bf16.xpose.msrb.mxu0 %v3180_v16  ;;  %v2933_v36 = vunpack.c.l.b16 %v2758_v39  ;;  %v9425_v39 = vld [vmem:[#allocation12_spill] sm:$0xff] }
 0x742   :  { %v2725_v38 = vmul.f32 %v5499_v10, %v7678_v49  ;;  %2683 = vadd.xlane.f32.xlu0 %v2682_v24  ;;  %v7779_v59 = vpop.eup %5500  ;;  %v2856_v49 = vpack.c.b16 %v2854_v7, %v2854_v7  ;;  %v2932_v47 = vunpack.c.l.b16 %v2757_v50  ;;  %v9423_v7 = vld [vmem:[#allocation91_spill] sm:$0xff] }
 0x743   :  { %v7783_v63 = vpop.eup %5502  ;;  %v2673_v48 = vsel %vm655_vm3, %v7779_v59, 0.0  ;;  %v9427_v50 = vld [vmem:[#allocation43_spill] sm:$0xff] }
 0x744   :  { %v2749_v26 = vpack.c.bf16 %v2725_v38, %v2725_v38  ;;  %v2935_v56 = vpack.c.b16 %v2933_v36, %v2932_v47  ;;  %v7793_v37 = vpop.eup %5504  ;;  %v9429_v36 = vld [vmem:[#allocation60_spill] sm:$0xff] }
 0x745   :  { %2671 = vadd.xlane.f32.xlu2 %v2670_v52  ;;  %v2691_v53 = vsel %vm655_vm3, %v7793_v37, 0.0 }
 0x746   :  { %v2813_v31 = vunpack.c.l.b16 %v2749_v26  ;;  %v9424_v26 = vld [vmem:[#allocation76_spill] sm:$0xff] }
 0x747   :  { %v7816_v11 = vpop.permute.xlu1 %3929 }
 0x748   :  { %v2815_v57 = vpack.c.b16 %v2813_v31, %v2812_v43  ;;  %4041 = vrot.lane.b32.xlu1 %v7415_v15, %s5671_s4  ;;  %5158 = vmatmul.msk.bf16.gmra.mxu0 %vm655_vm3, %v2856_v49  ;;  %v2688_v15 = vsel %vm655_vm3, %v7783_v63, 0.0  ;;  %v9426_v43 = vld [vmem:[#allocation106_spill] sm:$0xff] }
 0x749   :  { %v3218_v31 = vsel %vm330_vm1, %v9426_v43, 0 }
 0x74a   :  { %5155 = vmatmul.msk.bf16.vlgmr.msra.gmra.mxu3 %vm655_vm3, %v2815_v57  ;;  %2674 = vadd.xlane.f32.xlu0 %v2673_v48  ;;  %v3701_v57 = vsel %vm963_vm2, %v9427_v50, 0 }
 0x74b   :  { %3153 = vmatpush.bf16.xpose.msra.mxu3 %v3145_v25 }
 0x74d   :  { %2689 = vadd.xlane.f32.xlu2 %v2688_v15  ;;  %v9430_v15 = vld [vmem:[#allocation18_spill] sm:$0xff] }
 0x750   :  { %5161 = vmatmul.msk.bf16.vlgmr.msrb.gmra.mxu2 %vm655_vm3, %v2935_v56  ;;  %4047 = vrot.lane.b32.xlu1 %v7477_v5, %s5671_s4  ;;  %v9431_v56 = vld [vmem:[#allocation19_spill] sm:$0xff] }
 0x751   :  { %3267 = vmatpush.bf16.xpose.msrb.mxu2 %v3259_v12 }
 0x752   :  { %2692 = vadd.xlane.f32.xlu0 %v2691_v53  ;;  %v9432_v53 = vld [vmem:[#allocation20_spill] sm:$0xff] }
 0x753   :  { %3154 = vmatpush.bf16.xpose.msra.mxu3 %v3142_v28  ;;  %v9434_v28 = vld [vmem:[#allocation88_spill] sm:$0xff] }
 0x758   :  { %4053 = vrot.lane.b32.xlu1 %v7423_v3, %s5671_s4 }
 0x759   :  { %3268 = vmatpush.bf16.xpose.msrb.mxu2 %v3256_v2  ;;  %v9435_v2 = vld [vmem:[#allocation26_spill] sm:$0xff] }
 0x760   :  { %4059 = vrot.lane.b32.xlu1 %v7494_v61, %s5671_s4 }
 0x765   :  { %4025 = vrot.lane.b32.xlu2 %v7377_v27, %s5671_s4 }
 0x766   :  { %3969 = vrot.lane.b32.xlu0 %v6036_v9, %s5670_s30  ;;  %s4996_s30 = sshll.u32 %s9039_s6, 4  ;;  %s4997_s30 = int_to_ptr.hbm [resolvable:$true] %s4996_s30 }
 0x768   :  { %4065 = vrot.lane.b32.xlu1 %v7437_v51, %s5671_s4 }
 0x76d   :  { %4031 = vrot.lane.b32.xlu2 %v7394_v0, %s5671_s4 }
 0x76e   :  { %4027 = vrot.lane.b32.xlu0 %v7384_v20, %s5671_s4 }
 0x76f   :  { %v2654_v3 = vpop.xlane.xlu2 %2653 }
 0x770   :  { %5506 = vrcp.f32 %v2654_v3 }
 0x772   :  { %v2669_v5 = vpop.xlane.xlu1 %2668 }
 0x773   :  { %5508 = vrcp.f32 %v2669_v5 }
 0x775   :  { %4037 = vrot.lane.b32.xlu2 %v7392_v34, %s5671_s4  ;;  %v2570_v34 = vsub.f32 %v7614_v46, %v7720_v13  ;;  %v9420_v13 = vld [vmem:[#allocation103_spill] sm:$0xff] }
 0x776   :  { %4033 = vrot.lane.b32.xlu0 %v7398_v6, %s5671_s4  ;;  %v5507_v9 = vpop.eup %5506  ;;  %v3221_v16 = vsel %vm330_vm1, %v9420_v13, 0 }
 0x777   :  { %v2657_v27 = vpop.xlane.xlu0 %2656  ;;  %v2730_v20 = vmul.f32 %v5507_v9, %v7688_v17  ;;  %v7880_v3 = vpop.permute.xlu2 %3931 }
 0x778   :  { %5510 = vrcp.f32 %v2657_v27 }
 0x779   :  { %v5509_v51 = vpop.eup %5508  ;;  %v2754_v6 = vpack.c.bf16 %v2730_v20, %v2730_v20 }
 0x77a   :  { %v2735_v61 = vmul.f32 %v5509_v51, %v7690_v8  ;;  %v2642_v0 = vpop.xlane.xlu1 %2641  ;;  %v9436_v51 = vld [vmem:[#allocation31_spill] sm:$0xff] }
 0x77b   :  { %5512 = vrcp.f32 %v2642_v0  ;;  %v2892_v10 = vunpack.c.l.b16 %v2754_v6  ;;  %v9437_v0 = vld [vmem:[#allocation105_spill] sm:$0xff] }
 0x77c   :  { %v2759_v29 = vpack.c.bf16 %v2735_v61, %v2735_v61  ;;  %v3861_v61 = vsel %vm963_vm2, %v9436_v51, 0 }
 0x77d   :  { %4043 = vrot.lane.b32.xlu2 %v7452_v58, %s5671_s4  ;;  %v2611_v58 = vmul.f32 1.442695, %v2570_v34 }
 0x77e   :  { %v2934_v62 = vunpack.c.l.b16 %v2759_v29  ;;  %v5511_v30 = vpop.eup %5510  ;;  %4039 = vrot.lane.b32.xlu0 %v7400_v1, %s5671_s4  ;;  %v9438_v29 = vld [vmem:[#allocation25_spill] sm:$0xff] }
 0x77f   :  { %v2731_v45 = vmul.f32 %v5511_v30, %v7699_v22  ;;  %v9419_v22 = vld [vmem:[#allocation73_spill] sm:$0xff] }
 0x780   :  { %v2936_v8 = vpack.c.b16 %v2934_v62, %v2934_v62 }
 0x781   :  { %v5513_v21 = vpop.eup %5512  ;;  %v2755_v18 = vpack.c.bf16 %v2731_v45, %v2731_v45  ;;  %v9439_v45 = vld [vmem:[#allocation68_spill] sm:$0xff] }
 0x782   :  { %v2726_v17 = vmul.f32 %v5513_v21, %v7697_v32  ;;  %v2660_v54 = vpop.xlane.xlu1 %2659  ;;  %5162 = vmatmul.msk.bf16.gmra.mxu2 %vm655_vm3, %v2936_v8  ;;  %v9421_v32 = vld [vmem:[#allocation74_spill] sm:$0xff] }
 0x783   :  { %5514 = vrcp.f32 %v2660_v54  ;;  %v2893_v33 = vunpack.c.l.b16 %v2755_v18  ;;  %v2576_v35 = vsub.f32 %v9422_v42, %v9421_v32  ;;  %v9441_v32 = vld [vmem:[#allocation23_spill] sm:$0xff] }
 0x784   :  { %v2750_v44 = vpack.c.bf16 %v2726_v17, %v2726_v17  ;;  %5516 = vpow2.f32 %v2611_v58 }
 0x785   :  { %4049 = vrot.lane.b32.xlu2 %v7408_v14, %s5671_s4  ;;  %v2895_v1 = vpack.c.b16 %v2893_v33, %v2892_v10  ;;  %v2623_v14 = vmul.f32 1.442695, %v2576_v35 }
 0x786   :  { %v2814_v46 = vunpack.c.l.b16 %v2750_v44  ;;  %4045 = vrot.lane.b32.xlu0 %v9419_v22, %s5671_s4 }
 0x787   :  { %5159 = vmatmul.msk.bf16.vlgmr.msra.gmra.mxu1 %vm655_vm3, %v2895_v1  ;;  %5518 = vpow2.f32 %v2623_v14 }
 0x788   :  { %v2816_v38 = vpack.c.b16 %v2814_v46, %v2814_v46  ;;  %3229 = vmatpush.bf16.xpose.msra.mxu1 %v3221_v16 }
 0x789   :  { %v5515_v24 = vpop.eup %5514 }
 0x78a   :  { %v2732_v23 = vmul.f32 %v5515_v24, %v9423_v7  ;;  %5156 = vmatmul.msk.bf16.gmra.mxu3 %vm655_vm3, %v2816_v38  ;;  %v7850_v52 = vpop.eup %5516  ;;  %v7882_v5 = vpop.permute.xlu0 %3891  ;;  %v9442_v24 = vld [vmem:[#allocation69_spill] sm:$0xff] }
 0x78b   :  { %v2676_v49 = vsel %vm655_vm3, %v7850_v52, 0.0  ;;  %v2687_v9 = vpop.xlane.xlu1 %2686  ;;  %v3335_v7 = vsel %vm330_vm1, %v9442_v24, 0 }
 0x78c   :  { %v2756_v41 = vpack.c.bf16 %v2732_v23, %v2732_v23 }
 0x78d   :  { %4055 = vrot.lane.b32.xlu2 %v9424_v26, %s5671_s4  ;;  %v7864_v48 = vpop.eup %5518 }
 0x78e   :  { %4051 = vrot.lane.b32.xlu0 %v9425_v39, %s5671_s4  ;;  %v2894_v25 = vunpack.c.l.b16 %v2756_v41  ;;  %v2694_v12 = vsel %vm655_vm3, %v7864_v48, 0.0  ;;  %v9443_v39 = vld [vmem:[#allocation38_spill] sm:$0xff] }
 0x790   :  { %3230 = vmatpush.bf16.xpose.msra.mxu1 %v3218_v31  ;;  %v2896_v47 = vpack.c.b16 %v2894_v25, %v2894_v25 }
 0x792   :  { %2677 = vadd.xlane.f32.xlu1 %v2676_v49  ;;  %5169 = vmatmul.msk.bf16.vlgmr.msra.gmra.mxu2 %vm330_vm1, %v9428_v40 }
 0x793   :  { %3709 = vmatpush.bf16.msra.mxu2 %v3701_v57 }
 0x795   :  { %4061 = vrot.lane.b32.xlu2 %v9429_v36, %s5671_s4 }
 0x796   :  { %4057 = vrot.lane.b32.xlu0 %v9430_v15, %s5671_s4  ;;  %v9445_v15 = vld [vmem:[#allocation58_spill] sm:$0xff] }
 0x797   :  { %3710 = vmatpush.bf16.msra.mxu2 %v9431_v56  ;;  %5160 = vmatmul.msk.bf16.gmra.mxu1 %vm655_vm3, %v2896_v47  ;;  %v3297_v56 = vsel %vm330_vm1, %v9445_v15, 0  ;;  %v9461_v15 = vld [vmem:[#allocation46_spill] sm:$0xff] }
 0x79a   :  { %2695 = vadd.xlane.f32.xlu1 %v2694_v12 }
 0x79d   :  { %4067 = vrot.lane.b32.xlu2 %v9432_v53, %s5671_s4 }
 0x79e   :  { %4063 = vrot.lane.b32.xlu0 %v9433_v19, %s5671_s4 }
 0x7a2   :  { %5170 = vmatmul.msk.bf16.gmra.mxu2 %vm330_vm1, %v9434_v28  ;;  %v7893_v6 = vpop.permute.xlu1 %3971  ;;  %v9446_v28 = vld [vmem:[#allocation62_spill] sm:$0xff] }
 0x7a6   :  { %4069 = vrot.lane.b32.xlu0 %v9435_v2, %s5671_s4  ;;  %v3332_v2 = vsel %vm330_vm1, %v9446_v28, 0 }
 0x7aa   :  { %v7902_v22 = vpop.permute.xlu1 %4029 }
 0x7ab   :  { %9440 = vst [vmem:[#allocation41_spill] sm:$0xff] %v7902_v22 }
 0x7b0   :  { %v2681_v27 = vpop.xlane.xlu2 %2680 }
 0x7b1   :  { %5520 = vrcp.f32 %v2681_v27 }
 0x7b2   :  { %5177 = vmatmul.msk.bf16.vlgmr.msrb.gmra.mxu2 %vm330_vm1, %v9437_v0  ;;  %v7917_v40 = vpop.permute.xlu1 %4035 }
 0x7b3   :  { %v2800_v20 = vpop.f32.mrf.mxu2  ;;  %3869 = vmatpush.bf16.msrb.mxu2 %v3861_v61  ;;  %4071 = vrot.lane.b32.xlu1 %v9438_v29, %s5671_s4  ;;  %9444 = vst [vmem:[#allocation89_spill] sm:$0xff] %v7917_v40  ;;  %v9448_v29 = vld [vmem:[#allocation28_spill] sm:$0xff] }
 0x7b4   :  { %4121 = vrot.lane.b32.xlu2 %v2800_v20, %s5672_s0  ;;  %v9499_v40 = vld [vmem:[#allocation64_spill] sm:$0xff] }
 0x7b5   :  { %v7891_v62 = vpop.f32.mrf.mxu0  ;;  %v2684_v30 = vpop.xlane.xlu0 %2683 }
 0x7b6   :  { %5522 = vrcp.f32 %v2684_v30  ;;  %v3373_v30 = vsel %vm330_vm1, %v9448_v29, 0  ;;  %v9465_v29 = vld [vmem:[#allocation47_spill] sm:$0xff] }
 0x7b7   :  { %v5521_v34 = vpop.eup %5520  ;;  %3870 = vmatpush.bf16.msrb.mxu2 %v9439_v45  ;;  %v9450_v45 = vld [vmem:[#allocation34_spill] sm:$0xff] }
 0x7b8   :  { %v2672_v8 = vpop.xlane.xlu2 %2671  ;;  %v2739_v21 = vmul.f32 %v5521_v34, %v7748_v60 }
 0x7b9   :  { %5524 = vrcp.f32 %v2672_v8  ;;  %v3370_v8 = vsel %vm330_vm1, %v9450_v45, 0  ;;  %v9467_v45 = vld [vmem:[#allocation44_spill] sm:$0xff] }
 0x7ba   :  { %5526 = vrcp.f32 %v2687_v9  ;;  %v2763_v54 = vpack.c.bf16 %v2739_v21, %v2739_v21  ;;  %v7925_v20 = vpop.permute.xlu1 %4041 }
 0x7bb   :  { %v7897_v18 = vpop.f32.mrf.mxu2  ;;  %9447 = vst [vmem:[#allocation95_spill] sm:$0xff] %v7925_v20  ;;  %v9508_v20 = vld [vmem:[#allocation85_spill] sm:$0xff] }
 0x7bc   :  { %v5523_v17 = vpop.eup %5522  ;;  %v3012_v13 = vunpack.c.l.b16 %v2763_v54 }
 0x7bd   :  { %v2740_v58 = vmul.f32 %v5523_v17, %v7762_v4  ;;  %v7900_v10 = vpop.f32.mrf.mxu0  ;;  %v2675_v33 = vpop.xlane.xlu0 %2674  ;;  %v9452_v17 = vld [vmem:[#allocation35_spill] sm:$0xff] }
 0x7be   :  { %5528 = vrcp.f32 %v2675_v33  ;;  %v3781_v54 = vsel %vm963_vm2, %v9452_v17, 0  ;;  %v9468_v17 = vld [vmem:[#allocation100_spill] sm:$0xff] }
 0x7bf   :  { %v5525_v44 = vpop.eup %5524  ;;  %v2764_v1 = vpack.c.bf16 %v2740_v58, %v2740_v58  ;;  %v9453_v58 = vld [vmem:[#allocation101_spill] sm:$0xff] }
 0x7c0   :  { %v2690_v46 = vpop.xlane.xlu2 %2689  ;;  %v2736_v60 = vmul.f32 %v5525_v44, %v7760_v55  ;;  %v5527_v4 = vpop.eup %5526  ;;  %v9455_v44 = vld [vmem:[#allocation107_spill] sm:$0xff] }
 0x7c1   :  { %5530 = vrcp.f32 %v2690_v46  ;;  %v3013_v16 = vunpack.c.l.b16 %v2764_v1  ;;  %v2741_v43 = vmul.f32 %v5527_v4, %v9443_v39 }
 0x7c2   :  { %5178 = vmatmul.msk.bf16.gmra.mxu2 %vm330_vm1, %v9441_v32  ;;  %v2760_v23 = vpack.c.bf16 %v2736_v60, %v2736_v60  ;;  %v7935_v21 = vpop.permute.xlu1 %4047 }
 0x7c3   :  { %v7907_v42 = vpop.f32.mrf.mxu2  ;;  %v3015_v35 = vpack.c.b16 %v3013_v16, %v3012_v13  ;;  %9451 = vst [vmem:[#allocation104_spill] sm:$0xff] %v7935_v21  ;;  %v9457_v13 = vld [vmem:[#allocation97_spill] sm:$0xff] }
 0x7c4   :  { %v5529_v38 = vpop.eup %5528  ;;  %v2972_v49 = vunpack.c.l.b16 %v2760_v23  ;;  %v9459_v23 = vld [vmem:[#allocation52_spill] sm:$0xff] }
 0x7c5   :  { %v2737_v14 = vmul.f32 %v5529_v38, %v7779_v59  ;;  %v7912_v26 = vpop.f32.mrf.mxu0  ;;  %5165 = vmatmul.msk.bf16.vlgmr.msra.gmra.mxu0 %vm655_vm3, %v3015_v35  ;;  %v2693_v41 = vpop.xlane.xlu0 %2692  ;;  %v2765_v59 = vpack.c.bf16 %v2741_v43, %v2741_v43  ;;  %v3941_v38 = vsel %vm963_vm2, %v7880_v3, 0 }
 0x7c6   :  { %3343 = vmatpush.bf16.xpose.msra.mxu0 %v3335_v7  ;;  %5532 = vrcp.f32 %v2693_v41 }
 0x7c7   :  { %v5531_v55 = vpop.eup %5530  ;;  %v2761_v31 = vpack.c.bf16 %v2737_v14, %v2737_v14  ;;  %v3014_v9 = vunpack.c.l.b16 %v2765_v59  ;;  %v9460_v59 = vld [vmem:[#allocation70_spill] sm:$0xff] }
 0x7c8   :  { %v2742_v57 = vmul.f32 %v5531_v55, %v7783_v63 }
 0x7c9   :  { %v2973_v50 = vunpack.c.l.b16 %v2761_v31  ;;  %v3016_v0 = vpack.c.b16 %v3014_v9, %v3014_v9 }
 0x7ca   :  { %v2766_v12 = vpack.c.bf16 %v2742_v57, %v2742_v57  ;;  %v7941_v33 = vpop.permute.xlu1 %4053 }
 0x7cb   :  { %v2807_v25 = vpop.f32.mrf.mxu2  ;;  %v2975_v36 = vpack.c.b16 %v2973_v50, %v2972_v49  ;;  %9454 = vst [vmem:[#allocation99_spill] sm:$0xff] %v7941_v33  ;;  %v9497_v33 = vld [vmem:[#allocation77_spill] sm:$0xff] }
 0x7cc   :  { %v5533_v47 = vpop.eup %5532  ;;  %v3052_v27 = vunpack.c.l.b16 %v2766_v12 }
 0x7cd   :  { %v2743_v53 = vmul.f32 %v5533_v47, %v7793_v37  ;;  %v2887_v19 = vpop.f32.mrf.mxu0  ;;  %5163 = vmatmul.msk.bf16.vlgmr.msrb.gmra.mxu3 %vm655_vm3, %v2975_v36  ;;  %v9449_v37 = vld [vmem:[#allocation66_spill] sm:$0xff]  ;;  %v7950_v16 = vpop.f32.mrf.mxu3 }
 0x7ce   :  { %3305 = vmatpush.bf16.xpose.msrb.mxu3 %v3297_v56  ;;  %3344 = vmatpush.bf16.xpose.msra.mxu0 %v3332_v2  ;;  %v3294_v34 = vsel %vm330_vm1, %v9449_v37, 0  ;;  %v9462_v2 = vld [vmem:[#allocation45_spill] sm:$0xff] }
 0x7cf   :  { %v2767_v63 = vpack.c.bf16 %v2743_v53, %v2743_v53 }
 0x7d1   :  { %v3053_v51 = vunpack.c.l.b16 %v2767_v63 }
 0x7d2   :  { %v7944_v1 = vpop.permute.xlu1 %4059 }
 0x7d3   :  { %v3055_v61 = vpack.c.b16 %v3053_v51, %v3052_v27  ;;  %9456 = vst [vmem:[#allocation96_spill] sm:$0xff] %v7944_v1  ;;  %v7946_v46 = vpop.f32.mrf.mxu2  ;;  %v9463_v27 = vld [vmem:[#allocation65_spill] sm:$0xff] }
 0x7d4   :  { %v3741_v51 = vsel %vm963_vm2, %v9463_v27, 0 }
 0x7d5   :  { %5166 = vmatmul.msk.bf16.gmra.mxu0 %vm655_vm3, %v3016_v0  ;;  %5167 = vmatmul.msk.bf16.vlgmr.msrb.gmra.mxu1 %vm655_vm3, %v3055_v61  ;;  %v7960_v24 = vpop.f32.mrf.mxu3  ;;  %v9464_v61 = vld [vmem:[#allocation92_spill] sm:$0xff] }
 0x7d6   :  { %3306 = vmatpush.bf16.xpose.msrb.mxu3 %v3294_v34  ;;  %3381 = vmatpush.bf16.xpose.msrb.mxu1 %v3373_v30  ;;  %v9466_v34 = vld [vmem:[#allocation36_spill] sm:$0xff] }
 0x7da   :  { %v7952_v60 = vpop.permute.xlu1 %4065 }
 0x7db   :  { %9458 = vst [vmem:[#allocation94_spill] sm:$0xff] %v7952_v60  ;;  %v7954_v32 = vpop.f32.mrf.mxu2 }
 0x7de   :  { %3382 = vmatpush.bf16.xpose.msrb.mxu1 %v3370_v8  ;;  %v3821_v8 = vsel %vm963_vm2, %v9467_v45, 0 }
 0x7e5   :  { %5173 = vmatmul.msk.bf16.vlgmr.msrb.gmra.mxu0 %vm330_vm1, %v9453_v58  ;;  %v9469_v58 = vld [vmem:[#allocation55_spill] sm:$0xff] }
 0x7e6   :  { %3789 = vmatpush.bf16.msrb.mxu0 %v3781_v54 }
 0x7ea   :  { %3790 = vmatpush.bf16.msrb.mxu0 %v9455_v44  ;;  %v9470_v44 = vld [vmem:[#allocation98_spill] sm:$0xff] }
 0x7f5   :  { %5174 = vmatmul.msk.bf16.gmra.mxu0 %vm330_vm1, %v9457_v13 }
 0x804   :  { %v7956_v4 = vpop.f32.mrf.mxu1 }
 0x805   :  { %v2678_v35 = vpop.xlane.xlu1 %2677  ;;  %v7962_v7 = vpop.f32.mrf.mxu2  ;;  %5181 = vmatmul.msk.bf16.vlgmr.msra.gmra.mxu0 %vm330_vm1, %v9459_v23 }
 0x806   :  { %5534 = vrcp.f32 %v2678_v35  ;;  %3949 = vmatpush.bf16.msra.mxu0 %v3941_v38  ;;  %v9471_v35 = vld [vmem:[#allocation102_spill] sm:$0xff] }
 0x80a   :  { %3950 = vmatpush.bf16.msra.mxu0 %v7816_v11 }
 0x80c   :  { %v5535_v14 = vpop.eup %5534  ;;  %v7968_v55 = vpop.f32.mrf.mxu1 }
 0x80d   :  { %v2738_v41 = vmul.f32 %v5535_v14, %v7850_v52  ;;  %v2696_v39 = vpop.xlane.xlu1 %2695  ;;  %v7970_v43 = vpop.f32.mrf.mxu3  ;;  %v3901_v14 = vsel %vm963_vm2, %v7882_v5, 0 }
 0x80e   :  { %5536 = vrcp.f32 %v2696_v39  ;;  %v2967_v31 = vpop.f32.mrf.mxu2 }
 0x80f   :  { %v2762_v3 = vpack.c.bf16 %v2738_v41, %v2738_v41  ;;  %v9472_v41 = vld [vmem:[#allocation71_spill] sm:$0xff] }
 0x811   :  { %v2974_v49 = vunpack.c.l.b16 %v2762_v3  ;;  %v9473_v3 = vld [vmem:[#allocation39_spill] sm:$0xff] }
 0x813   :  { %v2976_v50 = vpack.c.b16 %v2974_v49, %v2974_v49  ;;  %v3981_v49 = vsel %vm963_vm2, %v7893_v6, 0 }
 0x814   :  { %v5537_v57 = vpop.eup %5536  ;;  %v7973_v36 = vpop.f32.mrf.mxu1 }
 0x815   :  { %v2744_v25 = vmul.f32 %v5537_v57, %v7864_v48  ;;  %5164 = vmatmul.msk.bf16.gmra.mxu3 %vm655_vm3, %v2976_v50  ;;  %v2847_v11 = vpop.f32.mrf.mxu3  ;;  %5182 = vmatmul.msk.bf16.gmra.mxu0 %vm330_vm1, %v9460_v59  ;;  %v9474_v50 = vld [vmem:[#allocation13_spill] sm:$0xff] }
 0x816   :  { %v3118_v47 = vpop.f32.mrf.mxu2  ;;  %v9475_v11 = vld [vmem:[#allocation21_spill] sm:$0xff] }
 0x817   :  { %v2768_v52 = vpack.c.bf16 %v2744_v25, %v2744_v25  ;;  %v7979_v56 = vadd.f32 %v3118_v47, %v9461_v15  ;;  %v3970_v25 = vpop.permute.xlu0 %3969  ;;  %v9477_v15 = vld [vmem:[#allocation48_spill] sm:$0xff] }
 0x819   :  { %v3054_v12 = vunpack.c.l.b16 %v2768_v52  ;;  %v3393_v53 = vsel %vm655_vm3, %v7979_v56, -inf  ;;  %v9476_v52 = vld [vmem:[#allocation40_spill] sm:$0xff] }
 0x81a   :  { %3394 = vmax.xlane.f32.xlu0 %v3393_v53 }
 0x81b   :  { %v3056_v19 = vpack.c.b16 %v3054_v12, %v3054_v12 }
 0x81c   :  { %v2927_v48 = vpop.f32.mrf.mxu1 }
 0x81d   :  { %5168 = vmatmul.msk.bf16.gmra.mxu1 %vm655_vm3, %v3056_v19  ;;  %v9478_v19 = vld [vmem:[#allocation53_spill] sm:$0xff] }
 0x81e   :  { %v3120_v28 = vpop.f32.mrf.mxu2 }
 0x81f   :  { %v7985_v63 = vadd.f32 %v3120_v28, %v9462_v2 }
 0x821   :  { %v3396_v9 = vsel %vm655_vm3, %v7985_v63, -inf }
 0x822   :  { %3397 = vmax.xlane.f32.xlu2 %v3396_v9  ;;  %v9479_v9 = vld [vmem:[#allocation56_spill] sm:$0xff] }
 0x825   :  { %5171 = vmatmul.msk.bf16.vlgmr.msra.gmra.mxu3 %vm330_vm1, %v9464_v61  ;;  %v8048_v61 = vpop.permute.xlu2 %4025 }
 0x826   :  { %3749 = vmatpush.bf16.msra.mxu3 %v3741_v51  ;;  %v3123_v0 = vpop.f32.mrf.mxu2  ;;  %9480 = vst [vmem:[#allocation73_spill] sm:$0xff] %v8048_v61 }
 0x827   :  { %v7994_v30 = vadd.f32 %v3123_v0, %v9465_v29  ;;  %v8050_v29 = vpop.permute.xlu0 %4027 }
 0x828   :  { %9481 = vst [vmem:[#allocation103_spill] sm:$0xff] %v8050_v29 }
 0x829   :  { %v3399_v37 = vsel %vm655_vm3, %v7994_v30, -inf }
 0x82a   :  { %3750 = vmatpush.bf16.msra.mxu3 %v9466_v34  ;;  %3400 = vmax.xlane.f32.xlu1 %v3399_v37 }
 0x82d   :  { %5175 = vmatmul.msk.bf16.vlgmr.msra.gmra.mxu1 %vm330_vm1, %v9468_v17  ;;  %v8052_v34 = vpop.permute.xlu2 %4031 }
 0x82e   :  { %3829 = vmatpush.bf16.msra.mxu1 %v3821_v8  ;;  %v3125_v54 = vpop.f32.mrf.mxu2  ;;  %9482 = vst [vmem:[#allocation74_spill] sm:$0xff] %v8052_v34  ;;  %v9504_v34 = vld [vmem:[#allocation81_spill] sm:$0xff] }
 0x82f   :  { %v8054_v45 = vpop.permute.xlu0 %4033 }
 0x830   :  { %9483 = vst [vmem:[#allocation67_spill] sm:$0xff] %v8054_v45 }
 0x832   :  { %3830 = vmatpush.bf16.msra.mxu1 %v9469_v58 }
 0x835   :  { %5172 = vmatmul.msk.bf16.gmra.mxu3 %vm330_vm1, %v9470_v44  ;;  %v8060_v58 = vpop.permute.xlu2 %4037 }
 0x836   :  { %v8006_v13 = vpop.f32.mrf.mxu2  ;;  %9484 = vst [vmem:[#allocation91_spill] sm:$0xff] %v8060_v58  ;;  %v9512_v58 = vld [vmem:[#allocation86_spill] sm:$0xff] }
 0x837   :  { %v8062_v44 = vpop.permute.xlu0 %4039 }
 0x838   :  { %9485 = vst [vmem:[#allocation76_spill] sm:$0xff] %v8062_v44 }
 0x83d   :  { %5176 = vmatmul.msk.bf16.gmra.mxu1 %vm330_vm1, %v9471_v35 }
 0x83e   :  { %v8010_v38 = vpop.f32.mrf.mxu2 }
 0x842   :  { %v8012_v23 = vpop.f32.mrf.mxu0 }
 0x845   :  { %5179 = vmatmul.msk.bf16.vlgmr.msrb.gmra.mxu3 %vm330_vm1, %v9472_v41 }
 0x846   :  { %3909 = vmatpush.bf16.msrb.mxu3 %v3901_v14  ;;  %v8018_v39 = vpop.f32.mrf.mxu2 }
 0x84a   :  { %3910 = vmatpush.bf16.msrb.mxu3 %v9473_v3  ;;  %v8021_v31 = vpop.f32.mrf.mxu0 }
 0x84d   :  { %5183 = vmatmul.msk.bf16.vlgmr.msrb.gmra.mxu1 %vm330_vm1, %v9474_v50  ;;  %v8074_v50 = vpop.permute.xlu0 %4045 }
 0x84e   :  { %3989 = vmatpush.bf16.msrb.mxu1 %v3981_v49  ;;  %v3277_v57 = vpop.f32.mrf.mxu2  ;;  %v8072_v49 = vpop.permute.xlu2 %4043  ;;  %9487 = vst [vmem:[#allocation106_spill] sm:$0xff] %v8074_v50 }
 0x84f   :  { %9486 = vst [vmem:[#allocation12_spill] sm:$0xff] %v8072_v49 }
 0x850   :  { %v8056_v8 = vpop.f32.mrf.mxu3 }
 0x852   :  { %3990 = vmatpush.bf16.msrb.mxu1 %v3970_v25  ;;  %v8027_v5 = vpop.f32.mrf.mxu0  ;;  %v8058_v17 = vpop.f32.mrf.mxu1 }
 0x855   :  { %5180 = vmatmul.msk.bf16.gmra.mxu3 %vm330_vm1, %v9475_v11 }
 0x858   :  { %v8064_v35 = vpop.f32.mrf.mxu3 }
 0x85a   :  { %v3047_v59 = vpop.f32.mrf.mxu0  ;;  %v8066_v14 = vpop.f32.mrf.mxu1 }
 0x85d   :  { %5184 = vmatmul.msk.bf16.gmra.mxu1 %vm330_vm1, %v9476_v52  ;;  %v8078_v52 = vpop.permute.xlu2 %4049 }
 0x85e   :  { %9488 = vst [vmem:[#allocation43_spill] sm:$0xff] %v8078_v52 }
 0x862   :  { %v3194_v47 = vpop.f32.mrf.mxu0 }
 0x863   :  { %v8034_v12 = vadd.f32 %v3194_v47, %v9477_v15  ;;  %v8080_v47 = vpop.permute.xlu0 %4051 }
 0x864   :  { %9489 = vst [vmem:[#allocation50_spill] sm:$0xff] %v8080_v47 }
 0x865   :  { %v3411_v6 = vsel %vm655_vm3, %v8034_v12, -inf }
 0x866   :  { %3412 = vmax.xlane.f32.xlu0 %v3411_v6 }
 0x86a   :  { %v3196_v53 = vpop.f32.mrf.mxu0 }
 0x86b   :  { %v8039_v48 = vadd.f32 %v3196_v53, %v9478_v19  ;;  %v9490_v53 = vld [vmem:[#allocation59_spill] sm:$0xff] }
 0x86d   :  { %v3414_v28 = vsel %vm655_vm3, %v8039_v48, -inf }
 0x86e   :  { %3415 = vmax.xlane.f32.xlu2 %v3414_v28  ;;  %v8085_v28 = vpop.permute.xlu2 %4055 }
 0x86f   :  { %9491 = vst [vmem:[#allocation60_spill] sm:$0xff] %v8085_v28 }
 0x872   :  { %v3199_v2 = vpop.f32.mrf.mxu0 }
 0x873   :  { %v8044_v27 = vadd.f32 %v3199_v2, %v9479_v9  ;;  %v8089_v9 = vpop.permute.xlu0 %4057 }
 0x874   :  { %9492 = vst [vmem:[#allocation18_spill] sm:$0xff] %v8089_v9 }
 0x875   :  { %v3417_v51 = vsel %vm655_vm3, %v8044_v27, -inf }
 0x876   :  { %3418 = vmax.xlane.f32.xlu1 %v3417_v51  ;;  %v8102_v28 = vpop.permute.xlu2 %4061 }
 0x877   :  { %9495 = vst [vmem:[#allocation19_spill] sm:$0xff] %v8102_v28 }
 0x87a   :  { %v3201_v0 = vpop.f32.mrf.mxu0 }
 0x87b   :  { %v9493_v0 = vld [vmem:[#allocation72_spill] sm:$0xff] }
 0x882   :  { %v3346_v37 = vpop.f32.mrf.mxu0 }
 0x883   :  { %v8134_v52 = vadd.f32 %v3346_v37, %v9504_v34  ;;  %v9507_v37 = vld [vmem:[#allocation54_spill] sm:$0xff] }
 0x88a   :  { %v3348_v54 = vpop.f32.mrf.mxu0 }
 0x892   :  { %v8068_v41 = vpop.f32.mrf.mxu0 }
 0x898   :  { %v8070_v3 = vpop.f32.mrf.mxu3 }
 0x89a   :  { %v8076_v57 = vpop.f32.mrf.mxu1  ;;  %v3353_v25 = vpop.f32.mrf.mxu0 }
 0x89b   :  { %v8093_v25 = vadd.f32 %v8006_v13, %v9493_v0  ;;  %v8108_v13 = vadd.f32 %v8010_v38, %v9497_v33  ;;  %v9498_v0 = vld [vmem:[#allocation49_spill] sm:$0xff]  ;;  %v8122_v38 = vpop.permute.xlu2 %4067 }
 0x89c   :  { %9500 = vst [vmem:[#allocation63_spill] sm:$0xff] %v8122_v38 }
 0x8a0   :  { %v3007_v11 = vpop.f32.mrf.mxu3 }
 0x8a2   :  { %v3087_v59 = vpop.f32.mrf.mxu1 }
 0x8a3   :  { %v9494_v59 = vld [vmem:[#allocation61_spill] sm:$0xff] }
 0x8a8   :  { %v3156_v15 = vpop.f32.mrf.mxu3 }
 0x8aa   :  { %v3232_v6 = vpop.f32.mrf.mxu1 }
 0x8ab   :  { %v8083_v19 = vadd.f32 %v3232_v6, %v9490_v53  ;;  %v3429_v53 = vsel %vm655_vm3, %v8093_v25, -inf }
 0x8ad   :  { %v3420_v2 = vsel %vm655_vm3, %v8083_v19, -inf }
 0x8ae   :  { %3421 = vmax.xlane.f32.xlu0 %v3420_v2  ;;  %v8104_v2 = vpop.permute.xlu0 %4063 }
 0x8af   :  { %9496 = vst [vmem:[#allocation20_spill] sm:$0xff] %v8104_v2 }
 0x8b0   :  { %v3158_v51 = vpop.f32.mrf.mxu3 }
 0x8b2   :  { %v3234_v11 = vpop.f32.mrf.mxu1 }
 0x8b3   :  { %v8096_v1 = vadd.f32 %v3234_v11, %v9494_v59  ;;  %v8111_v11 = vadd.f32 %v3156_v15, %v9498_v0  ;;  %v9501_v15 = vld [vmem:[#allocation79_spill] sm:$0xff] }
 0x8b4   :  { %v8126_v0 = vadd.f32 %v8018_v39, %v9501_v15  ;;  %v3447_v39 = vsel %vm655_vm3, %v8134_v52, -inf  ;;  %v9506_v15 = vld [vmem:[#allocation83_spill] sm:$0xff] }
 0x8b5   :  { %v3423_v6 = vsel %vm655_vm3, %v8096_v1, -inf  ;;  %v3402_v21 = vsel %vm655_vm3, %v8111_v11, -inf }
 0x8b6   :  { %3424 = vmax.xlane.f32.xlu2 %v3423_v6  ;;  %3430 = vmax.xlane.f32.xlu0 %v3429_v53  ;;  %v3432_v53 = vsel %vm655_vm3, %v8108_v13, -inf  ;;  %v8131_v50 = vpop.permute.xlu0 %4069 }
 0x8b7   :  { %9503 = vst [vmem:[#allocation88_spill] sm:$0xff] %v8131_v50 }
 0x8b8   :  { %v3161_v60 = vpop.f32.mrf.mxu3 }
 0x8b9   :  { %v8148_v34 = vadd.f32 %v3161_v60, %v9507_v37 }
 0x8ba   :  { %v3237_v59 = vpop.f32.mrf.mxu1 }
 0x8bb   :  { %v8114_v45 = vadd.f32 %v3237_v59, %v9499_v40  ;;  %v9502_v40 = vld [vmem:[#allocation51_spill] sm:$0xff] }
 0x8bc   :  { %v8129_v59 = vadd.f32 %v3158_v51, %v9502_v40  ;;  %v8145_v40 = vadd.f32 %v3348_v54, %v9506_v15  ;;  %v8160_v15 = vpop.permute.xlu1 %4071 }
 0x8bd   :  { %v3426_v6 = vsel %vm655_vm3, %v8114_v45, -inf  ;;  %9509 = vst [vmem:[#allocation31_spill] sm:$0xff] %v8160_v15  ;;  %v9514_v15 = vld [vmem:[#allocation87_spill] sm:$0xff] }
 0x8be   :  { %3427 = vmax.xlane.f32.xlu1 %v3426_v6  ;;  %3433 = vmax.xlane.f32.xlu2 %v3432_v53  ;;  %v3435_v53 = vsel %vm655_vm3, %v8126_v0, -inf }
 0x8bf   :  { %3403 = vmax.xlane.f32.xlu0 %v3402_v21  ;;  %v3405_v21 = vsel %vm655_vm3, %v8129_v59, -inf }
 0x8c0   :  { %v3163_v33 = vpop.f32.mrf.mxu3 }
 0x8c1   :  { %v8142_v33 = vpop.permute.xlu2 %4121 }
 0x8c2   :  { %v3239_v6 = vpop.f32.mrf.mxu1  ;;  %9505 = vst [vmem:[#allocation26_spill] sm:$0xff] %v8142_v33 }
 0x8c3   :  { %v3395_v6 = vpop.xlane.xlu0 %3394 }
 0x8c6   :  { %3436 = vmax.xlane.f32.xlu1 %v3435_v53  ;;  %3406 = vmax.xlane.f32.xlu2 %v3405_v21  ;;  %v3465_v53 = vsub.f32 %v7979_v56, %v3395_v6  ;;  %v3408_v21 = vsel %vm655_vm3, %v8148_v34, -inf  ;;  %v9511_v6 = vld [vmem:[#allocation75_spill] sm:$0xff] }
 0x8c7   :  { %3448 = vmax.xlane.f32.xlu0 %v3447_v39  ;;  %v3450_v39 = vsel %vm655_vm3, %v8145_v40, -inf }
 0x8c8   :  { %v3308_v51 = vpop.f32.mrf.mxu3  ;;  %v3489_v37 = vmul.f32 1.442695, %v3465_v53 }
 0x8c9   :  { %v3398_v56 = vpop.xlane.xlu2 %3397  ;;  %v8167_v49 = vadd.f32 %v3308_v51, %v9511_v6 }
 0x8ca   :  { %v3384_v50 = vpop.f32.mrf.mxu1  ;;  %5538 = vpow2.f32 %v3489_v37 }
 0x8cb   :  { %v8151_v22 = vadd.f32 %v3384_v50, %v9508_v20  ;;  %v9510_v20 = vld [vmem:[#allocation84_spill] sm:$0xff] }
 0x8cc   :  { %v8164_v50 = vadd.f32 %v8068_v41, %v9510_v20  ;;  %v3438_v41 = vsel %vm655_vm3, %v8167_v49, -inf  ;;  %v3401_v20 = vpop.xlane.xlu1 %3400 }
 0x8cd   :  { %v3456_v54 = vsel %vm655_vm3, %v8151_v22, -inf }
 0x8ce   :  { %3409 = vmax.xlane.f32.xlu1 %v3408_v21  ;;  %3451 = vmax.xlane.f32.xlu2 %v3450_v39  ;;  %v3466_v21 = vsub.f32 %v7985_v63, %v3398_v56  ;;  %v3453_v39 = vsel %vm655_vm3, %v8164_v50, -inf }
 0x8cf   :  { %3457 = vmax.xlane.f32.xlu0 %v3456_v54 }
 0x8d0   :  { %v3310_v60 = vpop.f32.mrf.mxu3  ;;  %v3491_v51 = vmul.f32 1.442695, %v3466_v21  ;;  %v8182_v56 = vpop.eup %5538 }
 0x8d2   :  { %v3386_v44 = vpop.f32.mrf.mxu1  ;;  %5540 = vpow2.f32 %v3491_v51 }
 0x8d3   :  { %v8170_v33 = vadd.f32 %v3386_v44, %v9512_v58  ;;  %v9513_v58 = vld [vmem:[#allocation78_spill] sm:$0xff] }
 0x8d4   :  { %v8180_v44 = vadd.f32 %v3310_v60, %v9513_v58  ;;  %v9515_v58 = vld [vmem:[#allocation82_spill] sm:$0xff] }
 0x8d5   :  { %v3459_v53 = vsel %vm655_vm3, %v8170_v33, -inf }
 0x8d6   :  { %3454 = vmax.xlane.f32.xlu1 %v3453_v39  ;;  %3460 = vmax.xlane.f32.xlu2 %v3459_v53  ;;  %v3467_v39 = vsub.f32 %v7994_v30, %v3401_v20  ;;  %v3441_v60 = vsel %vm655_vm3, %v8180_v44, -inf }
 0x8d7   :  { %3439 = vmax.xlane.f32.xlu0 %v3438_v41  ;;  %v3537_v41 = vsel %vm655_vm3, %v8182_v56, 0.0 }
 0x8d8   :  { %v3313_v54 = vpop.f32.mrf.mxu3  ;;  %v8198_v30 = vpop.eup %5540 }
 0x8d9   :  { %v3413_v63 = vpop.xlane.xlu0 %3412  ;;  %v8196_v51 = vadd.f32 %v3313_v54, %v9515_v58 }
 0x8da   :  { %v3389_v37 = vpop.f32.mrf.mxu1  ;;  %v3471_v6 = vsub.f32 %v8034_v12, %v3413_v63  ;;  %v3493_v12 = vmul.f32 1.442695, %v3467_v39  ;;  %v3540_v39 = vsel %vm655_vm3, %v8198_v30, 0.0 }
 0x8db   :  { %v8186_v29 = vadd.f32 %v3389_v37, %v9514_v15 }
 0x8dc   :  { %v3501_v53 = vmul.f32 1.442695, %v3471_v6 }
 0x8dd   :  { %v3462_v21 = vsel %vm655_vm3, %v8186_v29, -inf }
 0x8de   :  { %3463 = vmax.xlane.f32.xlu1 %v3462_v21  ;;  %3442 = vmax.xlane.f32.xlu2 %v3441_v60  ;;  %5542 = vpow2.f32 %v3501_v53  ;;  %v3444_v60 = vsel %vm655_vm3, %v8196_v51, -inf }
 0x8df   :  { %3538 = vadd.xlane.f32.xlu0 %v3537_v41  ;;  %5544 = vpow2.f32 %v3493_v12 }
 0x8e0   :  { %v3315_v15 = vpop.f32.mrf.mxu3 }
 0x8e1   :  { %v3416_v20 = vpop.xlane.xlu2 %3415 }
 0x8e2   :  { %v3391_v63 = vpop.f32.mrf.mxu1  ;;  %v3472_v37 = vsub.f32 %v8039_v48, %v3416_v20 }
 0x8e4   :  { %v8201_v6 = vpop.eup %5542  ;;  %v3503_v21 = vmul.f32 1.442695, %v3472_v37 }
 0x8e5   :  { %v3555_v54 = vsel %vm655_vm3, %v8201_v6, 0.0  ;;  %v8209_v53 = vpop.eup %5544 }
 0x8e6   :  { %3445 = vmax.xlane.f32.xlu1 %v3444_v60  ;;  %3541 = vadd.xlane.f32.xlu2 %v3540_v39  ;;  %5546 = vpow2.f32 %v3503_v21  ;;  %v3543_v58 = vsel %vm655_vm3, %v8209_v53, 0.0 }
 0x8e7   :  { %3556 = vadd.xlane.f32.xlu0 %v3555_v54 }
 0x8e9   :  { %v3419_v48 = vpop.xlane.xlu1 %3418 }
 0x8ea   :  { %v3473_v41 = vsub.f32 %v8044_v27, %v3419_v48 }
 0x8ec   :  { %v8212_v12 = vpop.eup %5546  ;;  %v3505_v15 = vmul.f32 1.442695, %v3473_v41 }
 0x8ed   :  { %v3558_v20 = vsel %vm655_vm3, %v8212_v12, 0.0 }
 0x8ee   :  { %3544 = vadd.xlane.f32.xlu1 %v3543_v58  ;;  %5548 = vpow2.f32 %v3505_v15  ;;  %3559 = vadd.xlane.f32.xlu2 %v3558_v20 }
 0x8f4   :  { %v8218_v63 = vpop.eup %5548 }
 0x8f5   :  { %v3561_v37 = vsel %vm655_vm3, %v8218_v63, 0.0 }
 0x8f6   :  { %3562 = vadd.xlane.f32.xlu1 %v3561_v37 }
 0x906   :  { %4127 = vrot.lane.b32.xlu2 %v7950_v16, %s5672_s0 }
 0x90f   :  { %4125 = vrot.lane.b32.xlu1 %v7907_v42, %s5672_s0 }
 0x921   :  { %v3422_v27 = vpop.xlane.xlu0 %3421 }
 0x922   :  { %v3474_v21 = vsub.f32 %v8083_v19, %v3422_v27 }
 0x924   :  { %v3507_v60 = vmul.f32 1.442695, %v3474_v21 }
 0x926   :  { %5550 = vpow2.f32 %v3507_v60 }
 0x929   :  { %v3425_v39 = vpop.xlane.xlu2 %3424  ;;  %v3431_v54 = vpop.xlane.xlu0 %3430 }
 0x92a   :  { %v3475_v48 = vsub.f32 %v8096_v1, %v3425_v39  ;;  %v3477_v41 = vsub.f32 %v8093_v25, %v3431_v54 }
 0x92c   :  { %v8229_v15 = vpop.eup %5550  ;;  %v3509_v58 = vmul.f32 1.442695, %v3475_v48  ;;  %v3513_v20 = vmul.f32 1.442695, %v3477_v41 }
 0x92d   :  { %v3564_v16 = vsel %vm655_vm3, %v8229_v15, 0.0 }
 0x92e   :  { %5552 = vpow2.f32 %v3509_v58  ;;  %3565 = vadd.xlane.f32.xlu0 %v3564_v16 }
 0x92f   :  { %5554 = vpow2.f32 %v3513_v20 }
 0x931   :  { %v3428_v42 = vpop.xlane.xlu1 %3427  ;;  %v3434_v19 = vpop.xlane.xlu2 %3433 }
 0x932   :  { %v3476_v37 = vsub.f32 %v8114_v45, %v3428_v42  ;;  %v3478_v27 = vsub.f32 %v8108_v13, %v3434_v19  ;;  %v3404_v21 = vpop.xlane.xlu0 %3403 }
 0x933   :  { %v3468_v1 = vsub.f32 %v8111_v11, %v3404_v21 }
 0x934   :  { %v8236_v25 = vpop.eup %5552  ;;  %v3511_v60 = vmul.f32 1.442695, %v3476_v37  ;;  %v3515_v39 = vmul.f32 1.442695, %v3478_v27 }
 0x935   :  { %v8238_v54 = vpop.eup %5554  ;;  %v3495_v48 = vmul.f32 1.442695, %v3468_v1  ;;  %v3567_v41 = vsel %vm655_vm3, %v8236_v25, 0.0 }
 0x936   :  { %5556 = vpow2.f32 %v3511_v60  ;;  %3568 = vadd.xlane.f32.xlu2 %v3567_v41  ;;  %v3573_v45 = vsel %vm655_vm3, %v8238_v54, 0.0 }
 0x937   :  { %5558 = vpow2.f32 %v3515_v39  ;;  %3574 = vadd.xlane.f32.xlu0 %v3573_v45 }
 0x938   :  { %5560 = vpow2.f32 %v3495_v48 }
 0x939   :  { %v3437_v13 = vpop.xlane.xlu1 %3436  ;;  %v3407_v11 = vpop.xlane.xlu2 %3406 }
 0x93a   :  { %v3479_v58 = vsub.f32 %v8126_v0, %v3437_v13  ;;  %v3469_v20 = vsub.f32 %v8129_v59, %v3407_v11  ;;  %v8246_v16 = vpop.xlane.xlu0 %3448 }
 0x93c   :  { %v8248_v42 = vpop.eup %5556  ;;  %v3517_v19 = vmul.f32 1.442695, %v3479_v58  ;;  %v3497_v37 = vmul.f32 1.442695, %v3469_v20 }
 0x93d   :  { %v8250_v27 = vpop.eup %5558  ;;  %v3570_v21 = vsel %vm655_vm3, %v8248_v42, 0.0 }
 0x93e   :  { %v8254_v1 = vpop.eup %5560  ;;  %5562 = vpow2.f32 %v3517_v19  ;;  %3571 = vadd.xlane.f32.xlu1 %v3570_v21  ;;  %v3576_v0 = vsel %vm655_vm3, %v8250_v27, 0.0 }
 0x93f   :  { %5564 = vpow2.f32 %v3497_v37  ;;  %3577 = vadd.xlane.f32.xlu2 %v3576_v0  ;;  %v3546_v59 = vsel %vm655_vm3, %v8254_v1, 0.0 }
 0x940   :  { %3547 = vadd.xlane.f32.xlu0 %v3546_v59 }
 0x941   :  { %v3410_v60 = vpop.xlane.xlu1 %3409  ;;  %v3452_v39 = vpop.xlane.xlu2 %3451 }
 0x942   :  { %v3470_v48 = vsub.f32 %v8148_v34, %v3410_v60  ;;  %v3484_v41 = vsub.f32 %v8145_v40, %v3452_v39  ;;  %v8262_v45 = vpop.xlane.xlu0 %3457 }
 0x944   :  { %v8264_v13 = vpop.eup %5562  ;;  %v3499_v11 = vmul.f32 1.442695, %v3470_v48  ;;  %v3527_v58 = vmul.f32 1.442695, %v3484_v41 }
 0x945   :  { %v8266_v20 = vpop.eup %5564  ;;  %v3579_v19 = vsel %vm655_vm3, %v8264_v13, 0.0 }
 0x946   :  { %5566 = vpow2.f32 %v3499_v11  ;;  %3580 = vadd.xlane.f32.xlu1 %v3579_v19  ;;  %v3549_v37 = vsel %vm655_vm3, %v8266_v20, 0.0 }
 0x947   :  { %5568 = vpow2.f32 %v3527_v58  ;;  %3550 = vadd.xlane.f32.xlu2 %v3549_v37 }
 0x949   :  { %v3455_v34 = vpop.xlane.xlu1 %3454  ;;  %v8272_v40 = vpop.xlane.xlu2 %3460 }
 0x94a   :  { %v3485_v21 = vsub.f32 %v8164_v50, %v3455_v34  ;;  %v8275_v0 = vpop.xlane.xlu0 %3439 }
 0x94c   :  { %v8277_v59 = vpop.eup %5566  ;;  %v3529_v60 = vmul.f32 1.442695, %v3485_v21 }
 0x94d   :  { %v8279_v39 = vpop.eup %5568  ;;  %v3552_v48 = vsel %vm655_vm3, %v8277_v59, 0.0 }
 0x94e   :  { %9516 = vst [vmem:[#allocation105_spill] sm:$0xff] %v8279_v39  ;;  %5570 = vpow2.f32 %v3529_v60  ;;  %3553 = vadd.xlane.f32.xlu1 %v3552_v48  ;;  %v3594_v41 = vsel %vm655_vm3, %v8279_v39, 0.0 }
 0x94f   :  { %3595 = vadd.xlane.f32.xlu2 %v3594_v41 }
 0x951   :  { %v8285_v11 = vpop.xlane.xlu1 %3463  ;;  %v8287_v58 = vpop.xlane.xlu2 %3442 }
 0x952   :  { %v3539_v50 = vpop.xlane.xlu0 %3538 }
 0x953   :  { %5572 = vrcp.f32 %v3539_v50 }
 0x954   :  { %v8289_v19 = vpop.eup %5570  ;;  %4123 = vrot.lane.b32.xlu0 %v7897_v18, %s5672_s0 }
 0x955   :  { %9517 = vst [vmem:[#allocation25_spill] sm:$0xff] %v8289_v19  ;;  %v3597_v37 = vsel %vm655_vm3, %v8289_v19, 0.0 }
 0x956   :  { %3598 = vadd.xlane.f32.xlu1 %v3597_v37 }
 0x959   :  { %v8295_v34 = vpop.xlane.xlu1 %3445  ;;  %v3542_v21 = vpop.xlane.xlu2 %3541 }
 0x95a   :  { %v5573_v60 = vpop.eup %5572  ;;  %5574 = vrcp.f32 %v3542_v21  ;;  %v3557_v48 = vpop.xlane.xlu0 %3556 }
 0x95b   :  { %v3633_v41 = vmul.f32 %v5573_v60, %v8182_v56  ;;  %5576 = vrcp.f32 %v3557_v48 }
 0x95d   :  { %v3657_v2 = vpack.c.bf16 %v3633_v41, %v3633_v41 }
 0x95f   :  { %v3684_v37 = vunpack.c.l.b16 %v3657_v2 }
 0x960   :  { %v5575_v61 = vpop.eup %5574 }
 0x961   :  { %v3634_v50 = vmul.f32 %v5575_v61, %v8198_v30  ;;  %v3545_v9 = vpop.xlane.xlu1 %3544  ;;  %v3560_v18 = vpop.xlane.xlu2 %3559 }
 0x962   :  { %5578 = vrcp.f32 %v3545_v9  ;;  %v5577_v38 = vpop.eup %5576 }
 0x963   :  { %v3658_v47 = vpack.c.bf16 %v3634_v50, %v3634_v50  ;;  %5580 = vrcp.f32 %v3560_v18  ;;  %v3639_v19 = vmul.f32 %v5577_v38, %v8201_v6  ;;  %v3480_v50 = vsub.f32 %v8167_v49, %v8275_v0 }
 0x964   :  { %v3481_v0 = vsub.f32 %v8180_v44, %v8287_v58  ;;  %v3488_v44 = vsub.f32 %v8186_v29, %v8285_v11 }
 0x965   :  { %v3685_v28 = vunpack.c.l.b16 %v3658_v47  ;;  %v3663_v60 = vpack.c.bf16 %v3639_v19, %v3639_v19  ;;  %v3483_v47 = vsub.f32 %v8134_v52, %v8246_v16 }
 0x967   :  { %v3687_v39 = vpack.c.b16 %v3685_v28, %v3684_v37  ;;  %4133 = vrot.lane.b32.xlu2 %v7891_v62, %s5672_s0  ;;  %v3764_v38 = vunpack.c.l.b16 %v3663_v60  ;;  %v3525_v62 = vmul.f32 1.442695, %v3483_v47 }
 0x968   :  { %v5579_v56 = vpop.eup %5578 }
 0x969   :  { %v5581_v21 = vpop.eup %5580  ;;  %5185 = vmatmul.msk.bf16.vlgmr.msra.gmra.mxu2 %vm655_vm3, %v3687_v39  ;;  %v3563_v9 = vpop.xlane.xlu1 %3562  ;;  %v3635_v30 = vmul.f32 %v5579_v56, %v8209_v53  ;;  %v3486_v53 = vsub.f32 %v8151_v22, %v8262_v45 }
 0x96a   :  { %v3640_v61 = vmul.f32 %v5581_v21, %v8212_v12  ;;  %5582 = vrcp.f32 %v3563_v9  ;;  %v3535_v9 = vmul.f32 1.442695, %v3488_v44  ;;  %v8349_v47 = vpop.permute.xlu2 %4127 }
 0x96b   :  { %v3659_v6 = vpack.c.bf16 %v3635_v30, %v3635_v30  ;;  %5584 = vpow2.f32 %v3525_v62  ;;  %v3531_v16 = vmul.f32 1.442695, %v3486_v53  ;;  %v3482_v30 = vsub.f32 %v8196_v51, %v8295_v34 }
 0x96c   :  { %v3664_v2 = vpack.c.bf16 %v3640_v61, %v3640_v61 }
 0x96d   :  { %v3686_v12 = vunpack.c.l.b16 %v3659_v6  ;;  %5586 = vpow2.f32 %v3531_v16 }
 0x96e   :  { %v3765_v28 = vunpack.c.l.b16 %v3664_v2 }
 0x96f   :  { %4131 = vrot.lane.b32.xlu1 %v7970_v43, %s5672_s0  ;;  %v3688_v52 = vpack.c.b16 %v3686_v12, %v3686_v12 }
 0x970   :  { %v3767_v48 = vpack.c.b16 %v3765_v28, %v3764_v38  ;;  %v5583_v39 = vpop.eup %5582  ;;  %v3523_v38 = vmul.f32 1.442695, %v3482_v30 }
 0x971   :  { %v3641_v19 = vmul.f32 %v5583_v39, %v8218_v63  ;;  %v8316_v43 = vpop.eup %5584  ;;  %v3487_v63 = vsub.f32 %v8170_v33, %v8272_v40  ;;  %v3521_v40 = vmul.f32 1.442695, %v3481_v0 }
 0x972   :  { %5189 = vmatmul.msk.bf16.vlgmr.msrb.gmra.mxu0 %vm655_vm3, %v3767_v48  ;;  %v3591_v22 = vsel %vm655_vm3, %v8316_v43, 0.0 }
 0x973   :  { %v3665_v41 = vpack.c.bf16 %v3641_v19, %v3641_v19  ;;  %v8326_v37 = vpop.eup %5586  ;;  %v3533_v56 = vmul.f32 1.442695, %v3487_v63 }
 0x974   :  { %v3600_v49 = vsel %vm655_vm3, %v8326_v37, 0.0 }
 0x975   :  { %v3766_v18 = vunpack.c.l.b16 %v3665_v41  ;;  %v5673_v41 = vmov 0  }
 0x976   :  { %5238 = vset.pattern.permute.xlu2 %v5673_v41  ;;  %5239 = vset.pattern.permute.xlu0 %v5673_v41 }
 0x977   :  { %4137 = vrot.lane.b32.xlu1 %v7912_v26, %s5672_s0  ;;  %v3519_v26 = vmul.f32 1.442695, %v3480_v50  ;;  %v3768_v45 = vpack.c.b16 %v3766_v18, %v3766_v18 }
 0x978   :  { %5240 = vset.pattern.permute.xlu1 %v5673_v41 }
 0x979   :  { %5186 = vmatmul.msk.bf16.gmra.mxu2 %vm655_vm3, %v3688_v52  ;;  %5588 = vpow2.f32 %v3519_v26 }
 0x97a   :  { %5590 = vpow2.f32 %v3533_v56 }
 0x97b   :  { %5592 = vpow2.f32 %v3521_v40 }
 0x97c   :  { %5594 = vpow2.f32 %v3535_v9 }
 0x97e   :  { %3592 = vadd.xlane.f32.xlu0 %v3591_v22 }
 0x97f   :  { %4143 = vrot.lane.b32.xlu1 %v7973_v36, %s5672_s0  ;;  %v8333_v33 = vpop.eup %5588 }
 0x980   :  { %v8335_v36 = vpop.eup %5590  ;;  %v3582_v21 = vsel %vm655_vm3, %v8333_v33, 0.0 }
 0x981   :  { %v3603_v60 = vsel %vm655_vm3, %v8335_v36, 0.0  ;;  %v8341_v61 = vpop.eup %5592  ;;  %v8357_v11 = vpop.permute.xlu1 %4125 }
 0x982   :  { %5190 = vmatmul.msk.bf16.gmra.mxu0 %vm655_vm3, %v3768_v45  ;;  %v3585_v58 = vsel %vm655_vm3, %v8341_v61, 0.0  ;;  %v8353_v28 = vpop.eup %5594 }
 0x983   :  { %v3606_v29 = vsel %vm655_vm3, %v8353_v28, 0.0 }
 0x986   :  { %3601 = vadd.xlane.f32.xlu0 %v3600_v49 }
 0x98e   :  { %3583 = vadd.xlane.f32.xlu0 %v3582_v21 }
 0x990   :  { %3604 = vadd.xlane.f32.xlu2 %v3603_v60 }
 0x998   :  { %3586 = vadd.xlane.f32.xlu2 %v3585_v58 }
 0x9a1   :  { %v3566_v2 = vpop.xlane.xlu0 %3565 }
 0x9a2   :  { %4129 = vrot.lane.b32.xlu0 %v7960_v24, %s5672_s0  ;;  %5596 = vrcp.f32 %v3566_v2 }
 0x9a3   :  { %5598 = vpow2.f32 %v3523_v38 }
 0x9a8   :  { %v5597_v62 = vpop.eup %5596 }
 0x9a9   :  { %3607 = vadd.xlane.f32.xlu1 %v3606_v29  ;;  %v3569_v6 = vpop.xlane.xlu2 %3568  ;;  %v8361_v34 = vpop.eup %5598  ;;  %v3642_v24 = vmul.f32 %v5597_v62, %v8229_v15 }
 0x9aa   :  { %4135 = vrot.lane.b32.xlu0 %v7900_v10, %s5672_s0  ;;  %5600 = vrcp.f32 %v3569_v6  ;;  %v3575_v51 = vpop.xlane.xlu0 %3574  ;;  %v3588_v39 = vsel %vm655_vm3, %v8361_v34, 0.0 }
 0x9ab   :  { %5602 = vrcp.f32 %v3575_v51  ;;  %v3666_v12 = vpack.c.bf16 %v3642_v24, %v3642_v24 }
 0x9b0   :  { %v5601_v48 = vpop.eup %5600  ;;  %4139 = vrot.lane.b32.xlu2 %v7956_v4, %s5672_s0  ;;  %v3804_v4 = vunpack.c.l.b16 %v3666_v12 }
 0x9b1   :  { %v3643_v53 = vmul.f32 %v5601_v48, %v8236_v25  ;;  %3589 = vadd.xlane.f32.xlu1 %v3588_v39  ;;  %v3572_v19 = vpop.xlane.xlu1 %3571  ;;  %v5603_v52 = vpop.eup %5602  ;;  %v4364_v48 = vld [vmem:[%s9034_s1 + $0x10] sm:$0xff] }
 0x9b2   :  { %4141 = vrot.lane.b32.xlu0 %v7968_v55, %s5672_s0  ;;  %5604 = vrcp.f32 %v3572_v19  ;;  %v3578_v10 = vpop.xlane.xlu2 %3577  ;;  %v3645_v25 = vmul.f32 %v5603_v52, %v8238_v54  ;;  %v4366_v52 = vld [vmem:[%s9034_s1 + $0x20] sm:$0xff] }
 0x9b3   :  { %v3667_v15 = vpack.c.bf16 %v3643_v53, %v3643_v53  ;;  %5606 = vrcp.f32 %v3578_v10  ;;  %v3548_v16 = vpop.xlane.xlu0 %3547  ;;  %v4370_v53 = vld [vmem:[%s9034_s1 + $0x40] sm:$0xff] }
 0x9b4   :  { %5608 = vrcp.f32 %v3548_v16  ;;  %v3669_v26 = vpack.c.bf16 %v3645_v25, %v3645_v25  ;;  %v4374_v10 = vld [vmem:[%s9034_s1 + $0x60] sm:$0xff]  ;;  %v4373_v25 = vld [vmem:[%s9034_s1 + $0x58] sm:$0xff] }
 0x9b5   :  { %v3805_v50 = vunpack.c.l.b16 %v3667_v15 }
 0x9b6   :  { %v3844_v40 = vunpack.c.l.b16 %v3669_v26  ;;  %v4369_v26 = vld [vmem:[%s9034_s1 + $0x38] sm:$0xff] }
 0x9b7   :  { %v3807_v18 = vpack.c.b16 %v3805_v50, %v3804_v4  ;;  %v9518_v4 = vld [vmem:[#allocation105_spill] sm:$0xff] }
 0x9b8   :  { %v5605_v22 = vpop.eup %5604  ;;  %4145 = vrot.lane.b32.xlu2 %v7946_v46, %s5672_s0 }
 0x9b9   :  { %v5607_v55 = vpop.eup %5606  ;;  %v3581_v63 = vpop.xlane.xlu1 %3580  ;;  %5191 = vmatmul.msk.bf16.vlgmr.msra.gmra.mxu1 %vm655_vm3, %v3807_v18  ;;  %v3644_v54 = vmul.f32 %v5605_v22, %v8248_v42 }
 0x9ba   :  { %v3646_v45 = vmul.f32 %v5607_v55, %v8250_v27  ;;  %4147 = vrot.lane.b32.xlu0 %v7954_v32, %s5672_s0  ;;  %5610 = vrcp.f32 %v3581_v63  ;;  %v3551_v56 = vpop.xlane.xlu2 %3550  ;;  %v5609_v49 = vpop.eup %5608  ;;  %v4377_v55 = vld [vmem:[%s9034_s1 + $0x78] sm:$0xff] }
 0x9bb   :  { %5612 = vrcp.f32 %v3551_v56  ;;  %v3636_v46 = vmul.f32 %v5609_v49, %v8254_v1  ;;  %v3668_v60 = vpack.c.bf16 %v3644_v54, %v3644_v54 }
 0x9bc   :  { %v3670_v0 = vpack.c.bf16 %v3646_v45, %v3646_v45 }
 0x9bd   :  { %v3660_v32 = vpack.c.bf16 %v3636_v46, %v3636_v46  ;;  %v3806_v42 = vunpack.c.l.b16 %v3668_v60  ;;  %v4376_v60 = vld [vmem:[%s9034_s1 + $0x70] sm:$0xff] }
 0x9be   :  { %v3845_v21 = vunpack.c.l.b16 %v3670_v0 }
 0x9bf   :  { %v3724_v38 = vunpack.c.l.b16 %v3660_v32  ;;  %v3808_v6 = vpack.c.b16 %v3806_v42, %v3806_v42  ;;  %v4372_v32 = vld [vmem:[%s9034_s1 + $0x50] sm:$0xff] }
 0x9c0   :  { %v5611_v44 = vpop.eup %5610  ;;  %v3847_v58 = vpack.c.b16 %v3845_v21, %v3844_v40  ;;  %4151 = vrot.lane.b32.xlu2 %v8056_v8, %s5672_s0 }
 0x9c1   :  { %v5613_v27 = vpop.eup %5612  ;;  %v3554_v9 = vpop.xlane.xlu1 %3553  ;;  %v3647_v1 = vmul.f32 %v5611_v44, %v8264_v13 }
 0x9c2   :  { %v3637_v30 = vmul.f32 %v5613_v27, %v8266_v20  ;;  %4153 = vrot.lane.b32.xlu0 %v8064_v35, %s5672_s0  ;;  %5193 = vmatmul.msk.bf16.vlgmr.msrb.gmra.mxu2 %vm655_vm3, %v3847_v58  ;;  %5614 = vrcp.f32 %v3554_v9  ;;  %v3596_v39 = vpop.xlane.xlu2 %3595 }
 0x9c3   :  { %v3671_v62 = vpack.c.bf16 %v3647_v1, %v3647_v1  ;;  %5616 = vrcp.f32 %v3596_v39 }
 0x9c4   :  { %v3661_v2 = vpack.c.bf16 %v3637_v30, %v3637_v30  ;;  %v9519_v30 = vld [vmem:[#allocation25_spill] sm:$0xff] }
 0x9c5   :  { %v3846_v13 = vunpack.c.l.b16 %v3671_v62 }
 0x9c6   :  { %v3725_v29 = vunpack.c.l.b16 %v3661_v2  ;;  %v8429_v12 = vpop.permute.xlu0 %4123 }
 0x9c7   :  { %v3848_v24 = vpack.c.b16 %v3846_v13, %v3846_v13 }
 0x9c8   :  { %v3727_v8 = vpack.c.b16 %v3725_v29, %v3724_v38  ;;  %4157 = vrot.lane.b32.xlu2 %v8012_v23, %s5672_s0  ;;  %v5615_v51 = vpop.eup %5614 }
 0x9c9   :  { %5192 = vmatmul.msk.bf16.gmra.mxu1 %vm655_vm3, %v3808_v6  ;;  %v3638_v35 = vmul.f32 %v5615_v51, %v8277_v59  ;;  %v4367_v59 = vld [vmem:[%s9034_s1 + $0x28] sm:$0xff]  ;;  %v5617_v16 = vpop.eup %5616  ;;  %v3599_v18 = vpop.xlane.xlu1 %3598  ;;  %v4380_v6 = vld [vmem:[%s9034_s1 + $0x90] sm:$0xff] }
 0x9ca   :  { %4159 = vrot.lane.b32.xlu0 %v8021_v31, %s5672_s0  ;;  %5187 = vmatmul.msk.bf16.vlgmr.msra.gmra.mxu3 %vm655_vm3, %v3727_v8  ;;  %v4363_v31 = vld [vmem:[%s9034_s1 + $0x8] sm:$0xff]  ;;  %v3652_v50 = vmul.f32 %v5617_v16, %v9518_v4  ;;  %v8455_v54 = vpop.permute.xlu2 %4133 }
 0x9cb   :  { %4149 = vrot.lane.b32.xlu1 %v7962_v7, %s5672_s0  ;;  %v3662_v20 = vpack.c.bf16 %v3638_v35, %v3638_v35  ;;  %v4362_v7 = vld [vmem:[%s9034_s1] sm:$0xff]  ;;  %v4375_v35 = vld [vmem:[%s9034_s1 + $0x68] sm:$0xff] }
 0x9cc   :  { %v3676_v45 = vpack.c.bf16 %v3652_v50, %v3652_v50 }
 0x9cd   :  { %v3726_v23 = vunpack.c.l.b16 %v3662_v20 }
 0x9ce   :  { %v3925_v21 = vunpack.c.l.b16 %v3676_v45 }
 0x9d0   :  { %4163 = vrot.lane.b32.xlu2 %v8058_v17, %s5672_s0  ;;  %v3728_v17 = vpack.c.b16 %v3726_v23, %v3726_v23 }
 0x9d2   :  { %4165 = vrot.lane.b32.xlu0 %v8066_v14, %s5672_s0  ;;  %5194 = vmatmul.msk.bf16.gmra.mxu2 %vm655_vm3, %v3848_v24  ;;  %v4365_v14 = vld [vmem:[%s9034_s1 + $0x18] sm:$0xff] }
 0x9d3   :  { %4155 = vrot.lane.b32.xlu1 %v8070_v3, %s5672_s0  ;;  %v4368_v3 = vld [vmem:[%s9034_s1 + $0x30] sm:$0xff] }
 0x9d8   :  { %4388 = vperm.xlu2 %5238, %v4362_v7  }
 0x9da   :  { %4393 = vperm.xlu0 %5239, %v4363_v31   ;;  %5188 = vmatmul.msk.bf16.gmra.mxu3 %vm655_vm3, %v3728_v17 }
 0x9db   :  { %4161 = vrot.lane.b32.xlu1 %v8027_v5, %s5672_s0  ;;  %v4371_v5 = vld [vmem:[%s9034_s1 + $0x48] sm:$0xff] }
 0x9e0   :  { %4403 = vperm.xlu2 %5238, %v4365_v14   ;;  %v4379_v14 = vld [vmem:[%s9034_s1 + $0x88] sm:$0xff] }
 0x9e1   :  { %v8467_v9 = vpop.permute.xlu1 %4131 }
 0x9e2   :  { %4418 = vperm.xlu0 %5239, %v4368_v3  }
 0x9e3   :  { %4167 = vrot.lane.b32.xlu1 %v8076_v57, %s5672_s0 }
 0x9e8   :  { %4413 = vperm.xlu2 %5238, %v4367_v59  }
 0x9e9   :  { %v8481_v20 = vpop.permute.xlu1 %4137 }
 0x9ea   :  { %4433 = vperm.xlu0 %5239, %v4371_v5  }
 0x9eb   :  { %4398 = vperm.xlu1 %5240, %v4364_v48  }
 0x9ec   :  { %v8431_v57 = vpop.f32.mrf.mxu2 }
 0x9ef   :  { %v8436_v19 = vpop.f32.mrf.mxu0 }
 0x9f0   :  { %4428 = vperm.xlu2 %5238, %v4370_v53  }
 0x9f1   :  { %v3593_v15 = vpop.xlane.xlu0 %3592 }
 0x9f2   :  { %5618 = vrcp.f32 %v3593_v15  ;;  %4448 = vperm.xlu0 %5239, %v4374_v10  }
 0x9f3   :  { %4408 = vperm.xlu1 %5240, %v4366_v52   ;;  %5620 = vrcp.f32 %v3599_v18 }
 0x9f4   :  { %v3714_v41 = vpop.f32.mrf.mxu2 }
 0x9f7   :  { %v3794_v22 = vpop.f32.mrf.mxu0 }
 0x9f8   :  { %v5619_v63 = vpop.eup %5618  ;;  %4443 = vperm.xlu2 %5238, %v4373_v25   ;;  %v4382_v25 = vld [vmem:[%s9034_s1 + $0xa0] sm:$0xff] }
 0x9f9   :  { %v3651_v56 = vmul.f32 %v5619_v63, %v8316_v43  ;;  %v3602_v49 = vpop.xlane.xlu0 %3601  ;;  %v4381_v43 = vld [vmem:[%s9034_s1 + $0x98] sm:$0xff]  ;;  %v5621_v27 = vpop.eup %5620 }
 0x9fa   :  { %4463 = vperm.xlu0 %5239, %v4377_v55   ;;  %5622 = vrcp.f32 %v3602_v49  ;;  %v3653_v42 = vmul.f32 %v5621_v27, %v9519_v30  ;;  %v9523_v27 = vld [vmem:[#allocation11_spill] sm:$0xff] }
 0x9fb   :  { %v3675_v0 = vpack.c.bf16 %v3651_v56, %v3651_v56  ;;  %4423 = vperm.xlu1 %5240, %v4369_v26  }
 0x9fc   :  { %v8457_v40 = vpop.f32.mrf.mxu2  ;;  %v3677_v62 = vpack.c.bf16 %v3653_v42, %v3653_v42 }
 0x9fd   :  { %v3924_v46 = vunpack.c.l.b16 %v3675_v0 }
 0x9fe   :  { %v3926_v31 = vunpack.c.l.b16 %v3677_v62 }
 0x9ff   :  { %v3927_v44 = vpack.c.b16 %v3925_v21, %v3924_v46  ;;  %v8462_v58 = vpop.f32.mrf.mxu0 }
 0xa00   :  { %4458 = vperm.xlu2 %5238, %v4376_v60   ;;  %v5623_v38 = vpop.eup %5622  ;;  %v3928_v48 = vpack.c.b16 %v3926_v31, %v3926_v31  ;;  %v9520_v60 = vld [vmem:[#allocation19_spill] sm:$0xff] }
 0xa01   :  { %5197 = vmatmul.msk.bf16.vlgmr.msra.gmra.mxu0 %vm655_vm3, %v3927_v44  ;;  %v3584_v1 = vpop.xlane.xlu0 %3583  ;;  %v3654_v8 = vmul.f32 %v5623_v38, %v8326_v37  ;;  %v9521_v44 = vld [vmem:[#allocation29_spill] sm:$0xff] }
 0xa02   :  { %4483 = vperm.xlu0 %5239, %v4381_v43  }
 0xa03   :  { %4438 = vperm.xlu1 %5240, %v4372_v32   ;;  %v3605_v2 = vpop.xlane.xlu2 %3604  ;;  %v3678_v24 = vpack.c.bf16 %v3654_v8, %v3654_v8 }
 0xa04   :  { %5624 = vrcp.f32 %v3605_v2  ;;  %v3719_v29 = vpop.f32.mrf.mxu2 }
 0xa05   :  { %5626 = vrcp.f32 %v3584_v1  ;;  %v3964_v3 = vunpack.c.l.b16 %v3678_v24 }
 0xa07   :  { %v3799_v51 = vpop.f32.mrf.mxu0 }
 0xa08   :  { %4478 = vperm.xlu2 %5238, %v4380_v6   ;;  %v9524_v6 = vld [vmem:[#allocation63_spill] sm:$0xff]  ;;  %v9526_v51 = vld [vmem:[#allocation18_spill] sm:$0xff] }
 0xa0a   :  { %v5625_v13 = vpop.eup %5624  ;;  %4219 = vrot.lane.b32.xlu0 %v3714_v41, %s5674_s15 }
 0xa0b   :  { %v3655_v23 = vmul.f32 %v5625_v13, %v8335_v36  ;;  %4453 = vperm.xlu1 %5240, %v4375_v35   ;;  %v3587_v7 = vpop.xlane.xlu2 %3586  ;;  %v5627_v17 = vpop.eup %5626  ;;  %v4378_v36 = vld [vmem:[%s9034_s1 + $0x80] sm:$0xff]  ;;  %v9527_v35 = vld [vmem:[#allocation16_spill] sm:$0xff] }
 0xa0c   :  { %5628 = vrcp.f32 %v3587_v7  ;;  %v3648_v59 = vmul.f32 %v5627_v17, %v8333_v33  ;;  %v8498_v33 = vpop.permute.xlu1 %4143  ;;  %v9528_v17 = vld [vmem:[#allocation20_spill] sm:$0xff] }
 0xa0d   :  { %v3679_v37 = vpack.c.bf16 %v3655_v23, %v3655_v23 }
 0xa0e   :  { %v3672_v10 = vpack.c.bf16 %v3648_v59, %v3648_v59 }
 0xa0f   :  { %v3965_v5 = vunpack.c.l.b16 %v3679_v37  ;;  %v9529_v37 = vld [vmem:[#allocation80_spill] sm:$0xff] }
 0xa10   :  { %4473 = vperm.xlu2 %5238, %v4379_v14   ;;  %v3884_v4 = vunpack.c.l.b16 %v3672_v10  ;;  %v4308_v14 = vsel %vm330_vm1, %v9529_v37, %v9528_v17 }
 0xa11   :  { %v3967_v39 = vpack.c.b16 %v3965_v5, %v3964_v3  ;;  %5198 = vmatmul.msk.bf16.gmra.mxu0 %vm655_vm3, %v3928_v48 }
 0xa12   :  { %v5629_v53 = vpop.eup %5628  ;;  %4231 = vrot.lane.b32.xlu0 %v3794_v22, %s5674_s15 }
 0xa13   :  { %v3649_v52 = vmul.f32 %v5629_v53, %v8341_v61  ;;  %4468 = vperm.xlu1 %5240, %v4378_v36   ;;  %v8495_v15 = vpop.permute.xlu2 %4139  ;;  %5199 = vmatmul.msk.bf16.vlgmr.msrb.gmra.mxu1 %vm655_vm3, %v3967_v39 }
 0xa14   :  { %v8500_v16 = vpop.permute.xlu0 %4129 }
 0xa15   :  { %v3673_v41 = vpack.c.bf16 %v3649_v52, %v3649_v52 }
 0xa17   :  { %v3885_v50 = vunpack.c.l.b16 %v3673_v41 }
 0xa18   :  { %4217 = vrot.lane.b32.xlu2 %v8431_v57, %s5674_s15 }
 0xa19   :  { %v3887_v61 = vpack.c.b16 %v3885_v50, %v3884_v4 }
 0xa1b   :  { %4488 = vperm.xlu1 %5240, %v4382_v25   ;;  %v8507_v18 = vpop.permute.xlu2 %4145  ;;  %5195 = vmatmul.msk.bf16.vlgmr.msrb.gmra.mxu3 %vm655_vm3, %v3887_v61 }
 0xa1c   :  { %v8510_v22 = vpop.permute.xlu0 %4135  ;;  %v3608_v55 = vpop.xlane.xlu1 %3607 }
 0xa1d   :  { %5630 = vrcp.f32 %v3608_v55 }
 0xa20   :  { %4229 = vrot.lane.b32.xlu2 %v8436_v19, %s5674_s15  ;;  %v4307_v19 = vsel %vm330_vm1, %v9521_v44, %v9520_v60 }
 0xa23   :  { %v5631_v63 = vpop.eup %5630  ;;  %v8514_v26 = vpop.permute.xlu2 %4151  ;;  %4221 = vrot.lane.b32.xlu1 %v8457_v40, %s5674_s15  ;;  %v9522_v40 = vld [vmem:[#allocation50_spill] sm:$0xff] }
 0xa24   :  { %v3656_v57 = vmul.f32 %v5631_v63, %v8353_v28  ;;  %v8519_v45 = vpop.permute.xlu0 %4141  ;;  %v3590_v56 = vpop.xlane.xlu1 %3589  ;;  %v4302_v28 = vsel %vm330_vm1, %v9523_v27, %v9522_v40 }
 0xa25   :  { %5632 = vrcp.f32 %v3590_v56 }
 0xa26   :  { %v3680_v49 = vpack.c.bf16 %v3656_v57, %v3656_v57 }
 0xa28   :  { %v3966_v0 = vunpack.c.l.b16 %v3680_v49 }
 0xa2a   :  { %v3968_v21 = vpack.c.b16 %v3966_v0, %v3966_v0 }
 0xa2b   :  { %v5633_v46 = vpop.eup %5632  ;;  %v4158_v43 = vpop.permute.xlu2 %4157  ;;  %4233 = vrot.lane.b32.xlu1 %v8462_v58, %s5674_s15  ;;  %v9525_v58 = vld [vmem:[#allocation57_spill] sm:$0xff] }
 0xa2c   :  { %v3650_v32 = vmul.f32 %v5633_v46, %v8361_v34  ;;  %v8531_v30 = vsel %vm4313_vm4, %v4307_v19, %v4158_v43  ;;  %v4148_v42 = vpop.permute.xlu0 %4147  ;;  %5200 = vmatmul.msk.bf16.gmra.mxu1 %vm655_vm3, %v3968_v21  ;;  %v4310_v62 = vsel %vm330_vm1, %v9525_v58, %v9524_v6  ;;  %v4305_v34 = vsel %vm330_vm1, %v9527_v35, %v9526_v51  ;;  %v9530_v58 = vld [vmem:[#allocation73_spill] sm:$0xff]  ;;  %v9532_v51 = vld [vmem:[#allocation103_spill] sm:$0xff] }
 0xa2d   :  { %v8535_v1 = vsel %vm4313_vm4, %v4302_v28, %v4148_v42  ;;  %v9533_v35 = vld [vmem:[#allocation9_spill] sm:$0xff] }
 0xa2e   :  { %v3674_v2 = vpack.c.bf16 %v3650_v32, %v3650_v32 }
 0xa30   :  { %v3886_v38 = vunpack.c.l.b16 %v3674_v2 }
 0xa32   :  { %v3888_v29 = vpack.c.b16 %v3886_v38, %v3886_v38 }
 0xa33   :  { %v4164_v8 = vpop.permute.xlu2 %4163 }
 0xa34   :  { %v8544_v13 = vsel %vm4313_vm4, %v4310_v62, %v4164_v8  ;;  %v4154_v24 = vpop.permute.xlu0 %4153  ;;  %5196 = vmatmul.msk.bf16.gmra.mxu3 %vm655_vm3, %v3888_v29  ;;  %v9531_v62 = vld [vmem:[#allocation37_spill] sm:$0xff] }
 0xa35   :  { %v8548_v23 = vsel %vm4313_vm4, %v4305_v34, %v4154_v24  ;;  %v4289_v8 = vsel %vm330_vm1, %v9531_v62, %v9530_v58  ;;  %v4290_v34 = vsel %vm330_vm1, %v9533_v35, %v9532_v51  ;;  %v9534_v24 = vld [vmem:[#allocation26_spill] sm:$0xff] }
 0xa36   :  { %v3832_v7 = vpop.f32.mrf.mxu1  ;;  %v4315_v37 = vsel %vm4313_vm4, %v4290_v34, %v8429_v12 }
 0xa37   :  { %4235 = vrot.lane.b32.xlu2 %v3832_v7, %s5674_s15  ;;  %v4314_v7 = vsel %vm4313_vm4, %v4289_v8, %v9534_v24 }
 0xa3b   :  { %v4389_v31 = vpop.permute.xlu2 %4388 }
 0xa3c   :  { %v4160_v3 = vpop.permute.xlu0 %4159 }
 0xa3d   :  { %v8555_v59 = vsel %vm4313_vm4, %v4308_v14, %v4160_v3  ;;  %v8557_v5 = vpop.permute.xlu1 %4149 }
 0xa3e   :  { %v3834_v48 = vpop.f32.mrf.mxu1 }
 0xa3f   :  { %4237 = vrot.lane.b32.xlu0 %v3834_v48, %s5674_s15 }
 0xa43   :  { %v8560_v36 = vpop.permute.xlu2 %4403 }
 0xa44   :  { %v8562_v39 = vpop.permute.xlu0 %4165 }
 0xa45   :  { %v8564_v53 = vpop.permute.xlu1 %4155  ;;  %v3872_v10 = vpop.f32.mrf.mxu2 }
 0xa46   :  { %4241 = vrot.lane.b32.xlu2 %v3872_v10, %s5674_s15  ;;  %v3837_v52 = vpop.f32.mrf.mxu1 }
 0xa47   :  { %4239 = vrot.lane.b32.xlu1 %v3837_v52, %s5674_s15 }
 0xa4b   :  { %v8568_v41 = vpop.permute.xlu2 %4413 }
 0xa4c   :  { %v4394_v4 = vpop.permute.xlu0 %4393 }
 0xa4d   :  { %v8570_v50 = vpop.permute.xlu1 %4161  ;;  %v3752_v25 = vpop.f32.mrf.mxu3 }
 0xa4e   :  { %v3874_v61 = vpop.f32.mrf.mxu2  ;;  %4223 = vrot.lane.b32.xlu2 %v3752_v25, %s5674_s15  ;;  %v3839_v55 = vpop.f32.mrf.mxu1 }
 0xa4f   :  { %4243 = vrot.lane.b32.xlu0 %v3874_v61, %s5674_s15  ;;  %v9535_v55 = vld [vmem:[#allocation91_spill] sm:$0xff] }
 0xa53   :  { %v8574_v63 = vpop.permute.xlu2 %4428 }
 0xa54   :  { %v4419_v57 = vpop.permute.xlu0 %4418 }
 0xa55   :  { %v8576_v56 = vpop.permute.xlu1 %4167  ;;  %v3754_v49 = vpop.f32.mrf.mxu3 }
 0xa56   :  { %v3877_v0 = vpop.f32.mrf.mxu2 }
 0xa57   :  { %4245 = vrot.lane.b32.xlu1 %v3877_v0, %s5674_s15  ;;  %4225 = vrot.lane.b32.xlu0 %v3754_v49, %s5674_s15  ;;  %v9536_v49 = vld [vmem:[#allocation6_spill] sm:$0xff] }
 0xa58   :  { %v4295_v0 = vsel %vm330_vm1, %v9536_v49, %v9535_v55  ;;  %v9539_v49 = vld [vmem:[#allocation12_spill] sm:$0xff] }
 0xa5b   :  { %v8580_v21 = vpop.permute.xlu2 %4443 }
 0xa5c   :  { %v8582_v46 = vpop.permute.xlu0 %4433 }
 0xa5d   :  { %v8584_v60 = vpop.permute.xlu1 %4398  ;;  %v3757_v44 = vpop.f32.mrf.mxu3 }
 0xa5e   :  { %v3879_v19 = vpop.f32.mrf.mxu2 }
 0xa5f   :  { %4227 = vrot.lane.b32.xlu1 %v3757_v44, %s5674_s15  ;;  %v9537_v44 = vld [vmem:[#allocation76_spill] sm:$0xff]  ;;  %v9538_v19 = vld [vmem:[#allocation22_spill] sm:$0xff] }
 0xa60   :  { %v4296_v12 = vsel %vm330_vm1, %v9538_v19, %v9537_v44 }
 0xa63   :  { %v8587_v43 = vpop.permute.xlu2 %4458 }
 0xa64   :  { %v8589_v40 = vpop.permute.xlu0 %4448 }
 0xa65   :  { %v8591_v27 = vpop.permute.xlu1 %4408  ;;  %v3759_v28 = vpop.f32.mrf.mxu3 }
 0xa66   :  { %v4320_v28 = vsel %vm4313_vm4, %v4295_v0, %v8455_v54  ;;  %v9540_v0 = vld [vmem:[#allocation8_spill] sm:$0xff] }
 0xa67   :  { %v4298_v44 = vsel %vm330_vm1, %v9540_v0, %v9539_v49  ;;  %v9546_v49 = vld [vmem:[#allocation30_spill] sm:$0xff] }
 0xa6b   :  { %v8593_v32 = vpop.permute.xlu2 %4478 }
 0xa6c   :  { %v8595_v42 = vpop.permute.xlu0 %4463 }
 0xa6d   :  { %v4424_v2 = vpop.permute.xlu1 %4423 }
 0xa73   :  { %v8597_v38 = vpop.permute.xlu2 %4473 }
 0xa74   :  { %v8599_v29 = vpop.permute.xlu0 %4483 }
 0xa75   :  { %v8601_v6 = vpop.permute.xlu1 %4438 }
 0xa7b   :  { %v4218_v17 = vpop.permute.xlu2 %4217 }
 0xa7c   :  { %v4338_v14 = vsel %vm655_vm3, %v4314_v7, %v4218_v17  ;;  %v4220_v3 = vpop.permute.xlu0 %4219 }
 0xa7d   :  { %v4339_v48 = vsel %vm655_vm3, %v4315_v37, %v4220_v3  ;;  %v8615_v10 = vpop.permute.xlu1 %4453  ;;  %v4506_v61 = vmul.f32 %v4389_v31, %v4338_v14 }
 0xa7e   :  { %v4507_v52 = vmul.f32 %v4394_v4, %v4339_v48  ;;  %v3952_v25 = vpop.f32.mrf.mxu0  ;;  %v4321_v4 = vsel %vm4313_vm4, %v4296_v12, %v8510_v22  ;;  %v4323_v12 = vsel %vm4313_vm4, %v4298_v44, %v8495_v15 }
 0xa7f   :  { %4253 = vrot.lane.b32.xlu2 %v3952_v25, %s5674_s15  ;;  %v4530_v58 = vmax.f32 %v4506_v61, 0.0 }
 0xa80   :  { %v4531_v8 = vmax.f32 %v4507_v52, 0.0 }
 0xa81   :  { %v4557_v37 = vrot.slane %v4530_v58, 4 }
 0xa82   :  { %v4669_v54 = vrot.slane %v4531_v8, 4 }
 0xa83   :  { %v4230_v62 = vpop.permute.xlu2 %4229 }
 0xa84   :  { %v4344_v31 = vsel %vm655_vm3, %v4320_v28, %v4230_v62  ;;  %v4232_v51 = vpop.permute.xlu0 %4231 }
 0xa85   :  { %v4512_v35 = vmul.f32 %v4419_v57, %v4344_v31  ;;  %v4345_v34 = vsel %vm655_vm3, %v4321_v4, %v4232_v51  ;;  %v8630_v24 = vpop.permute.xlu1 %4468  ;;  %v9541_v4 = vld [vmem:[#allocation41_spill] sm:$0xff] }
 0xa86   :  { %v4513_v7 = vmul.f32 %v4424_v2, %v4345_v34  ;;  %v3954_v17 = vpop.f32.mrf.mxu0 }
 0xa87   :  { %v4536_v14 = vmax.f32 %v4512_v35, 0.0  ;;  %4255 = vrot.lane.b32.xlu0 %v3954_v17, %s5674_s15 }
 0xa88   :  { %v4537_v3 = vmax.f32 %v4513_v7, 0.0 }
 0xa89   :  { %v4554_v48 = vrot.slane %v4536_v14, 4  ;;  %v4558_v22 = vsel %vm4555_vm5, %v4536_v14, %v4557_v37  ;;  %v9543_v37 = vld [vmem:[#allocation95_spill] sm:$0xff] }
 0xa8a   :  { %v4667_v52 = vrot.slane %v4537_v3, 4  ;;  %v8635_v25 = vsel %vm4555_vm5, %v4537_v3, %v4669_v54  ;;  %v9544_v14 = vld [vmem:[#allocation7_spill] sm:$0xff] }
 0xa8b   :  { %v4556_v57 = vsel %vm4555_vm5, %v4554_v48, %v4530_v58 }
 0xa8c   :  { %v8639_v61 = vsel %vm4555_vm5, %v4667_v52, %v4531_v8  ;;  %v9542_v8 = vld [vmem:[#allocation15_spill] sm:$0xff] }
 0xa8d   :  { %v8641_v2 = vpop.permute.xlu1 %4488  ;;  %v4291_v31 = vsel %vm330_vm1, %v9542_v8, %v9541_v4 }
 0xa8e   :  { %v3957_v55 = vpop.f32.mrf.mxu0  ;;  %v4316_v51 = vsel %vm4313_vm4, %v4291_v31, %v8357_v11  ;;  %v5675_v31 = vmov 1983009808  }
 0xa8f   :  { %4257 = vrot.lane.b32.xlu1 %v3957_v55, %s5674_s15  ;;  %v9545_v55 = vld [vmem:[#allocation43_spill] sm:$0xff] }
 0xa90   :  { %v3992_v19 = vpop.f32.mrf.mxu1  ;;  %v4301_v0 = vsel %vm330_vm1, %v9546_v49, %v9545_v55  ;;  %v4383_v55 = vld [vmem:[%s9034_s1 + $0xa8] sm:$0xff] }
 0xa91   :  { %4259 = vrot.lane.b32.xlu2 %v3992_v19, %s5674_s15  ;;  %v4236_v28 = vpop.permute.xlu2 %4235  ;;  %v4326_v44 = vsel %vm4313_vm4, %v4301_v0, %v8507_v18  ;;  %v9549_v0 = vld [vmem:[#allocation106_spill] sm:$0xff] }
 0xa92   :  { %v4347_v58 = vsel %vm655_vm3, %v4323_v12, %v4236_v28 }
 0xa93   :  { %v4515_v62 = vmul.f32 %v8582_v46, %v4347_v58  ;;  %v4297_v46 = vsel %vm330_vm1, %v9544_v14, %v9543_v37 }
 0xa94   :  { %v4322_v54 = vsel %vm4313_vm4, %v4297_v46, %v8481_v20 }
 0xa95   :  { %v4222_v35 = vpop.permute.xlu1 %4221 }
 0xa96   :  { %v4340_v34 = vsel %vm655_vm3, %v4316_v51, %v4222_v35  ;;  %v3959_v7 = vpop.f32.mrf.mxu0  ;;  %v4560_v51 = vunpack.c.l.s4 %v5675_v31 }
 0xa97   :  { %v4508_v15 = vmul.f32 %v8584_v60, %v4340_v34  ;;  %v9547_v34 = vld [vmem:[#allocation74_spill] sm:$0xff] }
 0xa98   :  { %v3994_v17 = vpop.f32.mrf.mxu1  ;;  %v9548_v7 = vld [vmem:[#allocation14_spill] sm:$0xff]  ;;  %v8692_v14 = vunpack.c.0.s8 %v4560_v51 }
 0xa99   :  { %4261 = vrot.lane.b32.xlu0 %v3994_v17, %s5674_s15  ;;  %v4532_v3 = vmax.f32 %v4508_v15, 0.0  ;;  %v4292_v15 = vsel %vm330_vm1, %v9548_v7, %v9547_v34  ;;  %v4539_v17 = vmax.f32 %v4515_v62, 0.0 }
 0xa9b   :  { %v4781_v12 = vrot.slane %v4532_v3, 4 }
 0xa9d   :  { %v4234_v48 = vpop.permute.xlu1 %4233 }
 0xa9e   :  { %v4346_v11 = vsel %vm655_vm3, %v4322_v54, %v4234_v48  ;;  %v3912_v52 = vpop.f32.mrf.mxu3  ;;  %v4562_v48 = vperm.slane %v4556_v57, %v8692_v14 }
 0xa9f   :  { %v4514_v60 = vmul.f32 %v8574_v63, %v4346_v11  ;;  %4247 = vrot.lane.b32.xlu2 %v3912_v52, %s5674_s15  ;;  %v4385_v63 = vld [vmem:[%s9034_s1 + $0xb8] sm:$0xff]  ;;  %v4567_v11 = vrot.slane %v4539_v17, 4 }
 0xaa0   :  { %v4242_v19 = vpop.permute.xlu2 %4241 }
 0xaa1   :  { %v4538_v28 = vmax.f32 %v4514_v60, 0.0  ;;  %v4350_v20 = vsel %vm655_vm3, %v4326_v44, %v4242_v19  ;;  %v9550_v60 = vld [vmem:[#allocation27_spill] sm:$0xff] }
 0xaa2   :  { %v8675_v58 = vmul.f32 %v8589_v40, %v4350_v20  ;;  %v4317_v40 = vsel %vm4313_vm4, %v4292_v15, %v8349_v47  ;;  %v4566_v47 = vperm.slane %v4558_v22, %v8692_v14  ;;  %v4299_v44 = vsel %vm330_vm1, %v9550_v60, %v9549_v0 }
 0xaa3   :  { %v4779_v4 = vrot.slane %v4538_v28, 4  ;;  %v8678_v8 = vsel %vm4555_vm5, %v4538_v28, %v4781_v12  ;;  %v4324_v57 = vsel %vm4313_vm4, %v4299_v44, %v8519_v45 }
 0xaa4   :  { %v4617_v28 = vrot.slane %v4566_v47, 4 }
 0xaa5   :  { %v8684_v18 = vsel %vm4555_vm5, %v4779_v4, %v4532_v3 }
 0xaa6   :  { %v3914_v35 = vpop.f32.mrf.mxu3 }
 0xaa7   :  { %4249 = vrot.lane.b32.xlu0 %v3914_v35, %s5674_s15  ;;  %4503 = vperm.xlu2 %5238, %v4385_v63  }
 0xaa8   :  { %v4224_v37 = vpop.permute.xlu2 %4223 }
 0xaa9   :  { %v4341_v46 = vsel %vm655_vm3, %v4317_v40, %v4224_v37  ;;  %v3997_v54 = vpop.f32.mrf.mxu1 }
 0xaaa   :  { %v4509_v3 = vmul.f32 %v8560_v36, %v4341_v46  ;;  %4263 = vrot.lane.b32.xlu1 %v3997_v54, %s5674_s15  ;;  %v4605_v36 = vrot.slane %v4562_v48, 4 }
 0xaac   :  { %v4533_v52 = vmax.f32 %v4509_v3, 0.0 }
 0xaae   :  { %v4568_v62 = vsel %vm4555_vm5, %v4567_v11, %v4533_v52  ;;  %v4569_v49 = vrot.slane %v4533_v52, 4  ;;  %v9552_v11 = vld [vmem:[#allocation33_spill] sm:$0xff] }
 0xaaf   :  { %v4574_v19 = vperm.slane %v4568_v62, %v8692_v14  ;;  %4493 = vperm.xlu0 %5239, %v4383_v55   ;;  %v9553_v55 = vld [vmem:[#allocation67_spill] sm:$0xff] }
 0xab0   :  { %v4570_v12 = vsel %vm4555_vm5, %v4539_v17, %v4569_v49  ;;  %v4384_v17 = vld [vmem:[%s9034_s1 + $0xb0] sm:$0xff]  ;;  %s5677_s1 = smov 32  }
 0xab1   :  { %v4578_v20 = vperm.slane %v4570_v12, %v8692_v14  ;;  %v4603_v22 = vrot.slane %v4574_v19, 4  ;;  %v3999_v4 = vpop.f32.mrf.mxu1  ;;  %v4238_v63 = vpop.permute.xlu0 %4237  ;;  %v8712_v31 = vsel %vm4555_vm5, %v4574_v19, %v4605_v36  ;;  %v4678_v12 = vperm.slane %v8635_v25, %v8692_v14 }
 0xab2   :  { %v4348_v51 = vsel %vm655_vm3, %v4324_v57, %v4238_v63  ;;  %v4674_v57 = vperm.slane %v8639_v61, %v8692_v14  ;;  %v9555_v4 = vld [vmem:[#allocation89_spill] sm:$0xff] }
 0xab3   :  { %v4615_v35 = vrot.slane %v4578_v20, 4  ;;  %v4516_v34 = vmul.f32 %v8601_v6, %v4348_v51  ;;  %v8717_v7 = vsel %vm4555_vm5, %v4603_v22, %v4562_v48  ;;  %v8720_v45 = vsel %vm4555_vm5, %v4578_v20, %v4617_v28  ;;  %v9551_v48 = vld [vmem:[#allocation104_spill] sm:$0xff]  ;;  %v9556_v63 = vld [vmem:[#allocation5_spill] sm:$0xff] }
 0xab4   :  { %v4300_v52 = vsel %vm330_vm1, %v9552_v11, %v9551_v48  ;;  %v4294_v51 = vsel %vm330_vm1, %v9556_v63, %v9555_v4  ;;  %v4786_v48 = vperm.slane %v8684_v18, %v8692_v14 }
 0xab5   :  { %v8723_v15 = vsel %vm4555_vm5, %v4615_v35, %v4566_v47  ;;  %v9554_v47 = vld [vmem:[#allocation10_spill] sm:$0xff]  ;;  %v4325_v49 = vsel %vm4313_vm4, %v4300_v52, %v8498_v33  ;;  %v4540_v60 = vmax.f32 %v4516_v34, 0.0  ;;  %v4717_v35 = vrot.slane %v4674_v57, 4 }
 0xab6   :  { %v4293_v62 = vsel %vm330_vm1, %v9554_v47, %v9553_v55  ;;  %v4319_v61 = vsel %vm4313_vm4, %v4294_v51, %v8467_v9  ;;  %v4729_v34 = vrot.slane %v4678_v12, 4  ;;  %v4790_v55 = vperm.slane %v8678_v8, %v8692_v14 }
 0xab7   :  { %v3917_v40 = vpop.f32.mrf.mxu3  ;;  %v4318_v0 = vsel %vm4313_vm4, %v4293_v62, %v8500_v16  ;;  %v4679_v28 = vrot.slane %v4540_v60, 4 }
 0xab8   :  { %4251 = vrot.lane.b32.xlu1 %v3917_v40, %s5674_s15 }
 0xab9   :  { %v4240_v46 = vpop.permute.xlu1 %4239 }
 0xabf   :  { %v3919_v37 = vpop.f32.mrf.mxu3 }
 0xac0   :  { %4498 = vperm.xlu1 %5240, %v4384_v17  }
 0xac1   :  { %v4244_v6 = vpop.permute.xlu0 %4243 }
 0xac2   :  { %v4351_v54 = vsel %vm655_vm3, %v8535_v1, %v4244_v6 }
 0xac3   :  { %v8732_v3 = vmul.f32 %v8615_v10, %v4351_v54  ;;  %v4349_v10 = vsel %vm655_vm3, %v4325_v49, %v4240_v46 }
 0xac4   :  { %v4517_v33 = vmul.f32 %v8580_v21, %v4349_v10  ;;  %v4542_v10 = vmax.f32 %v8675_v58, 0.0 }
 0xac6   :  { %v4541_v40 = vmax.f32 %v4517_v33, 0.0 }
 0xac8   :  { %v4791_v47 = vrot.slane %v4541_v40, 4 }
 0xac9   :  { %v4246_v44 = vpop.permute.xlu1 %4245  ;;  %v4226_v1 = vpop.permute.xlu0 %4225 }
 0xaca   :  { %v4342_v36 = vsel %vm655_vm3, %v4318_v0, %v4226_v1  ;;  %v4841_v1 = vrot.slane %v4790_v55, 4 }
 0xacb   :  { %v4510_v19 = vmul.f32 %v8591_v27, %v4342_v36 }
 0xacd   :  { %v4534_v20 = vmax.f32 %v4510_v19, 0.0 }
 0xacf   :  { %v4680_v16 = vsel %vm4555_vm5, %v4679_v28, %v4534_v20  ;;  %v4681_v22 = vrot.slane %v4534_v20, 4 }
 0xad0   :  { %v4686_v27 = vperm.slane %v4680_v16, %v8692_v14 }
 0xad1   :  { %v4682_v25 = vsel %vm4555_vm5, %v4540_v60, %v4681_v22  ;;  %v4228_v17 = vpop.permute.xlu1 %4227  ;;  %v4829_v60 = vrot.slane %v4786_v48, 4  ;;  %v4581_v22 = vrot.slane %v4542_v10, 4 }
 0xad2   :  { %v4690_v21 = vperm.slane %v4682_v25, %v8692_v14  ;;  %v4715_v37 = vrot.slane %v4686_v27, 4  ;;  %v4343_v46 = vsel %vm655_vm3, %v4319_v61, %v4228_v17  ;;  %v8763_v6 = vsel %vm4555_vm5, %v4686_v27, %v4717_v35  ;;  %v9557_v27 = vld [vmem:[#allocation99_spill] sm:$0xff]  ;;  %v9558_v61 = vld [vmem:[#allocation32_spill] sm:$0xff] }
 0xad3   :  { %v4511_v54 = vmul.f32 %v8568_v41, %v4343_v46 }
 0xad4   :  { %v4727_v11 = vrot.slane %v4690_v21, 4  ;;  %v8769_v9 = vsel %vm4555_vm5, %v4715_v37, %v4674_v57  ;;  %v8772_v52 = vsel %vm4555_vm5, %v4690_v21, %v4729_v34 }
 0xad5   :  { %v4535_v62 = vmax.f32 %v4511_v54, 0.0 }
 0xad6   :  { %v8777_v49 = vsel %vm4555_vm5, %v4727_v11, %v4678_v12 }
 0xad7   :  { %v4792_v41 = vsel %vm4555_vm5, %v4791_v47, %v4535_v62  ;;  %v4793_v0 = vrot.slane %v4535_v62, 4  ;;  %v9559_v47 = vld [vmem:[#allocation94_spill] sm:$0xff] }
 0xad8   :  { %v4798_v18 = vperm.slane %v4792_v41, %v8692_v14 }
 0xad9   :  { %v4794_v36 = vsel %vm4555_vm5, %v4541_v40, %v4793_v0  ;;  %v4254_v19 = vpop.permute.xlu2 %4253  ;;  %v4543_v40 = vmax.f32 %v8732_v3, 0.0 }
 0xada   :  { %v4802_v57 = vperm.slane %v4794_v36, %v8692_v14  ;;  %v4827_v8 = vrot.slane %v4798_v18, 4  ;;  %v4356_v28 = vsel %vm655_vm3, %v8531_v30, %v4254_v19  ;;  %v8787_v12 = vsel %vm4555_vm5, %v4798_v18, %v4829_v60 }
 0xadb   :  { %v4524_v33 = vmul.f32 %v8593_v32, %v4356_v28  ;;  %v4303_v32 = vsel %vm330_vm1, %v9558_v61, %v9557_v27  ;;  %v4693_v46 = vrot.slane %v4543_v40, 4 }
 0xadc   :  { %v4839_v20 = vrot.slane %v4802_v57, 4  ;;  %v8791_v16 = vsel %vm4555_vm5, %v4827_v8, %v4786_v48  ;;  %v8794_v58 = vsel %vm4555_vm5, %v4802_v57, %v4841_v1  ;;  %v4328_v34 = vsel %vm4313_vm4, %v4303_v32, %v8557_v5  ;;  %v9560_v5 = vld [vmem:[#allocation42_spill] sm:$0xff]  ;;  %v9561_v57 = vld [vmem:[#allocation60_spill] sm:$0xff]  ;;  %v9563_v32 = vld [vmem:[#allocation31_spill] sm:$0xff] }
 0xadd   :  { %v4548_v4 = vmax.f32 %v4524_v33, 0.0  ;;  %v4352_v17 = vsel %vm655_vm3, %v4328_v34, %v4246_v44  ;;  %v4309_v3 = vsel %vm330_vm1, %v9560_v5, %v9559_v47  ;;  %v9562_v8 = vld [vmem:[#allocation24_spill] sm:$0xff]  ;;  %v9564_v34 = vld [vmem:[#allocation93_spill] sm:$0xff] }
 0xade   :  { %v8797_v63 = vsel %vm4555_vm5, %v4839_v20, %v4790_v55  ;;  %v4520_v54 = vmul.f32 %v8587_v43, %v4352_v17  ;;  %v4334_v44 = vsel %vm4313_vm4, %v4309_v3, %v8570_v50  ;;  %v4304_v28 = vsel %vm330_vm1, %v9562_v8, %v9561_v57  ;;  %v9565_v3 = vld [vmem:[#allocation96_spill] sm:$0xff] }
 0xadf   :  { %v4579_v51 = vrot.slane %v4548_v4, 4  ;;  %v4582_v30 = vsel %vm4555_vm5, %v4548_v4, %v4581_v22  ;;  %v4329_v33 = vsel %vm4313_vm4, %v4304_v28, %v8514_v26  ;;  %v5676_v22 = vmov 1934713408  }
 0xae0   :  { %v4544_v62 = vmax.f32 %v4520_v54, 0.0  ;;  %v4608_v4 = vunpack.c.l.s4 %v5676_v22 }
 0xae1   :  { %v4580_v35 = vsel %vm4555_vm5, %v4579_v51, %v4542_v10 }
 0xae2   :  { %v4805_v0 = vrot.slane %v4544_v62, 4  ;;  %v8836_v61 = vunpack.c.0.s8 %v4608_v4 }
 0xae4   :  { %v4614_v54 = vperm.slane %v8712_v31, %v8836_v61 }
 0xaeb   :  { %v4260_v36 = vpop.permute.xlu2 %4259 }
 0xaec   :  { %v4359_v26 = vsel %vm655_vm3, %v8544_v13, %v4260_v36  ;;  %v4626_v13 = vperm.slane %v8720_v45, %v8836_v61 }
 0xaee   :  { %v4665_v8 = vrot.slane %v4626_v13, 4 }
 0xaf9   :  { %v4256_v25 = vpop.permute.xlu0 %4255  ;;  %v4248_v50 = vpop.permute.xlu2 %4247 }
 0xafa   :  { %v4357_v21 = vsel %vm655_vm3, %v8555_v59, %v4256_v25 }
 0xafb   :  { %v4525_v37 = vmul.f32 %v8599_v29, %v4357_v21 }
 0xafd   :  { %v4549_v48 = vmax.f32 %v4525_v37, 0.0 }
 0xaff   :  { %v4691_v11 = vrot.slane %v4549_v48, 4  ;;  %v8813_v55 = vsel %vm4555_vm5, %v4549_v48, %v4693_v46  ;;  %v8851_v48 = vperm.slane %v8717_v7, %v8836_v61 }
 0xb01   :  { %v8821_v59 = vsel %vm4555_vm5, %v4691_v11, %v4543_v40  ;;  %v4258_v29 = vpop.permute.xlu1 %4257  ;;  %v4312_v40 = vsel %vm330_vm1, %v9564_v34, %v9563_v32  ;;  %v4586_v11 = vperm.slane %v4580_v35, %v8692_v14  ;;  %v4653_v57 = vrot.slane %v8851_v48, 4 }
 0xb02   :  { %v4358_v41 = vsel %vm655_vm3, %v4334_v44, %v4258_v29  ;;  %v4337_v17 = vsel %vm4313_vm4, %v4312_v40, %v8576_v56  ;;  %v4504_v56 = vpop.permute.xlu2 %4503  ;;  %v9566_v44 = vld [vmem:[#allocation17_spill] sm:$0xff]  ;;  %v9567_v29 = vld [vmem:[#allocation88_spill] sm:$0xff] }
 0xb03   :  { %v4526_v43 = vmul.f32 %v8641_v2, %v4358_v41  ;;  %v4353_v2 = vsel %vm655_vm3, %v4329_v33, %v4248_v50  ;;  %v9568_v41 = vld [vmem:[#allocation90_spill] sm:$0xff]  ;;  %v4629_v36 = vrot.slane %v4586_v11, 4 }
 0xb04   :  { %v4521_v51 = vmul.f32 %v8595_v42, %v4353_v2  ;;  %v4590_v42 = vperm.slane %v4582_v30, %v8692_v14  ;;  %v4311_v31 = vsel %vm330_vm1, %v9568_v41, %v9567_v29 }
 0xb05   :  { %v4550_v60 = vmax.f32 %v4526_v43, 0.0 }
 0xb06   :  { %v4545_v25 = vmax.f32 %v4521_v51, 0.0  ;;  %v8882_v51 = vperm.slane %v8787_v12, %v8836_v61 }
 0xb07   :  { %v4803_v18 = vrot.slane %v4550_v60, 4  ;;  %v4806_v1 = vsel %vm4555_vm5, %v4550_v60, %v4805_v0  ;;  %v4641_v0 = vrot.slane %v4590_v42, 4 }
 0xb08   :  { %v4593_v47 = vrot.slane %v4545_v25, 4 }
 0xb09   :  { %v4804_v10 = vsel %vm4555_vm5, %v4803_v18, %v4544_v62  ;;  %v4306_v62 = vsel %vm330_vm1, %v9566_v44, %v9565_v3  ;;  %v4657_v18 = vrot.slane %v4614_v54, 4 }
 0xb0a   :  { %v4331_v7 = vsel %vm4313_vm4, %v4306_v62, %v8564_v53 }
 0xb0b   :  { %v8827_v19 = vpop.permute.xlu0 %4261 }
 0xb19   :  { %v4250_v20 = vpop.permute.xlu0 %4249 }
 0xb1a   :  { %v4354_v60 = vsel %vm655_vm3, %v8548_v23, %v4250_v20  ;;  %v8878_v20 = vperm.slane %v8723_v15, %v8836_v61  ;;  %v4810_v15 = vperm.slane %v4804_v10, %v8692_v14 }
 0xb1b   :  { %v8873_v22 = vmul.f32 %v8630_v24, %v4354_v60 }
 0xb1c   :  { %v4264_v27 = vpop.permute.xlu1 %4263 }
 0xb1d   :  { %v4361_v37 = vsel %vm655_vm3, %v4337_v17, %v4264_v27 }
 0xb1e   :  { %v4529_v30 = vmul.f32 %v4504_v56, %v4361_v37 }
 0xb20   :  { %v4553_v28 = vmax.f32 %v4529_v30, 0.0  ;;  %v4853_v30 = vrot.slane %v4810_v15, 4 }
 0xb21   :  { %v4494_v21 = vpop.permute.xlu0 %4493 }
 0xb22   :  { %v4527_v46 = vmul.f32 %v4494_v21, %v4359_v26  ;;  %v4814_v21 = vperm.slane %v4806_v1, %v8692_v14  ;;  %v4815_v12 = vrot.slane %v4553_v28, 4  ;;  %v4661_v1 = vrot.slane %v8878_v20, 4 }
 0xb24   :  { %v4551_v5 = vmax.f32 %v4527_v46, 0.0  ;;  %v4865_v41 = vrot.slane %v4814_v21, 4 }
 0xb26   :  { %v4591_v43 = vrot.slane %v4551_v5, 4  ;;  %v4594_v35 = vsel %vm4555_vm5, %v4551_v5, %v4593_v47  ;;  %v4546_v5 = vmax.f32 %v8873_v22, 0.0 }
 0xb27   :  { %v4602_v45 = vperm.slane %v4594_v35, %v8692_v14 }
 0xb28   :  { %v4592_v50 = vsel %vm4555_vm5, %v4591_v43, %v4545_v25  ;;  %v4881_v43 = vrot.slane %v8882_v51, 4 }
 0xb29   :  { %v4598_v33 = vperm.slane %v4592_v50, %v8692_v14  ;;  %v4639_v53 = vrot.slane %v4602_v45, 4  ;;  %v4642_v2 = vsel %vm4555_vm5, %v4602_v45, %v4641_v0 }
 0xb2a   :  { %v4252_v4 = vpop.permute.xlu1 %4251  ;;  %v4650_v23 = vperm.slane %v4642_v2, %v8836_v61 }
 0xb2b   :  { %v4627_v27 = vrot.slane %v4598_v33, 4  ;;  %v4355_v32 = vsel %vm655_vm3, %v4331_v7, %v4252_v4  ;;  %v4630_v34 = vsel %vm4555_vm5, %v4598_v33, %v4629_v36  ;;  %v4640_v40 = vsel %vm4555_vm5, %v4639_v53, %v4590_v42 }
 0xb2c   :  { %v4523_v24 = vmul.f32 %v8597_v38, %v4355_v32  ;;  %v4638_v25 = vperm.slane %v4630_v34, %v8836_v61  ;;  %v4663_v17 = vrot.slane %v4650_v23, 4  ;;  %v4666_v26 = vsel %vm4555_vm5, %v4650_v23, %v4665_v8 }
 0xb2d   :  { %v4628_v37 = vsel %vm4555_vm5, %v4627_v27, %v4586_v11  ;;  %v4336_v38 = vsel %vm4313_vm4, %v4311_v31, %v8562_v39  ;;  %v4738_v39 = vperm.slane %v8772_v52, %v8836_v61  ;;  %v4702_v52 = vperm.slane %v8813_v55, %v8692_v14 }
 0xb2e   :  { %v4547_v46 = vmax.f32 %v4523_v24, 0.0  ;;  %v4658_v47 = vsel %vm4555_vm5, %v4638_v25, %v4657_v18  ;;  %v4655_v56 = vrot.slane %v4638_v25, 4  ;;  %v8895_v42 = vperm.slane %v4628_v37, %v8836_v61 }
 0xb2f   :  { %4900 = vrot.lane.b32.xlu2 %v4658_v47, %s5662_s23  ;;  %v4664_v10 = vsel %vm4555_vm5, %v4663_v17, %v4626_v13  ;;  %v4850_v13 = vperm.slane %v8794_v58, %v8836_v61  ;;  %v4360_v7 = vsel %vm655_vm3, %v4336_v38, %v8827_v19  ;;  %v4705_v18 = vrot.slane %v4546_v5, 4 }
 0xb30   :  { %v4816_v11 = vsel %vm4555_vm5, %v4815_v12, %v4547_v46  ;;  %v4817_v3 = vrot.slane %v4547_v46, 4  ;;  %v4656_v44 = vsel %vm4555_vm5, %v4655_v56, %v4614_v54  ;;  %v4654_v62 = vsel %vm4555_vm5, %v8895_v42, %v4653_v57 }
 0xb31   :  { %v4822_v29 = vperm.slane %v4816_v11, %v8692_v14  ;;  %4896 = vrot.lane.b32.xlu1 %v4656_v44, %s5664_s25  ;;  %4892 = vrot.lane.b32.xlu0 %v4654_v62, %s5677_s1  ;;  %v8923_v58 = vperm.slane %v4640_v40, %v8836_v61  ;;  %v4889_v23 = vrot.slane %v4850_v13, 4  ;;  %v4753_v27 = vrot.slane %v4702_v52, 4 }
 0xb32   :  { %v4818_v54 = vsel %vm4555_vm5, %v4553_v28, %v4817_v3  ;;  %v4499_v31 = vpop.permute.xlu1 %4498  ;;  %v4698_v28 = vperm.slane %v8821_v59, %v8692_v14  ;;  %v4726_v24 = vperm.slane %v8763_v6, %v8836_v61  ;;  %v4777_v47 = vrot.slane %v4738_v39, 4 }
 0xb33   :  { %v4826_v35 = vperm.slane %v4818_v54, %v8692_v14  ;;  %v4851_v0 = vrot.slane %v4822_v29, 4  ;;  %v4528_v60 = vmul.f32 %v4499_v31, %v4360_v7  ;;  %v4854_v45 = vsel %vm4555_vm5, %v4822_v29, %v4853_v30 }
 0xb34   :  { %v4862_v36 = vperm.slane %v4854_v45, %v8836_v61  ;;  %v4662_v34 = vsel %vm4555_vm5, %v8923_v58, %v4661_v1  ;;  %v8977_v31 = vperm.slane %v8791_v16, %v8836_v61  ;;  %v4846_v16 = vperm.slane %v8797_v63, %v8836_v61 }
 0xb35   :  { %v4863_v50 = vrot.slane %v4826_v35, 4  ;;  %v4552_v57 = vmax.f32 %v4528_v60, 0.0  ;;  %v4852_v19 = vsel %vm4555_vm5, %v4851_v0, %v4810_v15  ;;  %v4866_v8 = vsel %vm4555_vm5, %v4826_v35, %v4865_v41 }
 0xb36   :  { %v4879_v33 = vrot.slane %v4862_v36, 4  ;;  %v4874_v53 = vperm.slane %v4866_v8, %v8836_v61  ;;  %v4882_v55 = vsel %vm4555_vm5, %v4862_v36, %v4881_v43  ;;  %v4741_v15 = vrot.slane %v4698_v28, 4 }
 0xb37   :  { %v4703_v2 = vrot.slane %v4552_v57, 4  ;;  %v4706_v22 = vsel %vm4555_vm5, %v4552_v57, %v4705_v18  ;;  %4908 = vrot.lane.b32.xlu2 %v4664_v10, %s5664_s25  ;;  %v4864_v4 = vsel %vm4555_vm5, %v4863_v50, %v4814_v21  ;;  %v8968_v41 = vperm.slane %v8777_v49, %v8836_v61 }
 0xb38   :  { %v4714_v32 = vperm.slane %v4706_v22, %v8692_v14  ;;  %v4880_v59 = vsel %vm4555_vm5, %v4879_v33, %v8882_v51  ;;  %v4887_v25 = vrot.slane %v4874_v53, 4  ;;  %v4890_v17 = vsel %vm4555_vm5, %v4874_v53, %v4889_v23 }
 0xb39   :  { %v4704_v40 = vsel %vm4555_vm5, %v4703_v2, %v4546_v5  ;;  %4912 = vrot.lane.b32.xlu1 %v4666_v26, %s5662_s23  ;;  %4904 = vrot.lane.b32.xlu0 %v4662_v34, %s5677_s1  ;;  %v8950_v51 = vperm.slane %v8769_v9, %v8836_v61  ;;  %v4858_v7 = vperm.slane %v4852_v19, %v8836_v61  ;;  %v4877_v49 = vrot.slane %v8977_v31, 4 }
 0xb3a   :  { %v4710_v21 = vperm.slane %v4704_v40, %v8692_v14  ;;  %v4751_v12 = vrot.slane %v4714_v32, 4  ;;  %v4754_v37 = vsel %vm4555_vm5, %v4714_v32, %v4753_v27  ;;  %v4888_v46 = vsel %vm4555_vm5, %v4887_v25, %v4850_v13 }
 0xb3b   :  { %v4762_v26 = vperm.slane %v4754_v37, %v8836_v61  ;;  %v4769_v14 = vrot.slane %v4726_v24, 4  ;;  %v4765_v44 = vrot.slane %v8950_v51, 4  ;;  %v4878_v35 = vsel %vm4555_vm5, %v4858_v7, %v4877_v49 }
 0xb3c   :  { %v4739_v56 = vrot.slane %v4710_v21, 4  ;;  %v4742_v6 = vsel %vm4555_vm5, %v4710_v21, %v4741_v15  ;;  %v4752_v38 = vsel %vm4555_vm5, %v4751_v12, %v4702_v52  ;;  %v4870_v0 = vperm.slane %v4864_v4, %v8836_v61 }
 0xb3d   :  { %v4750_v5 = vperm.slane %v4742_v6, %v8836_v61  ;;  %v4775_v10 = vrot.slane %v4762_v26, 4  ;;  %v4778_v1 = vsel %vm4555_vm5, %v4762_v26, %v4777_v47  ;;  %v8973_v54 = vperm.slane %v4752_v38, %v8836_v61 }
 0xb3e   :  { %v4740_v11 = vsel %vm4555_vm5, %v4739_v56, %v4698_v28  ;;  %v4885_v60 = vrot.slane %v4846_v16, 4  ;;  %v4651_v63 = vrot.slane %v8895_v42, 4  ;;  %v4659_v33 = vrot.slane %v8923_v58, 4 }
 0xb3f   :  { %v4770_v9 = vsel %vm4555_vm5, %v4750_v5, %v4769_v14  ;;  %v4746_v3 = vperm.slane %v4740_v11, %v8836_v61  ;;  %v4767_v62 = vrot.slane %v4750_v5, 4  ;;  %v4776_v30 = vsel %vm4555_vm5, %v4775_v10, %v4738_v39 }
 0xb40   :  { %4924 = vrot.lane.b32.xlu2 %v4770_v9, %s5662_s23  ;;  %v4773_v39 = vrot.slane %v8968_v41, 4  ;;  %v4886_v45 = vsel %vm4555_vm5, %v4870_v0, %v4885_v60  ;;  %v4652_v50 = vsel %vm4555_vm5, %v4651_v63, %v8851_v48  ;;  %v4660_v42 = vsel %vm4555_vm5, %v4659_v33, %v8878_v20 }
 0xb41   :  { %v4766_v29 = vsel %vm4555_vm5, %v4746_v3, %v4765_v44  ;;  %v4768_v13 = vsel %vm4555_vm5, %v4767_v62, %v4726_v24  ;;  %v4763_v4 = vrot.slane %v4746_v3, 4  ;;  %v4875_v15 = vrot.slane %v4858_v7, 4 }
 0xb42   :  { %4916 = vrot.lane.b32.xlu1 %v4766_v29, %s5677_s1  ;;  %4920 = vrot.lane.b32.xlu0 %v4768_v13, %s5664_s25  ;;  %v4774_v43 = vsel %vm4555_vm5, %v8973_v54, %v4773_v39  ;;  %v4771_v26 = vrot.slane %v8973_v54, 4 }
 0xb43   :  { %v4764_v27 = vsel %vm4555_vm5, %v4763_v4, %v8950_v51  ;;  %v4876_v6 = vsel %vm4555_vm5, %v4875_v15, %v8977_v31 }
 0xb44   :  { %v4772_v5 = vsel %vm4555_vm5, %v4771_v26, %v8968_v41 }
 0xb48   :  { %4928 = vrot.lane.b32.xlu2 %v4774_v43, %s5677_s1 }
 0xb4a   :  { %4932 = vrot.lane.b32.xlu1 %v4776_v30, %s5664_s25  ;;  %4940 = vrot.lane.b32.xlu0 %v4878_v35, %s5677_s1 }
 0xb50   :  { %4944 = vrot.lane.b32.xlu2 %v4880_v59, %s5664_s25 }
 0xb52   :  { %4952 = vrot.lane.b32.xlu1 %v4886_v45, %s5677_s1  ;;  %4956 = vrot.lane.b32.xlu0 %v4888_v46, %s5664_s25 }
 0xb58   :  { %4960 = vrot.lane.b32.xlu2 %v4890_v17, %s5662_s23  ;;  %v4883_v17 = vrot.slane %v4870_v0, 4 }
 0xb5a   :  { %4948 = vrot.lane.b32.xlu1 %v4882_v55, %s5662_s23  ;;  %4936 = vrot.lane.b32.xlu0 %v4778_v1, %s5662_s23  ;;  %v4884_v21 = vsel %vm4555_vm5, %v4883_v17, %v4846_v16  ;;  %s5678_s23 = smov [#allocation2]  }
 0xb5b   :  { %s4994_s25 = sshll.u32 %s5678_s23, 4  ;;  %s4995_s25 = int_to_ptr.vmem [resolvable:$true] %s4994_s25 }
 0xb89   :  { %v4901_v52 = vpop.permute.xlu2 %4900 }
 0xb91   :  { %v4909_v18 = vpop.permute.xlu2 %4908 }
 0xb9a   :  { %v4925_v28 = vpop.permute.xlu2 %4924 }
 0xba2   :  { %v4929_v23 = vpop.permute.xlu2 %4928 }
 0xba3   :  { %v4897_v61 = vpop.permute.xlu1 %4896  ;;  %v4893_v36 = vpop.permute.xlu0 %4892  ;;  %v4974_v14 = vsel %vm129_vm0, %v4772_v5, %v4929_v23 }
 0xba4   :  { %v4963_v57 = vsel %vm129_vm0, %v4652_v50, %v4893_v36 }
 0xba5   :  { %v4965_v19 = vsel %vm4964_vm6, %v4963_v57, %v4897_v61 }
 0xba6   :  { %v4967_v8 = vsel %vm4966_vm7, %v4965_v19, %v4901_v52 }
 0xba7   :  { %4983 = vst [vmem:[#allocation2] sm:$0xff] %v4967_v8 }
 0xbaa   :  { %v4945_v40 = vpop.permute.xlu2 %4944 }
 0xbab   :  { %v4905_v53 = vpop.permute.xlu0 %4904  ;;  %v4913_v55 = vpop.permute.xlu1 %4912 }
 0xbac   :  { %v4968_v2 = vsel %vm129_vm0, %v4660_v42, %v4905_v53 }
 0xbad   :  { %v4969_v22 = vsel %vm4964_vm6, %v4968_v2, %v4909_v18 }
 0xbae   :  { %v4970_v48 = vsel %vm4966_vm7, %v4969_v22, %v4913_v55 }
 0xbaf   :  { %4984 = vst [vmem:[#allocation2 + $0x8] sm:$0xff] %v4970_v48 }
 0xbb2   :  { %v4961_v46 = vpop.permute.xlu2 %4960 }
 0xbb4   :  { %v4917_v32 = vpop.permute.xlu1 %4916  ;;  %v4921_v34 = vpop.permute.xlu0 %4920 }
 0xbb5   :  { %v4971_v58 = vsel %vm129_vm0, %v4764_v27, %v4917_v32 }
 0xbb6   :  { %v4972_v20 = vsel %vm4964_vm6, %v4971_v58, %v4921_v34 }
 0xbb7   :  { %v4973_v59 = vsel %vm4966_vm7, %v4972_v20, %v4925_v28 }
 0xbb8   :  { %4985 = vst [vmem:[#allocation2 + $0x10] sm:$0xff] %v4973_v59 }
 0xbbc   :  { %v4933_v24 = vpop.permute.xlu1 %4932  ;;  %v4941_v25 = vpop.permute.xlu0 %4940 }
 0xbbd   :  { %v4977_v38 = vsel %vm129_vm0, %v4876_v6, %v4941_v25  ;;  %v4975_v10 = vsel %vm4964_vm6, %v4974_v14, %v4933_v24 }
 0xbbe   :  { %v4978_v11 = vsel %vm4964_vm6, %v4977_v38, %v4945_v40 }
 0xbc4   :  { %v4953_v12 = vpop.permute.xlu1 %4952  ;;  %v4957_v37 = vpop.permute.xlu0 %4956 }
 0xbc5   :  { %v4980_v51 = vsel %vm129_vm0, %v4884_v21, %v4953_v12 }
 0xbc6   :  { %v4981_v47 = vsel %vm4964_vm6, %v4980_v51, %v4957_v37 }
 0xbc7   :  { %v4982_v56 = vsel %vm4966_vm7, %v4981_v47, %v4961_v46 }
 0xbc8   :  { %4988 = vst [vmem:[#allocation2 + $0x28] sm:$0xff] %v4982_v56 }
 0xbcc   :  { %v4949_v1 = vpop.permute.xlu1 %4948  ;;  %v4937_v9 = vpop.permute.xlu0 %4936 }
 0xbcd   :  { %v4979_v3 = vsel %vm4966_vm7, %v4978_v11, %v4949_v1  ;;  %v4976_v44 = vsel %vm4966_vm7, %v4975_v10, %v4937_v9 }
 0xbce   :  { %4987 = vst [vmem:[#allocation2 + $0x20] sm:$0xff] %v4979_v3 }
 0xbcf   :  { %4986 = vst [vmem:[#allocation2 + $0x18] sm:$0xff] %v4976_v44 }
 0xbd0   :  { %4999 = dma.vmem_to_hbm [thread:$0]  %s4995_s25, 768, %s4997_s30, [#allocation3]  }
 0xbd1   :  { %5658 = dma.done.wait [#allocation3], 768  }
 0xbd2   :  { %5659 = vsyncadd [#allocation3], 4294966528 }
 0xbd3   :  { %5004 = vsyncpa [#allocation3], 1 }

</bundles_post_ra>
